<compile_context>
chip_gen: v6e
topology: v6e:2x2x1
jax: 0.10.0
libtpu: 0.0.40
codegen_flags: <defaults>
</compile_context>

<pallas_src>
import math
from functools import partial, lru_cache

import jax
import jax.numpy as jnp
from jax import lax
from jax.experimental import pallas as pl
from jax.experimental.pallas import tpu as pltpu

VMEM_LIMIT = 32 * 1024 * 1024  # conservative: fits v7x (64 MiB physical VMEM)


def _ru(x, m):
    return (x + m - 1) // m * m


def _row_tile(M):
    """Pick (TM, Mp): power-of-two tile dividing M, >=2 tiles when possible
    (so the 'parallel' row axis can shard across v7x's two TensorCores)."""
    cap = 1024
    if M >= 16:
        cap = min(cap, M // 2)
    for cand in (1024, 512, 256, 128, 64, 32, 16, 8):
        if cand <= cap and M % cand == 0:
            return cand, M
    if M <= 1024:
        return M, M            # full-extent single tile (allowed for any M)
    Mp = _ru(M, 512)
    return 512, Mp


# ---------------------------------------------------------------------------
# Pallas kernel 1: single-shot matmul, bf16 operands, f32 accumulate,
# fused bias, bf16 (or f32) store.  Optional fused BN statistics.
# Weight (B) + bias stay resident in VMEM across all row tiles.
# ---------------------------------------------------------------------------
def _matmul_kernel(a_ref, b_ref, bias_ref, o_ref):
    y = jnp.dot(a_ref[...], b_ref[...],
                preferred_element_type=jnp.float32) + bias_ref[...]
    o_ref[...] = y.astype(o_ref.dtype)


def _matmul_stats_kernel(a_ref, b_ref, bias_ref, o_ref, sum_ref, sq_ref):
    y = jnp.dot(a_ref[...], b_ref[...],
                preferred_element_type=jnp.float32) + bias_ref[...]
    o_ref[...] = y.astype(o_ref.dtype)
    # stats from the f32 accumulator (one (1,1,N) row per row tile)
    sum_ref[...] = jnp.sum(y, axis=0, keepdims=True)[None]
    sq_ref[...] = jnp.sum(y * y, axis=0, keepdims=True)[None]


def pallas_matmul(a, b, bias=None, with_stats=False, out_dtype=jnp.bfloat16):
    """a:[M,K] @ b:[K,N] (+bias[N]) -> [M,N] out_dtype (+ f32 sum/sumsq [N])."""
    M, K = a.shape
    _, N = b.shape
    a = a.astype(jnp.bfloat16)
    b = b.astype(jnp.bfloat16)

    # tiny-K pad only (weight side is tiny; the activation pad is negligible)
    if K < 8:
        Kp = 8
        a = jnp.zeros((M, Kp), jnp.bfloat16).at[:, :K].set(a)
        b = jnp.zeros((Kp, N), jnp.bfloat16).at[:K].set(b)
        K = Kp

    TM, Mp = _row_tile(M)
    # keep 2x-buffered A tile + resident B comfortably inside VMEM
    while TM >= 16 and Mp % (TM // 2) == 0 and \
            (2 * TM * K + K * N) * 2 > VMEM_LIMIT // 2:
        TM //= 2

    if Mp != M:
        a = jnp.zeros((Mp, K), jnp.bfloat16).at[:M].set(a)
    if bias is None:
        bias2 = jnp.zeros((1, N), jnp.float32)
    else:
        bias2 = bias.reshape(1, N).astype(jnp.float32)

    nm = Mp // TM
    in_specs = [
        pl.BlockSpec((TM, K), lambda i: (i, 0)),      # row tile of A
        pl.BlockSpec((K, N), lambda i: (0, 0)),       # whole weight, resident
        pl.BlockSpec((1, N), lambda i: (0, 0)),       # bias, resident
    ]
    cparams = pltpu.CompilerParams(
        dimension_semantics=("parallel",), vmem_limit_bytes=VMEM_LIMIT)

    if not with_stats:
        out = pl.pallas_call(
            _matmul_kernel,
            out_shape=jax.ShapeDtypeStruct((Mp, N), out_dtype),
            grid=(nm,),
            in_specs=in_specs,
            out_specs=pl.BlockSpec((TM, N), lambda i: (i, 0)),
            compiler_params=cparams,
        )(a, b, bias2)
        return out[:M] if Mp != M else out

    out, ssum, ssq = pl.pallas_call(
        _matmul_stats_kernel,
        out_shape=(jax.ShapeDtypeStruct((Mp, N), out_dtype),
                   jax.ShapeDtypeStruct((nm, 1, N), jnp.float32),
                   jax.ShapeDtypeStruct((nm, 1, N), jnp.float32)),
        grid=(nm,),
        in_specs=in_specs,
        out_specs=(pl.BlockSpec((TM, N), lambda i: (i, 0)),
                   pl.BlockSpec((1, 1, N), lambda i: (i, 0, 0)),
                   pl.BlockSpec((1, 1, N), lambda i: (i, 0, 0))),
        compiler_params=cparams,
    )(a, b, bias2)
    col_sum = jnp.sum(ssum[:, 0, :], axis=0)
    col_sq = jnp.sum(ssq[:, 0, :], axis=0)
    if Mp != M:
        # padded A rows are exactly zero, so they contribute bias / bias^2
        pad = float(Mp - M)
        bvec = bias2[0]
        col_sum = col_sum - pad * bvec
        col_sq = col_sq - pad * bvec * bvec
        out = out[:M]
    return out, col_sum, col_sq


# ---------------------------------------------------------------------------
# Pallas kernel 2: lane-dense fused
#   y = [relu]( x*scale + shift [+ residual(*rs + rb)] )
# [M,C] is viewed as [M/g, g*C] (g*C multiple of 128) -> full-vreg loads/stores.
# ---------------------------------------------------------------------------
@lru_cache(maxsize=None)
def _make_affine_kernel(has_res, has_res_affine, do_relu):
    if has_res_affine:
        def kern(x_ref, s_ref, b_ref, r_ref, rs_ref, rb_ref, o_ref):
            y = (x_ref[...].astype(jnp.float32) * s_ref[...] + b_ref[...]
                 + r_ref[...].astype(jnp.float32) * rs_ref[...] + rb_ref[...])
            if do_relu:
                y = jnp.maximum(y, 0.0)
            o_ref[...] = y.astype(o_ref.dtype)
    elif has_res:
        def kern(x_ref, s_ref, b_ref, r_ref, o_ref):
            y = (x_ref[...].astype(jnp.float32) * s_ref[...] + b_ref[...]
                 + r_ref[...].astype(jnp.float32))
            if do_relu:
                y = jnp.maximum(y, 0.0)
            o_ref[...] = y.astype(o_ref.dtype)
    else:
        def kern(x_ref, s_ref, b_ref, o_ref):
            y = x_ref[...].astype(jnp.float32) * s_ref[...] + b_ref[...]
            if do_relu:
                y = jnp.maximum(y, 0.0)
            o_ref[...] = y.astype(o_ref.dtype)
    return kern


def pallas_affine(x, scale, shift, residual=None, res_scale=None,
                  res_shift=None, relu=False, out_dtype=jnp.bfloat16):
    """x:[M,C]; scale/shift:[C]; optional residual [M,C] with its own affine."""
    M, C = x.shape
    g = 1
    if C < 128:
        g0 = 128 // math.gcd(C, 128)
        if M % g0 == 0:
            g = g0
    Mg, Cg = M // g, C * g

    xg = x.reshape(Mg, Cg)
    TM, Mp = _row_tile(Mg)
    if Mp != Mg:
        xg = jnp.zeros((Mp, Cg), xg.dtype).at[:Mg].set(xg)

    def tile_vec(v):
        return jnp.tile(v.astype(jnp.float32), g).reshape(1, Cg)

    ins = [xg, tile_vec(scale), tile_vec(shift)]
    in_specs = [pl.BlockSpec((TM, Cg), lambda i: (i, 0)),
                pl.BlockSpec((1, Cg), lambda i: (0, 0)),
                pl.BlockSpec((1, Cg), lambda i: (0, 0))]
    has_res = residual is not None
    has_res_affine = res_scale is not None
    if has_res:
        rg = residual.reshape(Mg, Cg)
        if Mp != Mg:
            rg = jnp.zeros((Mp, Cg), rg.dtype).at[:Mg].set(rg)
        ins.append(rg)
        in_specs.append(pl.BlockSpec((TM, Cg), lambda i: (i, 0)))
        if has_res_affine:
            ins.append(tile_vec(res_scale))
            ins.append(tile_vec(res_shift))
            in_specs.append(pl.BlockSpec((1, Cg), lambda i: (0, 0)))
            in_specs.append(pl.BlockSpec((1, Cg), lambda i: (0, 0)))

    out = pl.pallas_call(
        _make_affine_kernel(has_res, has_res_affine, relu),
        out_shape=jax.ShapeDtypeStruct((Mp, Cg), out_dtype),
        grid=(Mp // TM,),
        in_specs=in_specs,
        out_specs=pl.BlockSpec((TM, Cg), lambda i: (i, 0)),
        compiler_params=pltpu.CompilerParams(
            dimension_semantics=("parallel",), vmem_limit_bytes=VMEM_LIMIT),
    )(*ins)
    out = out[:Mg] if Mp != Mg else out
    return out.reshape(M, C)


# ---------------------------------------------------------------------------
# Pallas kernels 3/4: MXU attention cores, tiled over batch*heads.
#   * fused self-attention + memory (external) attention (shares q)
#   * cross-attention (two softmax orientations on one score matrix)
# ---------------------------------------------------------------------------
def _se_attn_kernel(q_ref, k_ref, v_ref, mkw_ref, mkb_ref, mvw_ref, mvb_ref,
                    self_ref, ext_ref, *, scale):
    q = q_ref[0].astype(jnp.bfloat16)                       # [S, dh]
    k = k_ref[0].astype(jnp.bfloat16)
    v = v_ref[0].astype(jnp.bfloat16)
    # self attention: softmax over keys
    s = lax.dot_general(q, k, (((1,), (1,)), ((), ())),
                        preferred_element_type=jnp.float32) * scale
    m = jnp.max(s, axis=-1, keepdims=True)
    e = jnp.exp(s - m)
    p = e / jnp.sum(e, axis=-1, keepdims=True)
    self_ref[0] = jnp.dot(p.astype(jnp.bfloat16), v,
                          preferred_element_type=jnp.float32
                          ).astype(self_ref.dtype)
    # memory / external attention (reuses the same q, no extra HBM pass)
    mkw = mkw_ref[...].astype(jnp.bfloat16)                 # [Mem, dh]
    attn = lax.dot_general(q, mkw, (((1,), (1,)), ((), ())),
                           preferred_element_type=jnp.float32) + mkb_ref[...]
    mm = jnp.max(attn, axis=0, keepdims=True)               # softmax over seq
    ee = jnp.exp(attn - mm)
    attn = ee / jnp.sum(ee, axis=0, keepdims=True)
    attn = attn / (1e-9 + jnp.sum(attn, axis=-1, keepdims=True))
    mvw = mvw_ref[...].astype(jnp.bfloat16)                 # [dh, Mem]
    out = lax.dot_general(attn.astype(jnp.bfloat16), mvw,
                          (((1,), (1,)), ((), ())),
                          preferred_element_type=jnp.float32)
    ext_ref[0] = (out + mvb_ref[...]).astype(ext_ref.dtype)


def _cross_attn_kernel(q_ref, k_ref, v1_ref, v2_ref, c1_ref, c2_ref, *, scale):
    q = q_ref[0].astype(jnp.bfloat16)
    k = k_ref[0].astype(jnp.bfloat16)
    s = lax.dot_general(q, k, (((1,), (1,)), ((), ())),
                        preferred_element_type=jnp.float32) * scale  # [i, j]
    # TODO(synk): at long sequence lengths reuse one exp and rescale for the
    # second softmax orientation (EUP relief); kept explicit for stability.
    # softmax over query dim (torch Softmax(dim=-2))
    m1 = jnp.max(s, axis=0, keepdims=True)
    e1 = jnp.exp(s - m1)
    p1 = e1 / jnp.sum(e1, axis=0, keepdims=True)
    # softmax over key dim (torch Softmax(dim=-1))
    m2 = jnp.max(s, axis=1, keepdims=True)
    e2 = jnp.exp(s - m2)
    p2 = e2 / jnp.sum(e2, axis=1, keepdims=True)
    v1 = v1_ref[0].astype(jnp.bfloat16)
    v2 = v2_ref[0].astype(jnp.bfloat16)
    # ctx1[i,d] = sum_j p1[i,j] v1[j,d]
    c1_ref[0] = jnp.dot(p1.astype(jnp.bfloat16), v1,
                        preferred_element_type=jnp.float32).astype(c1_ref.dtype)
    # ctx2[j,d] = sum_i p2[i,j] v2[i,d]   (probs_2 transposed in torch)
    c2_ref[0] = lax.dot_general(p2.astype(jnp.bfloat16), v2,
                                (((0,), (0,)), ((), ())),
                                preferred_element_type=jnp.float32
                                ).astype(c2_ref.dtype)


def _bh_spec(S, dh):
    return pl.BlockSpec((1, S, dh), lambda i: (i, 0, 0))


def se_attn_core(q, k, v, mk_w, mk_b, mv_w, mv_b, scale):
    BH, S, dh = q.shape
    mem = mk_w.shape[0]
    blk = _bh_spec(S, dh)
    return pl.pallas_call(
        partial(_se_attn_kernel, scale=scale),
        out_shape=(jax.ShapeDtypeStruct((BH, S, dh), jnp.bfloat16),
                   jax.ShapeDtypeStruct((BH, S, dh), jnp.bfloat16)),
        grid=(BH,),
        in_specs=[blk, blk, blk,
                  pl.BlockSpec((mem, dh), lambda i: (0, 0)),
                  pl.BlockSpec((1, mem), lambda i: (0, 0)),
                  pl.BlockSpec((dh, mem), lambda i: (0, 0)),
                  pl.BlockSpec((1, dh), lambda i: (0, 0))],
        out_specs=(blk, blk),
        compiler_params=pltpu.CompilerParams(
            dimension_semantics=("parallel",), vmem_limit_bytes=VMEM_LIMIT),
    )(q, k, v,
      mk_w.astype(jnp.float32), mk_b.reshape(1, mem).astype(jnp.float32),
      mv_w.astype(jnp.float32), mv_b.reshape(1, dh).astype(jnp.float32))


def cross_attn_core(q, k, v1, v2, scale):
    BH, S, dh = q.shape
    blk = _bh_spec(S, dh)
    return pl.pallas_call(
        partial(_cross_attn_kernel, scale=scale),
        out_shape=(jax.ShapeDtypeStruct((BH, S, dh), jnp.bfloat16),
                   jax.ShapeDtypeStruct((BH, S, dh), jnp.bfloat16)),
        grid=(BH,),
        in_specs=[blk, blk, blk, blk],
        out_specs=(blk, blk),
        compiler_params=pltpu.CompilerParams(
            dimension_semantics=("parallel",), vmem_limit_bytes=VMEM_LIMIT),
    )(q, k, v1, v2)


# ---------------------------------------------------------------------------
# Conv / pooling / norm building blocks (glue + Pallas matmul/affine)
# ---------------------------------------------------------------------------
def conv3x3x3_apply(x, w, bias=None, with_stats=False, out_dtype=jnp.bfloat16):
    """x:[N,D,H,W,C] bf16; w torch layout [Cout,Cin,3,3,3]; pad=1, stride=1."""
    N, D, H, W, C = x.shape
    Cout = w.shape[0]
    xp = jnp.pad(x, ((0, 0), (1, 1), (1, 1), (1, 1), (0, 0)))
    # TODO(synk): fuse this 27-tap gather into the matmul kernel (shifted
    # index maps / in-kernel tap loop) to avoid materializing the patches.
    cols = [xp[:, kd:kd + D, kh:kh + H, kw:kw + W, :]
            for kd in range(3) for kh in range(3) for kw in range(3)]
    patches = jnp.stack(cols, axis=-1).reshape(N * D * H * W, C * 27)
    wmat = w.reshape(Cout, C * 27).T          # rows = (cin, kd, kh, kw)
    res = pallas_matmul(patches, wmat, bias, with_stats=with_stats,
                        out_dtype=out_dtype)
    if with_stats:
        y, s, q = res
        return y.reshape(N, D, H, W, Cout), s, q
    return res.reshape(N, D, H, W, Cout)


def conv1x1x1_apply(x, w, bias=None, with_stats=False, out_dtype=jnp.bfloat16):
    N, D, H, W, C = x.shape
    Cout = w.shape[0]
    res = pallas_matmul(x.reshape(-1, C), w.reshape(Cout, -1).T, bias,
                        with_stats=with_stats, out_dtype=out_dtype)
    if with_stats:
        y, s, q = res
        return y.reshape(N, D, H, W, Cout), s, q
    return res.reshape(N, D, H, W, Cout)


def maxpool2(x):
    N, D, H, W, C = x.shape
    x = x.reshape(N, D // 2, 2, H // 2, 2, W // 2, 2, C)
    return x.max(axis=(2, 4, 6))


def upsample2(x):  # nn.Upsample(scale_factor=2, mode='nearest'), single pass
    N, D, H, W, C = x.shape
    x = jnp.broadcast_to(x[:, :, None, :, None, :, None, :],
                         (N, D, 2, H, 2, W, 2, C))
    return x.reshape(N, 2 * D, 2 * H, 2 * W, C)


def bn_from_stats(ssum, ssq, count, gamma, beta, eps=1e-5):
    mean = ssum / count
    var = jnp.maximum(ssq / count - mean * mean, 0.0)   # biased var (train BN)
    scale = gamma / jnp.sqrt(var + eps)
    shift = beta - mean * scale
    return scale, shift


def linear_apply(x2d, w, b):
    return pallas_matmul(x2d, w.T, b)


def basic_block(x, p):
    N, D, H, W, _ = x.shape
    M = N * D * H * W
    out, s1, q1 = conv3x3x3_apply(x, p['conv1_w'], with_stats=True)
    Cm = out.shape[-1]
    sc, sh = bn_from_stats(s1, q1, M, p['bn1_g'], p['bn1_b'])
    out = pallas_affine(out.reshape(M, Cm), sc, sh, relu=True)
    out = out.reshape(N, D, H, W, Cm)
    out, s2, q2 = conv3x3x3_apply(out, p['conv2_w'], with_stats=True)
    sc2, sh2 = bn_from_stats(s2, q2, M, p['bn2_g'], p['bn2_b'])
    if 'ds_w' in p:
        res, rs, rq = conv1x1x1_apply(x, p['ds_w'], with_stats=True)
        rsc, rsh = bn_from_stats(rs, rq, M, p['ds_bn_g'], p['ds_bn_b'])
        out = pallas_affine(out.reshape(M, Cm), sc2, sh2,
                            residual=res.reshape(M, Cm),
                            res_scale=rsc, res_shift=rsh, relu=True)
    else:
        out = pallas_affine(out.reshape(M, Cm), sc2, sh2,
                            residual=x.reshape(M, Cm), relu=True)
    return out.reshape(N, D, H, W, Cm)


def up_conv_apply(x, p):
    # TODO(synk): index the coarse tensor at (d//2,h//2,w//2) inside the conv
    # gather instead of materializing the 8x tensor (pure bandwidth saving).
    x = upsample2(x)
    y, s, q = conv3x3x3_apply(x, p['conv_w'], p['conv_b'], with_stats=True)
    N, D, H, W, C = y.shape
    M = N * D * H * W
    sc, sh = bn_from_stats(s, q, M, p['bn_g'], p['bn_b'])
    return pallas_affine(y.reshape(M, C), sc, sh, relu=True).reshape(N, D, H, W, C)


def encoder_apply(x, stages):
    outs = []
    h = x
    for i, st in enumerate(stages):
        if i > 0:
            h = maxpool2(h)
        h = basic_block(h, st[0])
        h = basic_block(h, st[1])
        outs.append(h)
    return outs


# ---------------------------------------------------------------------------
# Attention modules
# ---------------------------------------------------------------------------
def _split_heads(x2d, N, S, heads, dh):
    return jnp.transpose(x2d.reshape(N, S, heads, dh), (0, 2, 1, 3)).reshape(
        N * heads, S, dh)


def _merge_heads(x, N, S, heads, dh):
    return jnp.transpose(x.reshape(N, heads, S, dh), (0, 2, 1, 3)).reshape(
        N * S, heads * dh)


def se_attention(x, p):
    N, D, H, W, C = x.shape
    S = D * H * W
    heads = 8
    dh = C // heads
    hs = x.reshape(N * S, C)
    q = _split_heads(linear_apply(hs, p['q_w'], p['q_b']), N, S, heads, dh)
    k = _split_heads(linear_apply(hs, p['k_w'], p['k_b']), N, S, heads, dh)
    v = _split_heads(linear_apply(hs, p['v_w'], p['v_b']), N, S, heads, dh)
    ctx, ext = se_attn_core(q, k, v, p['mk_w'], p['mk_b'], p['mv_w'], p['mv_b'],
                            scale=1.0 / math.sqrt(dh))
    self_out = linear_apply(_merge_heads(ctx, N, S, heads, dh),
                            p['out_w'], p['out_b']).reshape(N, D, H, W, C)
    ext_out = linear_apply(_merge_heads(ext, N, S, heads, dh),
                           p['proj_w'], p['proj_b']).reshape(N, D, H, W, C)
    cat = jnp.concatenate([self_out, ext_out], axis=-1)
    return conv1x1x1_apply(cat, p['conv_w'], p['conv_b'])


def cross_attention(x1, x2, p):
    N, D, H, W, C = x1.shape
    S = D * H * W
    heads = 8
    dh = C // heads
    hs1 = x1.reshape(N * S, C)
    hs2 = x2.reshape(N * S, C)
    q = _split_heads(linear_apply(hs1, p['q_w'], p['q_b']), N, S, heads, dh)
    k = _split_heads(linear_apply(hs2, p['k_w'], p['k_b']), N, S, heads, dh)
    v1 = _split_heads(linear_apply(hs1, p['v1_w'], p['v1_b']), N, S, heads, dh)
    v2 = _split_heads(linear_apply(hs2, p['v2_w'], p['v2_b']), N, S, heads, dh)
    c1, c2 = cross_attn_core(q, k, v1, v2, scale=1.0 / math.sqrt(dh))
    a1 = linear_apply(_merge_heads(c1, N, S, heads, dh),
                      p['out1_w'], p['out1_b']).reshape(N, D, H, W, C) + x1
    a2 = linear_apply(_merge_heads(c2, N, S, heads, dh),
                      p['out2_w'], p['out2_b']).reshape(N, D, H, W, C) + x2
    return a1, a2


# ---------------------------------------------------------------------------
# Parameter initialization (deterministic, synthetic)
# ---------------------------------------------------------------------------
class PInit:
    def __init__(self, key):
        self.key = key

    def _next(self):
        self.key, sub = jax.random.split(self.key)
        return sub

    def conv(self, cout, cin, k):
        std = math.sqrt(2.0 / (cout * k ** 3))           # kaiming fan_out / relu
        return jax.random.normal(self._next(), (cout, cin, k, k, k),
                                 jnp.float32) * std

    def linear(self, cout, cin):
        std = 1.0 / math.sqrt(cin)
        w = jax.random.normal(self._next(), (cout, cin), jnp.float32) * std
        b = jnp.zeros((cout,), jnp.float32)
        return w, b


def init_basic_block(pi, cin, cout, downsample):
    p = {'conv1_w': pi.conv(cout, cin, 3),
         'bn1_g': jnp.ones((cout,), jnp.float32),
         'bn1_b': jnp.zeros((cout,), jnp.float32),
         'conv2_w': pi.conv(cout, cout, 3),
         'bn2_g': jnp.ones((cout,), jnp.float32),
         'bn2_b': jnp.zeros((cout,), jnp.float32)}
    if downsample:
        p['ds_w'] = pi.conv(cout, cin, 1)
        p['ds_bn_g'] = jnp.ones((cout,), jnp.float32)
        p['ds_bn_b'] = jnp.zeros((cout,), jnp.float32)
    return p


def init_encoder(pi, in_ch, bc):
    chans = [(in_ch, bc), (bc, 2 * bc), (2 * bc, 4 * bc),
             (4 * bc, 8 * bc), (8 * bc, 16 * bc)]
    return [[init_basic_block(pi, ci, co, True),
             init_basic_block(pi, co, co, False)] for ci, co in chans]


def init_se(pi, C, mem=64):
    dh = C // 8
    p = {}
    for name in ['q', 'k', 'v', 'out', 'proj']:
        p[name + '_w'], p[name + '_b'] = pi.linear(C, C)
    p['mk_w'], p['mk_b'] = pi.linear(mem, dh)            # Linear(dh -> mem)
    p['mv_w'], p['mv_b'] = pi.linear(dh, mem)            # Linear(mem -> dh)
    p['conv_w'] = pi.conv(C, 2 * C, 1)
    p['conv_b'] = jnp.zeros((C,), jnp.float32)
    return p


def init_cross(pi, C):
    p = {}
    for name in ['q', 'k', 'v1', 'v2', 'out1', 'out2']:
        p[name + '_w'], p[name + '_b'] = pi.linear(C, C)
    return p


def init_upconv(pi, cin, cout):
    return {'conv_w': pi.conv(cout, cin, 3),
            'conv_b': jnp.zeros((cout,), jnp.float32),
            'bn_g': jnp.ones((cout,), jnp.float32),
            'bn_b': jnp.zeros((cout,), jnp.float32)}


def init_params(key, out_channel=4, base_channel=4):
    pi = PInit(key)
    bc = base_channel
    hid = 16 * bc
    return {
        'enc1': init_encoder(pi, 1, bc),
        'enc2': init_encoder(pi, 1, bc),
        'se1': init_se(pi, hid),
        'se2': init_se(pi, hid),
        'cross': init_cross(pi, hid),
        'up5': init_upconv(pi, hid * 4, 8 * bc),
        'upc5': init_basic_block(pi, 24 * bc, 8 * bc, True),
        'up4': init_upconv(pi, 8 * bc, 4 * bc),
        'upc4': init_basic_block(pi, 12 * bc, 4 * bc, True),
        'up3': init_upconv(pi, 4 * bc, 2 * bc),
        'upc3': init_basic_block(pi, 6 * bc, 2 * bc, True),
        'up2': init_upconv(pi, 2 * bc, bc),
        'upc2': init_basic_block(pi, 3 * bc, bc, True),
        'final_w': pi.conv(out_channel, bc, 1),
        'final_b': jnp.zeros((out_channel,), jnp.float32),
    }


# ---------------------------------------------------------------------------
# Full forward (JointFusionNet3D_v11)
# ---------------------------------------------------------------------------
def joint_fusion_forward(x, params):
    # x: [N, 2, D, H, W]  (PyTorch NCDHW)
    x = jnp.transpose(x, (0, 2, 3, 4, 1)).astype(jnp.bfloat16)  # -> NDHWC bf16
    x_in1 = x[..., 0:1]
    x_in2 = x[..., 1:2]

    h1 = encoder_apply(x_in1, params['enc1'])
    h2 = encoder_apply(x_in2, params['enc2'])

    x1 = jnp.concatenate([h1[0], h2[0]], axis=-1)
    x2 = jnp.concatenate([h1[1], h2[1]], axis=-1)
    x3 = jnp.concatenate([h1[2], h2[2]], axis=-1)
    x4 = jnp.concatenate([h1[3], h2[3]], axis=-1)

    h11 = se_attention(h1[4], params['se1'])
    h22 = se_attention(h2[4], params['se2'])
    h12, h21 = cross_attention(h1[4], h2[4], params['cross'])
    x5 = jnp.concatenate([h11, h12, h21, h22], axis=-1)

    d5 = up_conv_apply(x5, params['up5'])
    d5 = basic_block(jnp.concatenate([x4, d5], axis=-1), params['upc5'])
    d4 = up_conv_apply(d5, params['up4'])
    d4 = basic_block(jnp.concatenate([x3, d4], axis=-1), params['upc4'])
    d3 = up_conv_apply(d4, params['up3'])
    d3 = basic_block(jnp.concatenate([x2, d3], axis=-1), params['upc3'])
    d2 = up_conv_apply(d3, params['up2'])
    d2 = basic_block(jnp.concatenate([x1, d2], axis=-1), params['upc2'])

    out = conv1x1x1_apply(d2, params['final_w'], params['final_b'],
                          out_dtype=jnp.float32)
    return jnp.transpose(out, (0, 4, 1, 2, 3))                  # back to NCDHW


if __name__ == "__main__":
    key = jax.random.PRNGKey(0)
    pkey, xkey = jax.random.split(key)

    base_channel = 4
    out_channel = 4
    N, D, H, W = 1, 32, 16, 16        # level-5 spatial = (2,1,1) -> attention seq = 2

    params = init_params(pkey, out_channel=out_channel, base_channel=base_channel)
    x = jax.random.normal(xkey, (N, 2, D, H, W), jnp.float32)

    fwd = jax.jit(joint_fusion_forward)
    out = fwd(x, params)
    out = jax.block_until_ready(out)

    assert out.shape == (N, out_channel, D, H, W), out.shape
    assert bool(jnp.all(jnp.isfinite(out)))
    print("KERNEL_OK")
</pallas_src>

<mosaic_0001>
module attributes {stable_mosaic.version = 11 : i64} {
  func.func @_matmul_stats_kernel(%arg0: i32, %arg1: memref<1024x27xbf16, #tpu.memory_space<vmem>>, %arg2: memref<27x4xbf16, #tpu.memory_space<vmem>>, %arg3: memref<1x4xf32, #tpu.memory_space<vmem>>, %arg4: memref<1024x4xbf16, #tpu.memory_space<vmem>>, %arg5: memref<1x1x4xf32, #tpu.memory_space<vmem>>, %arg6: memref<1x1x4xf32, #tpu.memory_space<vmem>>) attributes {dimension_semantics = [#tpu.dimension_semantics<parallel>], iteration_bounds = array<i64: 8>, scalar_prefetch = 0 : i64, scratch_operands = 0 : i64, tpu.core_type = #tpu.core_type<tc>, window_params = [{transform_indices = @transform_0, window_bounds = array<i64: 1024, 27>}, {pipeline_mode = #tpu.pipeline_mode<synchronous>, transform_indices = @transform_1, window_bounds = array<i64: 27, 4>}, {pipeline_mode = #tpu.pipeline_mode<synchronous>, transform_indices = @transform_2, window_bounds = array<i64: 1, 4>}, {transform_indices = @transform_3, window_bounds = array<i64: 1024, 4>}, {transform_indices = @transform_4, window_bounds = array<i64: 1, 1, 4>}, {transform_indices = @transform_5, window_bounds = array<i64: 1, 1, 4>}]} {
    %c0 = arith.constant 0 : index
    %c0_0 = arith.constant 0 : index
    %0 = vector.load %arg1[%c0, %c0_0] : memref<1024x27xbf16, #tpu.memory_space<vmem>>, vector<1024x27xbf16>
    %c0_1 = arith.constant 0 : index
    %c0_2 = arith.constant 0 : index
    %1 = vector.load %arg2[%c0_1, %c0_2] : memref<27x4xbf16, #tpu.memory_space<vmem>>, vector<27x4xbf16>
    %cst = arith.constant dense<0.000000e+00> : vector<1024x4xf32>
    %2 = tpu.matmul %0, %1, %cst {dimension_numbers = #tpu.dot_dimension_numbers<[1], [0], [0], [1], [0, 0, 1, 1], [], []>} : vector<1024x27xbf16>, vector<27x4xbf16>, vector<1024x4xf32> -> vector<1024x4xf32>
    %c0_3 = arith.constant 0 : index
    %c0_4 = arith.constant 0 : index
    %3 = vector.load %arg3[%c0_3, %c0_4] : memref<1x4xf32, #tpu.memory_space<vmem>>, vector<1x4xf32>
    %4 = vector.broadcast %3 : vector<1x4xf32> to vector<1024x4xf32>
    %5 = arith.addf %2, %4 : vector<1024x4xf32>
    %6 = arith.truncf %5 : vector<1024x4xf32> to vector<1024x4xbf16>
    %c0_5 = arith.constant 0 : index
    %c0_6 = arith.constant 0 : index
    %7 = vector.load %arg4[%c0_5, %c0_6] : memref<1024x4xbf16, #tpu.memory_space<vmem>>, vector<1024x4xbf16>
    tpu.vector_store %arg4[%c0_5, %c0_6], %6 {strides = array<i32>} : memref<1024x4xbf16, #tpu.memory_space<vmem>>, vector<1024x4xbf16>,
    %cst_7 = arith.constant dense<0.000000e+00> : vector<4xf32>
    %8 = vector.multi_reduction <add>, %5, %cst_7 [0] : vector<1024x4xf32> to vector<4xf32>
    %9 = vector.shape_cast %8 : vector<4xf32> to vector<1x4xf32>
    %10 = vector.shape_cast %9 : vector<1x4xf32> to vector<1x1x4xf32>
    %c0_8 = arith.constant 0 : index
    %c0_9 = arith.constant 0 : index
    %c0_10 = arith.constant 0 : index
    %11 = vector.load %arg5[%c0_8, %c0_9, %c0_10] : memref<1x1x4xf32, #tpu.memory_space<vmem>>, vector<1x1x4xf32>
    tpu.vector_store %arg5[%c0_8, %c0_9, %c0_10], %10 {strides = array<i32>} : memref<1x1x4xf32, #tpu.memory_space<vmem>>, vector<1x1x4xf32>,
    %12 = arith.mulf %5, %5 : vector<1024x4xf32>
    %cst_11 = arith.constant dense<0.000000e+00> : vector<4xf32>
    %13 = vector.multi_reduction <add>, %12, %cst_11 [0] : vector<1024x4xf32> to vector<4xf32>
    %14 = vector.shape_cast %13 : vector<4xf32> to vector<1x4xf32>
    %15 = vector.shape_cast %14 : vector<1x4xf32> to vector<1x1x4xf32>
    %c0_12 = arith.constant 0 : index
    %c0_13 = arith.constant 0 : index
    %c0_14 = arith.constant 0 : index
    %16 = vector.load %arg6[%c0_12, %c0_13, %c0_14] : memref<1x1x4xf32, #tpu.memory_space<vmem>>, vector<1x1x4xf32>
    tpu.vector_store %arg6[%c0_12, %c0_13, %c0_14], %15 {strides = array<i32>} : memref<1x1x4xf32, #tpu.memory_space<vmem>>, vector<1x1x4xf32>,
    return
  }
  func.func @transform_0(%arg0: i32) -> (i32, i32) {
    %c0_i32 = arith.constant 0 : i32
    %c0_i32_0 = arith.constant 0 : i32
    return %arg0, %c0_i32 : i32, i32
  }
  func.func @transform_1(%arg0: i32) -> (i32, i32) {
    %c0_i32 = arith.constant 0 : i32
    %c0_i32_0 = arith.constant 0 : i32
    %c0_i32_1 = arith.constant 0 : i32
    return %c0_i32, %c0_i32_0 : i32, i32
  }
  func.func @transform_2(%arg0: i32) -> (i32, i32) {
    %c0_i32 = arith.constant 0 : i32
    %c0_i32_0 = arith.constant 0 : i32
    %c0_i32_1 = arith.constant 0 : i32
    return %c0_i32, %c0_i32_0 : i32, i32
  }
  func.func @transform_3(%arg0: i32) -> (i32, i32) {
    %c0_i32 = arith.constant 0 : i32
    %c0_i32_0 = arith.constant 0 : i32
    return %arg0, %c0_i32 : i32, i32
  }
  func.func @transform_4(%arg0: i32) -> (i32, i32, i32) {
    %c0_i32 = arith.constant 0 : i32
    %c0_i32_0 = arith.constant 0 : i32
    %c0_i32_1 = arith.constant 0 : i32
    return %arg0, %c0_i32, %c0_i32_0 : i32, i32, i32
  }
  func.func @transform_5(%arg0: i32) -> (i32, i32, i32) {
    %c0_i32 = arith.constant 0 : i32
    %c0_i32_0 = arith.constant 0 : i32
    %c0_i32_1 = arith.constant 0 : i32
    return %arg0, %c0_i32, %c0_i32_0 : i32, i32, i32
  }
}

module attributes {stable_mosaic.version = 11 : i64} {
  func.func @kern(%arg0: i32, %arg1: memref<128x128xbf16, #tpu.memory_space<vmem>>, %arg2: memref<1x128xf32, #tpu.memory_space<vmem>>, %arg3: memref<1x128xf32, #tpu.memory_space<vmem>>, %arg4: memref<128x128xbf16, #tpu.memory_space<vmem>>) attributes {dimension_semantics = [#tpu.dimension_semantics<parallel>], iteration_bounds = array<i64: 2>, scalar_prefetch = 0 : i64, scratch_operands = 0 : i64, tpu.core_type = #tpu.core_type<tc>, window_params = [{transform_indices = @transform_0, window_bounds = array<i64: 128, 128>}, {pipeline_mode = #tpu.pipeline_mode<synchronous>, transform_indices = @transform_1, window_bounds = array<i64: 1, 128>}, {pipeline_mode = #tpu.pipeline_mode<synchronous>, transform_indices = @transform_2, window_bounds = array<i64: 1, 128>}, {transform_indices = @transform_3, window_bounds = array<i64: 128, 128>}]} {
    %c0 = arith.constant 0 : index
    %c0_0 = arith.constant 0 : index
    %0 = vector.load %arg1[%c0, %c0_0] : memref<128x128xbf16, #tpu.memory_space<vmem>>, vector<128x128xbf16>
    %1 = arith.extf %0 : vector<128x128xbf16> to vector<128x128xf32>
    %c0_1 = arith.constant 0 : index
    %c0_2 = arith.constant 0 : index
    %2 = vector.load %arg2[%c0_1, %c0_2] : memref<1x128xf32, #tpu.memory_space<vmem>>, vector<1x128xf32>
    %3 = vector.broadcast %2 : vector<1x128xf32> to vector<128x128xf32>
    %4 = arith.mulf %1, %3 : vector<128x128xf32>
    %c0_3 = arith.constant 0 : index
    %c0_4 = arith.constant 0 : index
    %5 = vector.load %arg3[%c0_3, %c0_4] : memref<1x128xf32, #tpu.memory_space<vmem>>, vector<1x128xf32>
    %6 = vector.broadcast %5 : vector<1x128xf32> to vector<128x128xf32>
    %7 = arith.addf %4, %6 : vector<128x128xf32>
    %cst = arith.constant 0.000000e+00 : f32
    %8 = vector.broadcast %cst : f32 to vector<128x128xf32>
    %9 = arith.maximumf %7, %8 : vector<128x128xf32>
    %10 = arith.truncf %9 : vector<128x128xf32> to vector<128x128xbf16>
    %c0_5 = arith.constant 0 : index
    %c0_6 = arith.constant 0 : index
    %11 = vector.load %arg4[%c0_5, %c0_6] : memref<128x128xbf16, #tpu.memory_space<vmem>>, vector<128x128xbf16>
    tpu.vector_store %arg4[%c0_5, %c0_6], %10 {strides = array<i32>} : memref<128x128xbf16, #tpu.memory_space<vmem>>, vector<128x128xbf16>,
    return
  }
  func.func @transform_0(%arg0: i32) -> (i32, i32) {
    %c0_i32 = arith.constant 0 : i32
    %c0_i32_0 = arith.constant 0 : i32
    return %arg0, %c0_i32 : i32, i32
  }
  func.func @transform_1(%arg0: i32) -> (i32, i32) {
    %c0_i32 = arith.constant 0 : i32
    %c0_i32_0 = arith.constant 0 : i32
    %c0_i32_1 = arith.constant 0 : i32
    return %c0_i32, %c0_i32_0 : i32, i32
  }
  func.func @transform_2(%arg0: i32) -> (i32, i32) {
    %c0_i32 = arith.constant 0 : i32
    %c0_i32_0 = arith.constant 0 : i32
    %c0_i32_1 = arith.constant 0 : i32
    return %c0_i32, %c0_i32_0 : i32, i32
  }
  func.func @transform_3(%arg0: i32) -> (i32, i32) {
    %c0_i32 = arith.constant 0 : i32
    %c0_i32_0 = arith.constant 0 : i32
    return %arg0, %c0_i32 : i32, i32
  }
}

module attributes {stable_mosaic.version = 11 : i64} {
  func.func @_matmul_stats_kernel(%arg0: i32, %arg1: memref<1024x108xbf16, #tpu.memory_space<vmem>>, %arg2: memref<108x4xbf16, #tpu.memory_space<vmem>>, %arg3: memref<1x4xf32, #tpu.memory_space<vmem>>, %arg4: memref<1024x4xbf16, #tpu.memory_space<vmem>>, %arg5: memref<1x1x4xf32, #tpu.memory_space<vmem>>, %arg6: memref<1x1x4xf32, #tpu.memory_space<vmem>>) attributes {dimension_semantics = [#tpu.dimension_semantics<parallel>], iteration_bounds = array<i64: 8>, scalar_prefetch = 0 : i64, scratch_operands = 0 : i64, tpu.core_type = #tpu.core_type<tc>, window_params = [{transform_indices = @transform_0, window_bounds = array<i64: 1024, 108>}, {pipeline_mode = #tpu.pipeline_mode<synchronous>, transform_indices = @transform_1, window_bounds = array<i64: 108, 4>}, {pipeline_mode = #tpu.pipeline_mode<synchronous>, transform_indices = @transform_2, window_bounds = array<i64: 1, 4>}, {transform_indices = @transform_3, window_bounds = array<i64: 1024, 4>}, {transform_indices = @transform_4, window_bounds = array<i64: 1, 1, 4>}, {transform_indices = @transform_5, window_bounds = array<i64: 1, 1, 4>}]} {
    %c0 = arith.constant 0 : index
    %c0_0 = arith.constant 0 : index
    %0 = vector.load %arg1[%c0, %c0_0] : memref<1024x108xbf16, #tpu.memory_space<vmem>>, vector<1024x108xbf16>
    %c0_1 = arith.constant 0 : index
    %c0_2 = arith.constant 0 : index
    %1 = vector.load %arg2[%c0_1, %c0_2] : memref<108x4xbf16, #tpu.memory_space<vmem>>, vector<108x4xbf16>
    %cst = arith.constant dense<0.000000e+00> : vector<1024x4xf32>
    %2 = tpu.matmul %0, %1, %cst {dimension_numbers = #tpu.dot_dimension_numbers<[1], [0], [0], [1], [0, 0, 1, 1], [], []>} : vector<1024x108xbf16>, vector<108x4xbf16>, vector<1024x4xf32> -> vector<1024x4xf32>
    %c0_3 = arith.constant 0 : index
    %c0_4 = arith.constant 0 : index
    %3 = vector.load %arg3[%c0_3, %c0_4] : memref<1x4xf32, #tpu.memory_space<vmem>>, vector<1x4xf32>
    %4 = vector.broadcast %3 : vector<1x4xf32> to vector<1024x4xf32>
    %5 = arith.addf %2, %4 : vector<1024x4xf32>
    %6 = arith.truncf %5 : vector<1024x4xf32> to vector<1024x4xbf16>
    %c0_5 = arith.constant 0 : index
    %c0_6 = arith.constant 0 : index
    %7 = vector.load %arg4[%c0_5, %c0_6] : memref<1024x4xbf16, #tpu.memory_space<vmem>>, vector<1024x4xbf16>
    tpu.vector_store %arg4[%c0_5, %c0_6], %6 {strides = array<i32>} : memref<1024x4xbf16, #tpu.memory_space<vmem>>, vector<1024x4xbf16>,
    %cst_7 = arith.constant dense<0.000000e+00> : vector<4xf32>
    %8 = vector.multi_reduction <add>, %5, %cst_7 [0] : vector<1024x4xf32> to vector<4xf32>
    %9 = vector.shape_cast %8 : vector<4xf32> to vector<1x4xf32>
    %10 = vector.shape_cast %9 : vector<1x4xf32> to vector<1x1x4xf32>
    %c0_8 = arith.constant 0 : index
    %c0_9 = arith.constant 0 : index
    %c0_10 = arith.constant 0 : index
    %11 = vector.load %arg5[%c0_8, %c0_9, %c0_10] : memref<1x1x4xf32, #tpu.memory_space<vmem>>, vector<1x1x4xf32>
    tpu.vector_store %arg5[%c0_8, %c0_9, %c0_10], %10 {strides = array<i32>} : memref<1x1x4xf32, #tpu.memory_space<vmem>>, vector<1x1x4xf32>,
    %12 = arith.mulf %5, %5 : vector<1024x4xf32>
    %cst_11 = arith.constant dense<0.000000e+00> : vector<4xf32>
    %13 = vector.multi_reduction <add>, %12, %cst_11 [0] : vector<1024x4xf32> to vector<4xf32>
    %14 = vector.shape_cast %13 : vector<4xf32> to vector<1x4xf32>
    %15 = vector.shape_cast %14 : vector<1x4xf32> to vector<1x1x4xf32>
    %c0_12 = arith.constant 0 : index
    %c0_13 = arith.constant 0 : index
    %c0_14 = arith.constant 0 : index
    %16 = vector.load %arg6[%c0_12, %c0_13, %c0_14] : memref<1x1x4xf32, #tpu.memory_space<vmem>>, vector<1x1x4xf32>
    tpu.vector_store %arg6[%c0_12, %c0_13, %c0_14], %15 {strides = array<i32>} : memref<1x1x4xf32, #tpu.memory_space<vmem>>, vector<1x1x4xf32>,
    return
  }
  func.func @transform_0(%arg0: i32) -> (i32, i32) {
    %c0_i32 = arith.constant 0 : i32
    %c0_i32_0 = arith.constant 0 : i32
    return %arg0, %c0_i32 : i32, i32
  }
  func.func @transform_1(%arg0: i32) -> (i32, i32) {
    %c0_i32 = arith.constant 0 : i32
    %c0_i32_0 = arith.constant 0 : i32
    %c0_i32_1 = arith.constant 0 : i32
    return %c0_i32, %c0_i32_0 : i32, i32
  }
  func.func @transform_2(%arg0: i32) -> (i32, i32) {
    %c0_i32 = arith.constant 0 : i32
    %c0_i32_0 = arith.constant 0 : i32
    %c0_i32_1 = arith.constant 0 : i32
    return %c0_i32, %c0_i32_0 : i32, i32
  }
  func.func @transform_3(%arg0: i32) -> (i32, i32) {
    %c0_i32 = arith.constant 0 : i32
    %c0_i32_0 = arith.constant 0 : i32
    return %arg0, %c0_i32 : i32, i32
  }
  func.func @transform_4(%arg0: i32) -> (i32, i32, i32) {
    %c0_i32 = arith.constant 0 : i32
    %c0_i32_0 = arith.constant 0 : i32
    %c0_i32_1 = arith.constant 0 : i32
    return %arg0, %c0_i32, %c0_i32_0 : i32, i32, i32
  }
  func.func @transform_5(%arg0: i32) -> (i32, i32, i32) {
    %c0_i32 = arith.constant 0 : i32
    %c0_i32_0 = arith.constant 0 : i32
    %c0_i32_1 = arith.constant 0 : i32
    return %arg0, %c0_i32, %c0_i32_0 : i32, i32, i32
  }
}

module attributes {stable_mosaic.version = 11 : i64} {
  func.func @_matmul_stats_kernel(%arg0: i32, %arg1: memref<1024x8xbf16, #tpu.memory_space<vmem>>, %arg2: memref<8x4xbf16, #tpu.memory_space<vmem>>, %arg3: memref<1x4xf32, #tpu.memory_space<vmem>>, %arg4: memref<1024x4xbf16, #tpu.memory_space<vmem>>, %arg5: memref<1x1x4xf32, #tpu.memory_space<vmem>>, %arg6: memref<1x1x4xf32, #tpu.memory_space<vmem>>) attributes {dimension_semantics = [#tpu.dimension_semantics<parallel>], iteration_bounds = array<i64: 8>, scalar_prefetch = 0 : i64, scratch_operands = 0 : i64, tpu.core_type = #tpu.core_type<tc>, window_params = [{transform_indices = @transform_0, window_bounds = array<i64: 1024, 8>}, {pipeline_mode = #tpu.pipeline_mode<synchronous>, transform_indices = @transform_1, window_bounds = array<i64: 8, 4>}, {pipeline_mode = #tpu.pipeline_mode<synchronous>, transform_indices = @transform_2, window_bounds = array<i64: 1, 4>}, {transform_indices = @transform_3, window_bounds = array<i64: 1024, 4>}, {transform_indices = @transform_4, window_bounds = array<i64: 1, 1, 4>}, {transform_indices = @transform_5, window_bounds = array<i64: 1, 1, 4>}]} {
    %c0 = arith.constant 0 : index
    %c0_0 = arith.constant 0 : index
    %0 = vector.load %arg1[%c0, %c0_0] : memref<1024x8xbf16, #tpu.memory_space<vmem>>, vector<1024x8xbf16>
    %c0_1 = arith.constant 0 : index
    %c0_2 = arith.constant 0 : index
    %1 = vector.load %arg2[%c0_1, %c0_2] : memref<8x4xbf16, #tpu.memory_space<vmem>>, vector<8x4xbf16>
    %cst = arith.constant dense<0.000000e+00> : vector<1024x4xf32>
    %2 = tpu.matmul %0, %1, %cst {dimension_numbers = #tpu.dot_dimension_numbers<[1], [0], [0], [1], [0, 0, 1, 1], [], []>} : vector<1024x8xbf16>, vector<8x4xbf16>, vector<1024x4xf32> -> vector<1024x4xf32>
    %c0_3 = arith.constant 0 : index
    %c0_4 = arith.constant 0 : index
    %3 = vector.load %arg3[%c0_3, %c0_4] : memref<1x4xf32, #tpu.memory_space<vmem>>, vector<1x4xf32>
    %4 = vector.broadcast %3 : vector<1x4xf32> to vector<1024x4xf32>
    %5 = arith.addf %2, %4 : vector<1024x4xf32>
    %6 = arith.truncf %5 : vector<1024x4xf32> to vector<1024x4xbf16>
    %c0_5 = arith.constant 0 : index
    %c0_6 = arith.constant 0 : index
    %7 = vector.load %arg4[%c0_5, %c0_6] : memref<1024x4xbf16, #tpu.memory_space<vmem>>, vector<1024x4xbf16>
    tpu.vector_store %arg4[%c0_5, %c0_6], %6 {strides = array<i32>} : memref<1024x4xbf16, #tpu.memory_space<vmem>>, vector<1024x4xbf16>,
    %cst_7 = arith.constant dense<0.000000e+00> : vector<4xf32>
    %8 = vector.multi_reduction <add>, %5, %cst_7 [0] : vector<1024x4xf32> to vector<4xf32>
    %9 = vector.shape_cast %8 : vector<4xf32> to vector<1x4xf32>
    %10 = vector.shape_cast %9 : vector<1x4xf32> to vector<1x1x4xf32>
    %c0_8 = arith.constant 0 : index
    %c0_9 = arith.constant 0 : index
    %c0_10 = arith.constant 0 : index
    %11 = vector.load %arg5[%c0_8, %c0_9, %c0_10] : memref<1x1x4xf32, #tpu.memory_space<vmem>>, vector<1x1x4xf32>
    tpu.vector_store %arg5[%c0_8, %c0_9, %c0_10], %10 {strides = array<i32>} : memref<1x1x4xf32, #tpu.memory_space<vmem>>, vector<1x1x4xf32>,
    %12 = arith.mulf %5, %5 : vector<1024x4xf32>
    %cst_11 = arith.constant dense<0.000000e+00> : vector<4xf32>
    %13 = vector.multi_reduction <add>, %12, %cst_11 [0] : vector<1024x4xf32> to vector<4xf32>
    %14 = vector.shape_cast %13 : vector<4xf32> to vector<1x4xf32>
    %15 = vector.shape_cast %14 : vector<1x4xf32> to vector<1x1x4xf32>
    %c0_12 = arith.constant 0 : index
    %c0_13 = arith.constant 0 : index
    %c0_14 = arith.constant 0 : index
    %16 = vector.load %arg6[%c0_12, %c0_13, %c0_14] : memref<1x1x4xf32, #tpu.memory_space<vmem>>, vector<1x1x4xf32>
    tpu.vector_store %arg6[%c0_12, %c0_13, %c0_14], %15 {strides = array<i32>} : memref<1x1x4xf32, #tpu.memory_space<vmem>>, vector<1x1x4xf32>,
    return
  }
  func.func @transform_0(%arg0: i32) -> (i32, i32) {
    %c0_i32 = arith.constant 0 : i32
    %c0_i32_0 = arith.constant 0 : i32
    return %arg0, %c0_i32 : i32, i32
  }
  func.func @transform_1(%arg0: i32) -> (i32, i32) {
    %c0_i32 = arith.constant 0 : i32
    %c0_i32_0 = arith.constant 0 : i32
    %c0_i32_1 = arith.constant 0 : i32
    return %c0_i32, %c0_i32_0 : i32, i32
  }
  func.func @transform_2(%arg0: i32) -> (i32, i32) {
    %c0_i32 = arith.constant 0 : i32
    %c0_i32_0 = arith.constant 0 : i32
    %c0_i32_1 = arith.constant 0 : i32
    return %c0_i32, %c0_i32_0 : i32, i32
  }
  func.func @transform_3(%arg0: i32) -> (i32, i32) {
    %c0_i32 = arith.constant 0 : i32
    %c0_i32_0 = arith.constant 0 : i32
    return %arg0, %c0_i32 : i32, i32
  }
  func.func @transform_4(%arg0: i32) -> (i32, i32, i32) {
    %c0_i32 = arith.constant 0 : i32
    %c0_i32_0 = arith.constant 0 : i32
    %c0_i32_1 = arith.constant 0 : i32
    return %arg0, %c0_i32, %c0_i32_0 : i32, i32, i32
  }
  func.func @transform_5(%arg0: i32) -> (i32, i32, i32) {
    %c0_i32 = arith.constant 0 : i32
    %c0_i32_0 = arith.constant 0 : i32
    %c0_i32_1 = arith.constant 0 : i32
    return %arg0, %c0_i32, %c0_i32_0 : i32, i32, i32
  }
}

module attributes {stable_mosaic.version = 11 : i64} {
  func.func @kern(%arg0: i32, %arg1: memref<128x128xbf16, #tpu.memory_space<vmem>>, %arg2: memref<1x128xf32, #tpu.memory_space<vmem>>, %arg3: memref<1x128xf32, #tpu.memory_space<vmem>>, %arg4: memref<128x128xbf16, #tpu.memory_space<vmem>>, %arg5: memref<1x128xf32, #tpu.memory_space<vmem>>, %arg6: memref<1x128xf32, #tpu.memory_space<vmem>>, %arg7: memref<128x128xbf16, #tpu.memory_space<vmem>>) attributes {dimension_semantics = [#tpu.dimension_semantics<parallel>], iteration_bounds = array<i64: 2>, scalar_prefetch = 0 : i64, scratch_operands = 0 : i64, tpu.core_type = #tpu.core_type<tc>, window_params = [{transform_indices = @transform_0, window_bounds = array<i64: 128, 128>}, {pipeline_mode = #tpu.pipeline_mode<synchronous>, transform_indices = @transform_1, window_bounds = array<i64: 1, 128>}, {pipeline_mode = #tpu.pipeline_mode<synchronous>, transform_indices = @transform_2, window_bounds = array<i64: 1, 128>}, {transform_indices = @transform_3, window_bounds = array<i64: 128, 128>}, {pipeline_mode = #tpu.pipeline_mode<synchronous>, transform_indices = @transform_4, window_bounds = array<i64: 1, 128>}, {pipeline_mode = #tpu.pipeline_mode<synchronous>, transform_indices = @transform_5, window_bounds = array<i64: 1, 128>}, {transform_indices = @transform_6, window_bounds = array<i64: 128, 128>}]} {
    %c0 = arith.constant 0 : index
    %c0_0 = arith.constant 0 : index
    %0 = vector.load %arg1[%c0, %c0_0] : memref<128x128xbf16, #tpu.memory_space<vmem>>, vector<128x128xbf16>
    %1 = arith.extf %0 : vector<128x128xbf16> to vector<128x128xf32>
    %c0_1 = arith.constant 0 : index
    %c0_2 = arith.constant 0 : index
    %2 = vector.load %arg2[%c0_1, %c0_2] : memref<1x128xf32, #tpu.memory_space<vmem>>, vector<1x128xf32>
    %3 = vector.broadcast %2 : vector<1x128xf32> to vector<128x128xf32>
    %4 = arith.mulf %1, %3 : vector<128x128xf32>
    %c0_3 = arith.constant 0 : index
    %c0_4 = arith.constant 0 : index
    %5 = vector.load %arg3[%c0_3, %c0_4] : memref<1x128xf32, #tpu.memory_space<vmem>>, vector<1x128xf32>
    %6 = vector.broadcast %5 : vector<1x128xf32> to vector<128x128xf32>
    %7 = arith.addf %4, %6 : vector<128x128xf32>
    %c0_5 = arith.constant 0 : index
    %c0_6 = arith.constant 0 : index
    %8 = vector.load %arg4[%c0_5, %c0_6] : memref<128x128xbf16, #tpu.memory_space<vmem>>, vector<128x128xbf16>
    %9 = arith.extf %8 : vector<128x128xbf16> to vector<128x128xf32>
    %c0_7 = arith.constant 0 : index
    %c0_8 = arith.constant 0 : index
    %10 = vector.load %arg5[%c0_7, %c0_8] : memref<1x128xf32, #tpu.memory_space<vmem>>, vector<1x128xf32>
    %11 = vector.broadcast %10 : vector<1x128xf32> to vector<128x128xf32>
    %12 = arith.mulf %9, %11 : vector<128x128xf32>
    %13 = arith.addf %7, %12 : vector<128x128xf32>
    %c0_9 = arith.constant 0 : index
    %c0_10 = arith.constant 0 : index
    %14 = vector.load %arg6[%c0_9, %c0_10] : memref<1x128xf32, #tpu.memory_space<vmem>>, vector<1x128xf32>
    %15 = vector.broadcast %14 : vector<1x128xf32> to vector<128x128xf32>
    %16 = arith.addf %13, %15 : vector<128x128xf32>
    %cst = arith.constant 0.000000e+00 : f32
    %17 = vector.broadcast %cst : f32 to vector<128x128xf32>
    %18 = arith.maximumf %16, %17 : vector<128x128xf32>
    %19 = arith.truncf %18 : vector<128x128xf32> to vector<128x128xbf16>
    %c0_11 = arith.constant 0 : index
    %c0_12 = arith.constant 0 : index
    %20 = vector.load %arg7[%c0_11, %c0_12] : memref<128x128xbf16, #tpu.memory_space<vmem>>, vector<128x128xbf16>
    tpu.vector_store %arg7[%c0_11, %c0_12], %19 {strides = array<i32>} : memref<128x128xbf16, #tpu.memory_space<vmem>>, vector<128x128xbf16>,
    return
  }
  func.func @transform_0(%arg0: i32) -> (i32, i32) {
    %c0_i32 = arith.constant 0 : i32
    %c0_i32_0 = arith.constant 0 : i32
    return %arg0, %c0_i32 : i32, i32
  }
  func.func @transform_1(%arg0: i32) -> (i32, i32) {
    %c0_i32 = arith.constant 0 : i32
    %c0_i32_0 = arith.constant 0 : i32
    %c0_i32_1 = arith.constant 0 : i32
    return %c0_i32, %c0_i32_0 : i32, i32
  }
  func.func @transform_2(%arg0: i32) -> (i32, i32) {
    %c0_i32 = arith.constant 0 : i32
    %c0_i32_0 = arith.constant 0 : i32
    %c0_i32_1 = arith.constant 0 : i32
    return %c0_i32, %c0_i32_0 : i32, i32
  }
  func.func @transform_3(%arg0: i32) -> (i32, i32) {
    %c0_i32 = arith.constant 0 : i32
    %c0_i32_0 = arith.constant 0 : i32
    return %arg0, %c0_i32 : i32, i32
  }
  func.func @transform_4(%arg0: i32) -> (i32, i32) {
    %c0_i32 = arith.constant 0 : i32
    %c0_i32_0 = arith.constant 0 : i32
    %c0_i32_1 = arith.constant 0 : i32
    return %c0_i32, %c0_i32_0 : i32, i32
  }
  func.func @transform_5(%arg0: i32) -> (i32, i32) {
    %c0_i32 = arith.constant 0 : i32
    %c0_i32_0 = arith.constant 0 : i32
    %c0_i32_1 = arith.constant 0 : i32
    return %c0_i32, %c0_i32_0 : i32, i32
  }
  func.func @transform_6(%arg0: i32) -> (i32, i32) {
    %c0_i32 = arith.constant 0 : i32
    %c0_i32_0 = arith.constant 0 : i32
    return %arg0, %c0_i32 : i32, i32
  }
}

module attributes {stable_mosaic.version = 11 : i64} {
  func.func @kern(%arg0: i32, %arg1: memref<128x128xbf16, #tpu.memory_space<vmem>>, %arg2: memref<1x128xf32, #tpu.memory_space<vmem>>, %arg3: memref<1x128xf32, #tpu.memory_space<vmem>>, %arg4: memref<128x128xbf16, #tpu.memory_space<vmem>>, %arg5: memref<128x128xbf16, #tpu.memory_space<vmem>>) attributes {dimension_semantics = [#tpu.dimension_semantics<parallel>], iteration_bounds = array<i64: 2>, scalar_prefetch = 0 : i64, scratch_operands = 0 : i64, tpu.core_type = #tpu.core_type<tc>, window_params = [{transform_indices = @transform_0, window_bounds = array<i64: 128, 128>}, {pipeline_mode = #tpu.pipeline_mode<synchronous>, transform_indices = @transform_1, window_bounds = array<i64: 1, 128>}, {pipeline_mode = #tpu.pipeline_mode<synchronous>, transform_indices = @transform_2, window_bounds = array<i64: 1, 128>}, {transform_indices = @transform_3, window_bounds = array<i64: 128, 128>}, {transform_indices = @transform_4, window_bounds = array<i64: 128, 128>}]} {
    %c0 = arith.constant 0 : index
    %c0_0 = arith.constant 0 : index
    %0 = vector.load %arg1[%c0, %c0_0] : memref<128x128xbf16, #tpu.memory_space<vmem>>, vector<128x128xbf16>
    %1 = arith.extf %0 : vector<128x128xbf16> to vector<128x128xf32>
    %c0_1 = arith.constant 0 : index
    %c0_2 = arith.constant 0 : index
    %2 = vector.load %arg2[%c0_1, %c0_2] : memref<1x128xf32, #tpu.memory_space<vmem>>, vector<1x128xf32>
    %3 = vector.broadcast %2 : vector<1x128xf32> to vector<128x128xf32>
    %4 = arith.mulf %1, %3 : vector<128x128xf32>
    %c0_3 = arith.constant 0 : index
    %c0_4 = arith.constant 0 : index
    %5 = vector.load %arg3[%c0_3, %c0_4] : memref<1x128xf32, #tpu.memory_space<vmem>>, vector<1x128xf32>
    %6 = vector.broadcast %5 : vector<1x128xf32> to vector<128x128xf32>
    %7 = arith.addf %4, %6 : vector<128x128xf32>
    %c0_5 = arith.constant 0 : index
    %c0_6 = arith.constant 0 : index
    %8 = vector.load %arg4[%c0_5, %c0_6] : memref<128x128xbf16, #tpu.memory_space<vmem>>, vector<128x128xbf16>
    %9 = arith.extf %8 : vector<128x128xbf16> to vector<128x128xf32>
    %10 = arith.addf %7, %9 : vector<128x128xf32>
    %cst = arith.constant 0.000000e+00 : f32
    %11 = vector.broadcast %cst : f32 to vector<128x128xf32>
    %12 = arith.maximumf %10, %11 : vector<128x128xf32>
    %13 = arith.truncf %12 : vector<128x128xf32> to vector<128x128xbf16>
    %c0_7 = arith.constant 0 : index
    %c0_8 = arith.constant 0 : index
    %14 = vector.load %arg5[%c0_7, %c0_8] : memref<128x128xbf16, #tpu.memory_space<vmem>>, vector<128x128xbf16>
    tpu.vector_store %arg5[%c0_7, %c0_8], %13 {strides = array<i32>} : memref<128x128xbf16, #tpu.memory_space<vmem>>, vector<128x128xbf16>,
    return
  }
  func.func @transform_0(%arg0: i32) -> (i32, i32) {
    %c0_i32 = arith.constant 0 : i32
    %c0_i32_0 = arith.constant 0 : i32
    return %arg0, %c0_i32 : i32, i32
  }
  func.func @transform_1(%arg0: i32) -> (i32, i32) {
    %c0_i32 = arith.constant 0 : i32
    %c0_i32_0 = arith.constant 0 : i32
    %c0_i32_1 = arith.constant 0 : i32
    return %c0_i32, %c0_i32_0 : i32, i32
  }
  func.func @transform_2(%arg0: i32) -> (i32, i32) {
    %c0_i32 = arith.constant 0 : i32
    %c0_i32_0 = arith.constant 0 : i32
    %c0_i32_1 = arith.constant 0 : i32
    return %c0_i32, %c0_i32_0 : i32, i32
  }
  func.func @transform_3(%arg0: i32) -> (i32, i32) {
    %c0_i32 = arith.constant 0 : i32
    %c0_i32_0 = arith.constant 0 : i32
    return %arg0, %c0_i32 : i32, i32
  }
  func.func @transform_4(%arg0: i32) -> (i32, i32) {
    %c0_i32 = arith.constant 0 : i32
    %c0_i32_0 = arith.constant 0 : i32
    return %arg0, %c0_i32 : i32, i32
  }
}

module attributes {stable_mosaic.version = 11 : i64} {
  func.func @_matmul_stats_kernel(%arg0: i32, %arg1: memref<512x8xbf16, #tpu.memory_space<vmem>>, %arg2: memref<8x8xbf16, #tpu.memory_space<vmem>>, %arg3: memref<1x8xf32, #tpu.memory_space<vmem>>, %arg4: memref<512x8xbf16, #tpu.memory_space<vmem>>, %arg5: memref<1x1x8xf32, #tpu.memory_space<vmem>>, %arg6: memref<1x1x8xf32, #tpu.memory_space<vmem>>) attributes {dimension_semantics = [#tpu.dimension_semantics<parallel>], iteration_bounds = array<i64: 2>, scalar_prefetch = 0 : i64, scratch_operands = 0 : i64, tpu.core_type = #tpu.core_type<tc>, window_params = [{transform_indices = @transform_0, window_bounds = array<i64: 512, 8>}, {pipeline_mode = #tpu.pipeline_mode<synchronous>, transform_indices = @transform_1, window_bounds = array<i64: 8, 8>}, {pipeline_mode = #tpu.pipeline_mode<synchronous>, transform_indices = @transform_2, window_bounds = array<i64: 1, 8>}, {transform_indices = @transform_3, window_bounds = array<i64: 512, 8>}, {transform_indices = @transform_4, window_bounds = array<i64: 1, 1, 8>}, {transform_indices = @transform_5, window_bounds = array<i64: 1, 1, 8>}]} {
    %c0 = arith.constant 0 : index
    %c0_0 = arith.constant 0 : index
    %0 = vector.load %arg1[%c0, %c0_0] : memref<512x8xbf16, #tpu.memory_space<vmem>>, vector<512x8xbf16>
    %c0_1 = arith.constant 0 : index
    %c0_2 = arith.constant 0 : index
    %1 = vector.load %arg2[%c0_1, %c0_2] : memref<8x8xbf16, #tpu.memory_space<vmem>>, vector<8x8xbf16>
    %cst = arith.constant dense<0.000000e+00> : vector<512x8xf32>
    %2 = tpu.matmul %0, %1, %cst {dimension_numbers = #tpu.dot_dimension_numbers<[1], [0], [0], [1], [0, 0, 1, 1], [], []>} : vector<512x8xbf16>, vector<8x8xbf16>, vector<512x8xf32> -> vector<512x8xf32>
    %c0_3 = arith.constant 0 : index
    %c0_4 = arith.constant 0 : index
    %3 = vector.load %arg3[%c0_3, %c0_4] : memref<1x8xf32, #tpu.memory_space<vmem>>, vector<1x8xf32>
    %4 = vector.broadcast %3 : vector<1x8xf32> to vector<512x8xf32>
    %5 = arith.addf %2, %4 : vector<512x8xf32>
    %6 = arith.truncf %5 : vector<512x8xf32> to vector<512x8xbf16>
    %c0_5 = arith.constant 0 : index
    %c0_6 = arith.constant 0 : index
    %7 = vector.load %arg4[%c0_5, %c0_6] : memref<512x8xbf16, #tpu.memory_space<vmem>>, vector<512x8xbf16>
    tpu.vector_store %arg4[%c0_5, %c0_6], %6 {strides = array<i32>} : memref<512x8xbf16, #tpu.memory_space<vmem>>, vector<512x8xbf16>,
    %cst_7 = arith.constant dense<0.000000e+00> : vector<8xf32>
    %8 = vector.multi_reduction <add>, %5, %cst_7 [0] : vector<512x8xf32> to vector<8xf32>
    %9 = vector.shape_cast %8 : vector<8xf32> to vector<1x8xf32>
    %10 = vector.shape_cast %9 : vector<1x8xf32> to vector<1x1x8xf32>
    %c0_8 = arith.constant 0 : index
    %c0_9 = arith.constant 0 : index
    %c0_10 = arith.constant 0 : index
    %11 = vector.load %arg5[%c0_8, %c0_9, %c0_10] : memref<1x1x8xf32, #tpu.memory_space<vmem>>, vector<1x1x8xf32>
    tpu.vector_store %arg5[%c0_8, %c0_9, %c0_10], %10 {strides = array<i32>} : memref<1x1x8xf32, #tpu.memory_space<vmem>>, vector<1x1x8xf32>,
    %12 = arith.mulf %5, %5 : vector<512x8xf32>
    %cst_11 = arith.constant dense<0.000000e+00> : vector<8xf32>
    %13 = vector.multi_reduction <add>, %12, %cst_11 [0] : vector<512x8xf32> to vector<8xf32>
    %14 = vector.shape_cast %13 : vector<8xf32> to vector<1x8xf32>
    %15 = vector.shape_cast %14 : vector<1x8xf32> to vector<1x1x8xf32>
    %c0_12 = arith.constant 0 : index
    %c0_13 = arith.constant 0 : index
    %c0_14 = arith.constant 0 : index
    %16 = vector.load %arg6[%c0_12, %c0_13, %c0_14] : memref<1x1x8xf32, #tpu.memory_space<vmem>>, vector<1x1x8xf32>
    tpu.vector_store %arg6[%c0_12, %c0_13, %c0_14], %15 {strides = array<i32>} : memref<1x1x8xf32, #tpu.memory_space<vmem>>, vector<1x1x8xf32>,
    return
  }
  func.func @transform_0(%arg0: i32) -> (i32, i32) {
    %c0_i32 = arith.constant 0 : i32
    %c0_i32_0 = arith.constant 0 : i32
    return %arg0, %c0_i32 : i32, i32
  }
  func.func @transform_1(%arg0: i32) -> (i32, i32) {
    %c0_i32 = arith.constant 0 : i32
    %c0_i32_0 = arith.constant 0 : i32
    %c0_i32_1 = arith.constant 0 : i32
    return %c0_i32, %c0_i32_0 : i32, i32
  }
  func.func @transform_2(%arg0: i32) -> (i32, i32) {
    %c0_i32 = arith.constant 0 : i32
    %c0_i32_0 = arith.constant 0 : i32
    %c0_i32_1 = arith.constant 0 : i32
    return %c0_i32, %c0_i32_0 : i32, i32
  }
  func.func @transform_3(%arg0: i32) -> (i32, i32) {
    %c0_i32 = arith.constant 0 : i32
    %c0_i32_0 = arith.constant 0 : i32
    return %arg0, %c0_i32 : i32, i32
  }
  func.func @transform_4(%arg0: i32) -> (i32, i32, i32) {
    %c0_i32 = arith.constant 0 : i32
    %c0_i32_0 = arith.constant 0 : i32
    %c0_i32_1 = arith.constant 0 : i32
    return %arg0, %c0_i32, %c0_i32_0 : i32, i32, i32
  }
  func.func @transform_5(%arg0: i32) -> (i32, i32, i32) {
    %c0_i32 = arith.constant 0 : i32
    %c0_i32_0 = arith.constant 0 : i32
    %c0_i32_1 = arith.constant 0 : i32
    return %arg0, %c0_i32, %c0_i32_0 : i32, i32, i32
  }
}

module attributes {stable_mosaic.version = 11 : i64} {
  func.func @_matmul_stats_kernel(%arg0: i32, %arg1: memref<512x108xbf16, #tpu.memory_space<vmem>>, %arg2: memref<108x8xbf16, #tpu.memory_space<vmem>>, %arg3: memref<1x8xf32, #tpu.memory_space<vmem>>, %arg4: memref<512x8xbf16, #tpu.memory_space<vmem>>, %arg5: memref<1x1x8xf32, #tpu.memory_space<vmem>>, %arg6: memref<1x1x8xf32, #tpu.memory_space<vmem>>) attributes {dimension_semantics = [#tpu.dimension_semantics<parallel>], iteration_bounds = array<i64: 2>, scalar_prefetch = 0 : i64, scratch_operands = 0 : i64, tpu.core_type = #tpu.core_type<tc>, window_params = [{transform_indices = @transform_0, window_bounds = array<i64: 512, 108>}, {pipeline_mode = #tpu.pipeline_mode<synchronous>, transform_indices = @transform_1, window_bounds = array<i64: 108, 8>}, {pipeline_mode = #tpu.pipeline_mode<synchronous>, transform_indices = @transform_2, window_bounds = array<i64: 1, 8>}, {transform_indices = @transform_3, window_bounds = array<i64: 512, 8>}, {transform_indices = @transform_4, window_bounds = array<i64: 1, 1, 8>}, {transform_indices = @transform_5, window_bounds = array<i64: 1, 1, 8>}]} {
    %c0 = arith.constant 0 : index
    %c0_0 = arith.constant 0 : index
    %0 = vector.load %arg1[%c0, %c0_0] : memref<512x108xbf16, #tpu.memory_space<vmem>>, vector<512x108xbf16>
    %c0_1 = arith.constant 0 : index
    %c0_2 = arith.constant 0 : index
    %1 = vector.load %arg2[%c0_1, %c0_2] : memref<108x8xbf16, #tpu.memory_space<vmem>>, vector<108x8xbf16>
    %cst = arith.constant dense<0.000000e+00> : vector<512x8xf32>
    %2 = tpu.matmul %0, %1, %cst {dimension_numbers = #tpu.dot_dimension_numbers<[1], [0], [0], [1], [0, 0, 1, 1], [], []>} : vector<512x108xbf16>, vector<108x8xbf16>, vector<512x8xf32> -> vector<512x8xf32>
    %c0_3 = arith.constant 0 : index
    %c0_4 = arith.constant 0 : index
    %3 = vector.load %arg3[%c0_3, %c0_4] : memref<1x8xf32, #tpu.memory_space<vmem>>, vector<1x8xf32>
    %4 = vector.broadcast %3 : vector<1x8xf32> to vector<512x8xf32>
    %5 = arith.addf %2, %4 : vector<512x8xf32>
    %6 = arith.truncf %5 : vector<512x8xf32> to vector<512x8xbf16>
    %c0_5 = arith.constant 0 : index
    %c0_6 = arith.constant 0 : index
    %7 = vector.load %arg4[%c0_5, %c0_6] : memref<512x8xbf16, #tpu.memory_space<vmem>>, vector<512x8xbf16>
    tpu.vector_store %arg4[%c0_5, %c0_6], %6 {strides = array<i32>} : memref<512x8xbf16, #tpu.memory_space<vmem>>, vector<512x8xbf16>,
    %cst_7 = arith.constant dense<0.000000e+00> : vector<8xf32>
    %8 = vector.multi_reduction <add>, %5, %cst_7 [0] : vector<512x8xf32> to vector<8xf32>
    %9 = vector.shape_cast %8 : vector<8xf32> to vector<1x8xf32>
    %10 = vector.shape_cast %9 : vector<1x8xf32> to vector<1x1x8xf32>
    %c0_8 = arith.constant 0 : index
    %c0_9 = arith.constant 0 : index
    %c0_10 = arith.constant 0 : index
    %11 = vector.load %arg5[%c0_8, %c0_9, %c0_10] : memref<1x1x8xf32, #tpu.memory_space<vmem>>, vector<1x1x8xf32>
    tpu.vector_store %arg5[%c0_8, %c0_9, %c0_10], %10 {strides = array<i32>} : memref<1x1x8xf32, #tpu.memory_space<vmem>>, vector<1x1x8xf32>,
    %12 = arith.mulf %5, %5 : vector<512x8xf32>
    %cst_11 = arith.constant dense<0.000000e+00> : vector<8xf32>
    %13 = vector.multi_reduction <add>, %12, %cst_11 [0] : vector<512x8xf32> to vector<8xf32>
    %14 = vector.shape_cast %13 : vector<8xf32> to vector<1x8xf32>
    %15 = vector.shape_cast %14 : vector<1x8xf32> to vector<1x1x8xf32>
    %c0_12 = arith.constant 0 : index
    %c0_13 = arith.constant 0 : index
    %c0_14 = arith.constant 0 : index
    %16 = vector.load %arg6[%c0_12, %c0_13, %c0_14] : memref<1x1x8xf32, #tpu.memory_space<vmem>>, vector<1x1x8xf32>
    tpu.vector_store %arg6[%c0_12, %c0_13, %c0_14], %15 {strides = array<i32>} : memref<1x1x8xf32, #tpu.memory_space<vmem>>, vector<1x1x8xf32>,
    return
  }
  func.func @transform_0(%arg0: i32) -> (i32, i32) {
    %c0_i32 = arith.constant 0 : i32
    %c0_i32_0 = arith.constant 0 : i32
    return %arg0, %c0_i32 : i32, i32
  }
  func.func @transform_1(%arg0: i32) -> (i32, i32) {
    %c0_i32 = arith.constant 0 : i32
    %c0_i32_0 = arith.constant 0 : i32
    %c0_i32_1 = arith.constant 0 : i32
    return %c0_i32, %c0_i32_0 : i32, i32
  }
  func.func @transform_2(%arg0: i32) -> (i32, i32) {
    %c0_i32 = arith.constant 0 : i32
    %c0_i32_0 = arith.constant 0 : i32
    %c0_i32_1 = arith.constant 0 : i32
    return %c0_i32, %c0_i32_0 : i32, i32
  }
  func.func @transform_3(%arg0: i32) -> (i32, i32) {
    %c0_i32 = arith.constant 0 : i32
    %c0_i32_0 = arith.constant 0 : i32
    return %arg0, %c0_i32 : i32, i32
  }
  func.func @transform_4(%arg0: i32) -> (i32, i32, i32) {
    %c0_i32 = arith.constant 0 : i32
    %c0_i32_0 = arith.constant 0 : i32
    %c0_i32_1 = arith.constant 0 : i32
    return %arg0, %c0_i32, %c0_i32_0 : i32, i32, i32
  }
  func.func @transform_5(%arg0: i32) -> (i32, i32, i32) {
    %c0_i32 = arith.constant 0 : i32
    %c0_i32_0 = arith.constant 0 : i32
    %c0_i32_1 = arith.constant 0 : i32
    return %arg0, %c0_i32, %c0_i32_0 : i32, i32, i32
  }
}

module attributes {stable_mosaic.version = 11 : i64} {
  func.func @kern(%arg0: i32, %arg1: memref<32x128xbf16, #tpu.memory_space<vmem>>, %arg2: memref<1x128xf32, #tpu.memory_space<vmem>>, %arg3: memref<1x128xf32, #tpu.memory_space<vmem>>, %arg4: memref<32x128xbf16, #tpu.memory_space<vmem>>) attributes {dimension_semantics = [#tpu.dimension_semantics<parallel>], iteration_bounds = array<i64: 2>, scalar_prefetch = 0 : i64, scratch_operands = 0 : i64, tpu.core_type = #tpu.core_type<tc>, window_params = [{transform_indices = @transform_0, window_bounds = array<i64: 32, 128>}, {pipeline_mode = #tpu.pipeline_mode<synchronous>, transform_indices = @transform_1, window_bounds = array<i64: 1, 128>}, {pipeline_mode = #tpu.pipeline_mode<synchronous>, transform_indices = @transform_2, window_bounds = array<i64: 1, 128>}, {transform_indices = @transform_3, window_bounds = array<i64: 32, 128>}]} {
    %c0 = arith.constant 0 : index
    %c0_0 = arith.constant 0 : index
    %0 = vector.load %arg1[%c0, %c0_0] : memref<32x128xbf16, #tpu.memory_space<vmem>>, vector<32x128xbf16>
    %1 = arith.extf %0 : vector<32x128xbf16> to vector<32x128xf32>
    %c0_1 = arith.constant 0 : index
    %c0_2 = arith.constant 0 : index
    %2 = vector.load %arg2[%c0_1, %c0_2] : memref<1x128xf32, #tpu.memory_space<vmem>>, vector<1x128xf32>
    %3 = vector.broadcast %2 : vector<1x128xf32> to vector<32x128xf32>
    %4 = arith.mulf %1, %3 : vector<32x128xf32>
    %c0_3 = arith.constant 0 : index
    %c0_4 = arith.constant 0 : index
    %5 = vector.load %arg3[%c0_3, %c0_4] : memref<1x128xf32, #tpu.memory_space<vmem>>, vector<1x128xf32>
    %6 = vector.broadcast %5 : vector<1x128xf32> to vector<32x128xf32>
    %7 = arith.addf %4, %6 : vector<32x128xf32>
    %cst = arith.constant 0.000000e+00 : f32
    %8 = vector.broadcast %cst : f32 to vector<32x128xf32>
    %9 = arith.maximumf %7, %8 : vector<32x128xf32>
    %10 = arith.truncf %9 : vector<32x128xf32> to vector<32x128xbf16>
    %c0_5 = arith.constant 0 : index
    %c0_6 = arith.constant 0 : index
    %11 = vector.load %arg4[%c0_5, %c0_6] : memref<32x128xbf16, #tpu.memory_space<vmem>>, vector<32x128xbf16>
    tpu.vector_store %arg4[%c0_5, %c0_6], %10 {strides = array<i32>} : memref<32x128xbf16, #tpu.memory_space<vmem>>, vector<32x128xbf16>,
    return
  }
  func.func @transform_0(%arg0: i32) -> (i32, i32) {
    %c0_i32 = arith.constant 0 : i32
    %c0_i32_0 = arith.constant 0 : i32
    return %arg0, %c0_i32 : i32, i32
  }
  func.func @transform_1(%arg0: i32) -> (i32, i32) {
    %c0_i32 = arith.constant 0 : i32
    %c0_i32_0 = arith.constant 0 : i32
    %c0_i32_1 = arith.constant 0 : i32
    return %c0_i32, %c0_i32_0 : i32, i32
  }
  func.func @transform_2(%arg0: i32) -> (i32, i32) {
    %c0_i32 = arith.constant 0 : i32
    %c0_i32_0 = arith.constant 0 : i32
    %c0_i32_1 = arith.constant 0 : i32
    return %c0_i32, %c0_i32_0 : i32, i32
  }
  func.func @transform_3(%arg0: i32) -> (i32, i32) {
    %c0_i32 = arith.constant 0 : i32
    %c0_i32_0 = arith.constant 0 : i32
    return %arg0, %c0_i32 : i32, i32
  }
}

module attributes {stable_mosaic.version = 11 : i64} {
  func.func @_matmul_stats_kernel(%arg0: i32, %arg1: memref<512x216xbf16, #tpu.memory_space<vmem>>, %arg2: memref<216x8xbf16, #tpu.memory_space<vmem>>, %arg3: memref<1x8xf32, #tpu.memory_space<vmem>>, %arg4: memref<512x8xbf16, #tpu.memory_space<vmem>>, %arg5: memref<1x1x8xf32, #tpu.memory_space<vmem>>, %arg6: memref<1x1x8xf32, #tpu.memory_space<vmem>>) attributes {dimension_semantics = [#tpu.dimension_semantics<parallel>], iteration_bounds = array<i64: 2>, scalar_prefetch = 0 : i64, scratch_operands = 0 : i64, tpu.core_type = #tpu.core_type<tc>, window_params = [{transform_indices = @transform_0, window_bounds = array<i64: 512, 216>}, {pipeline_mode = #tpu.pipeline_mode<synchronous>, transform_indices = @transform_1, window_bounds = array<i64: 216, 8>}, {pipeline_mode = #tpu.pipeline_mode<synchronous>, transform_indices = @transform_2, window_bounds = array<i64: 1, 8>}, {transform_indices = @transform_3, window_bounds = array<i64: 512, 8>}, {transform_indices = @transform_4, window_bounds = array<i64: 1, 1, 8>}, {transform_indices = @transform_5, window_bounds = array<i64: 1, 1, 8>}]} {
    %c0 = arith.constant 0 : index
    %c0_0 = arith.constant 0 : index
    %0 = vector.load %arg1[%c0, %c0_0] : memref<512x216xbf16, #tpu.memory_space<vmem>>, vector<512x216xbf16>
    %c0_1 = arith.constant 0 : index
    %c0_2 = arith.constant 0 : index
    %1 = vector.load %arg2[%c0_1, %c0_2] : memref<216x8xbf16, #tpu.memory_space<vmem>>, vector<216x8xbf16>
    %cst = arith.constant dense<0.000000e+00> : vector<512x8xf32>
    %2 = tpu.matmul %0, %1, %cst {dimension_numbers = #tpu.dot_dimension_numbers<[1], [0], [0], [1], [0, 0, 1, 1], [], []>} : vector<512x216xbf16>, vector<216x8xbf16>, vector<512x8xf32> -> vector<512x8xf32>
    %c0_3 = arith.constant 0 : index
    %c0_4 = arith.constant 0 : index
    %3 = vector.load %arg3[%c0_3, %c0_4] : memref<1x8xf32, #tpu.memory_space<vmem>>, vector<1x8xf32>
    %4 = vector.broadcast %3 : vector<1x8xf32> to vector<512x8xf32>
    %5 = arith.addf %2, %4 : vector<512x8xf32>
    %6 = arith.truncf %5 : vector<512x8xf32> to vector<512x8xbf16>
    %c0_5 = arith.constant 0 : index
    %c0_6 = arith.constant 0 : index
    %7 = vector.load %arg4[%c0_5, %c0_6] : memref<512x8xbf16, #tpu.memory_space<vmem>>, vector<512x8xbf16>
    tpu.vector_store %arg4[%c0_5, %c0_6], %6 {strides = array<i32>} : memref<512x8xbf16, #tpu.memory_space<vmem>>, vector<512x8xbf16>,
    %cst_7 = arith.constant dense<0.000000e+00> : vector<8xf32>
    %8 = vector.multi_reduction <add>, %5, %cst_7 [0] : vector<512x8xf32> to vector<8xf32>
    %9 = vector.shape_cast %8 : vector<8xf32> to vector<1x8xf32>
    %10 = vector.shape_cast %9 : vector<1x8xf32> to vector<1x1x8xf32>
    %c0_8 = arith.constant 0 : index
    %c0_9 = arith.constant 0 : index
    %c0_10 = arith.constant 0 : index
    %11 = vector.load %arg5[%c0_8, %c0_9, %c0_10] : memref<1x1x8xf32, #tpu.memory_space<vmem>>, vector<1x1x8xf32>
    tpu.vector_store %arg5[%c0_8, %c0_9, %c0_10], %10 {strides = array<i32>} : memref<1x1x8xf32, #tpu.memory_space<vmem>>, vector<1x1x8xf32>,
    %12 = arith.mulf %5, %5 : vector<512x8xf32>
    %cst_11 = arith.constant dense<0.000000e+00> : vector<8xf32>
    %13 = vector.multi_reduction <add>, %12, %cst_11 [0] : vector<512x8xf32> to vector<8xf32>
    %14 = vector.shape_cast %13 : vector<8xf32> to vector<1x8xf32>
    %15 = vector.shape_cast %14 : vector<1x8xf32> to vector<1x1x8xf32>
    %c0_12 = arith.constant 0 : index
    %c0_13 = arith.constant 0 : index
    %c0_14 = arith.constant 0 : index
    %16 = vector.load %arg6[%c0_12, %c0_13, %c0_14] : memref<1x1x8xf32, #tpu.memory_space<vmem>>, vector<1x1x8xf32>
    tpu.vector_store %arg6[%c0_12, %c0_13, %c0_14], %15 {strides = array<i32>} : memref<1x1x8xf32, #tpu.memory_space<vmem>>, vector<1x1x8xf32>,
    return
  }
  func.func @transform_0(%arg0: i32) -> (i32, i32) {
    %c0_i32 = arith.constant 0 : i32
    %c0_i32_0 = arith.constant 0 : i32
    return %arg0, %c0_i32 : i32, i32
  }
  func.func @transform_1(%arg0: i32) -> (i32, i32) {
    %c0_i32 = arith.constant 0 : i32
    %c0_i32_0 = arith.constant 0 : i32
    %c0_i32_1 = arith.constant 0 : i32
    return %c0_i32, %c0_i32_0 : i32, i32
  }
  func.func @transform_2(%arg0: i32) -> (i32, i32) {
    %c0_i32 = arith.constant 0 : i32
    %c0_i32_0 = arith.constant 0 : i32
    %c0_i32_1 = arith.constant 0 : i32
    return %c0_i32, %c0_i32_0 : i32, i32
  }
  func.func @transform_3(%arg0: i32) -> (i32, i32) {
    %c0_i32 = arith.constant 0 : i32
    %c0_i32_0 = arith.constant 0 : i32
    return %arg0, %c0_i32 : i32, i32
  }
  func.func @transform_4(%arg0: i32) -> (i32, i32, i32) {
    %c0_i32 = arith.constant 0 : i32
    %c0_i32_0 = arith.constant 0 : i32
    %c0_i32_1 = arith.constant 0 : i32
    return %arg0, %c0_i32, %c0_i32_0 : i32, i32, i32
  }
  func.func @transform_5(%arg0: i32) -> (i32, i32, i32) {
    %c0_i32 = arith.constant 0 : i32
    %c0_i32_0 = arith.constant 0 : i32
    %c0_i32_1 = arith.constant 0 : i32
    return %arg0, %c0_i32, %c0_i32_0 : i32, i32, i32
  }
}

module attributes {stable_mosaic.version = 11 : i64} {
  func.func @kern(%arg0: i32, %arg1: memref<32x128xbf16, #tpu.memory_space<vmem>>, %arg2: memref<1x128xf32, #tpu.memory_space<vmem>>, %arg3: memref<1x128xf32, #tpu.memory_space<vmem>>, %arg4: memref<32x128xbf16, #tpu.memory_space<vmem>>, %arg5: memref<1x128xf32, #tpu.memory_space<vmem>>, %arg6: memref<1x128xf32, #tpu.memory_space<vmem>>, %arg7: memref<32x128xbf16, #tpu.memory_space<vmem>>) attributes {dimension_semantics = [#tpu.dimension_semantics<parallel>], iteration_bounds = array<i64: 2>, scalar_prefetch = 0 : i64, scratch_operands = 0 : i64, tpu.core_type = #tpu.core_type<tc>, window_params = [{transform_indices = @transform_0, window_bounds = array<i64: 32, 128>}, {pipeline_mode = #tpu.pipeline_mode<synchronous>, transform_indices = @transform_1, window_bounds = array<i64: 1, 128>}, {pipeline_mode = #tpu.pipeline_mode<synchronous>, transform_indices = @transform_2, window_bounds = array<i64: 1, 128>}, {transform_indices = @transform_3, window_bounds = array<i64: 32, 128>}, {pipeline_mode = #tpu.pipeline_mode<synchronous>, transform_indices = @transform_4, window_bounds = array<i64: 1, 128>}, {pipeline_mode = #tpu.pipeline_mode<synchronous>, transform_indices = @transform_5, window_bounds = array<i64: 1, 128>}, {transform_indices = @transform_6, window_bounds = array<i64: 32, 128>}]} {
    %c0 = arith.constant 0 : index
    %c0_0 = arith.constant 0 : index
    %0 = vector.load %arg1[%c0, %c0_0] : memref<32x128xbf16, #tpu.memory_space<vmem>>, vector<32x128xbf16>
    %1 = arith.extf %0 : vector<32x128xbf16> to vector<32x128xf32>
    %c0_1 = arith.constant 0 : index
    %c0_2 = arith.constant 0 : index
    %2 = vector.load %arg2[%c0_1, %c0_2] : memref<1x128xf32, #tpu.memory_space<vmem>>, vector<1x128xf32>
    %3 = vector.broadcast %2 : vector<1x128xf32> to vector<32x128xf32>
    %4 = arith.mulf %1, %3 : vector<32x128xf32>
    %c0_3 = arith.constant 0 : index
    %c0_4 = arith.constant 0 : index
    %5 = vector.load %arg3[%c0_3, %c0_4] : memref<1x128xf32, #tpu.memory_space<vmem>>, vector<1x128xf32>
    %6 = vector.broadcast %5 : vector<1x128xf32> to vector<32x128xf32>
    %7 = arith.addf %4, %6 : vector<32x128xf32>
    %c0_5 = arith.constant 0 : index
    %c0_6 = arith.constant 0 : index
    %8 = vector.load %arg4[%c0_5, %c0_6] : memref<32x128xbf16, #tpu.memory_space<vmem>>, vector<32x128xbf16>
    %9 = arith.extf %8 : vector<32x128xbf16> to vector<32x128xf32>
    %c0_7 = arith.constant 0 : index
    %c0_8 = arith.constant 0 : index
    %10 = vector.load %arg5[%c0_7, %c0_8] : memref<1x128xf32, #tpu.memory_space<vmem>>, vector<1x128xf32>
    %11 = vector.broadcast %10 : vector<1x128xf32> to vector<32x128xf32>
    %12 = arith.mulf %9, %11 : vector<32x128xf32>
    %13 = arith.addf %7, %12 : vector<32x128xf32>
    %c0_9 = arith.constant 0 : index
    %c0_10 = arith.constant 0 : index
    %14 = vector.load %arg6[%c0_9, %c0_10] : memref<1x128xf32, #tpu.memory_space<vmem>>, vector<1x128xf32>
    %15 = vector.broadcast %14 : vector<1x128xf32> to vector<32x128xf32>
    %16 = arith.addf %13, %15 : vector<32x128xf32>
    %cst = arith.constant 0.000000e+00 : f32
    %17 = vector.broadcast %cst : f32 to vector<32x128xf32>
    %18 = arith.maximumf %16, %17 : vector<32x128xf32>
    %19 = arith.truncf %18 : vector<32x128xf32> to vector<32x128xbf16>
    %c0_11 = arith.constant 0 : index
    %c0_12 = arith.constant 0 : index
    %20 = vector.load %arg7[%c0_11, %c0_12] : memref<32x128xbf16, #tpu.memory_space<vmem>>, vector<32x128xbf16>
    tpu.vector_store %arg7[%c0_11, %c0_12], %19 {strides = array<i32>} : memref<32x128xbf16, #tpu.memory_space<vmem>>, vector<32x128xbf16>,
    return
  }
  func.func @transform_0(%arg0: i32) -> (i32, i32) {
    %c0_i32 = arith.constant 0 : i32
    %c0_i32_0 = arith.constant 0 : i32
    return %arg0, %c0_i32 : i32, i32
  }
  func.func @transform_1(%arg0: i32) -> (i32, i32) {
    %c0_i32 = arith.constant 0 : i32
    %c0_i32_0 = arith.constant 0 : i32
    %c0_i32_1 = arith.constant 0 : i32
    return %c0_i32, %c0_i32_0 : i32, i32
  }
  func.func @transform_2(%arg0: i32) -> (i32, i32) {
    %c0_i32 = arith.constant 0 : i32
    %c0_i32_0 = arith.constant 0 : i32
    %c0_i32_1 = arith.constant 0 : i32
    return %c0_i32, %c0_i32_0 : i32, i32
  }
  func.func @transform_3(%arg0: i32) -> (i32, i32) {
    %c0_i32 = arith.constant 0 : i32
    %c0_i32_0 = arith.constant 0 : i32
    return %arg0, %c0_i32 : i32, i32
  }
  func.func @transform_4(%arg0: i32) -> (i32, i32) {
    %c0_i32 = arith.constant 0 : i32
    %c0_i32_0 = arith.constant 0 : i32
    %c0_i32_1 = arith.constant 0 : i32
    return %c0_i32, %c0_i32_0 : i32, i32
  }
  func.func @transform_5(%arg0: i32) -> (i32, i32) {
    %c0_i32 = arith.constant 0 : i32
    %c0_i32_0 = arith.constant 0 : i32
    %c0_i32_1 = arith.constant 0 : i32
    return %c0_i32, %c0_i32_0 : i32, i32
  }
  func.func @transform_6(%arg0: i32) -> (i32, i32) {
    %c0_i32 = arith.constant 0 : i32
    %c0_i32_0 = arith.constant 0 : i32
    return %arg0, %c0_i32 : i32, i32
  }
}

module attributes {stable_mosaic.version = 11 : i64} {
  func.func @kern(%arg0: i32, %arg1: memref<32x128xbf16, #tpu.memory_space<vmem>>, %arg2: memref<1x128xf32, #tpu.memory_space<vmem>>, %arg3: memref<1x128xf32, #tpu.memory_space<vmem>>, %arg4: memref<32x128xbf16, #tpu.memory_space<vmem>>, %arg5: memref<32x128xbf16, #tpu.memory_space<vmem>>) attributes {dimension_semantics = [#tpu.dimension_semantics<parallel>], iteration_bounds = array<i64: 2>, scalar_prefetch = 0 : i64, scratch_operands = 0 : i64, tpu.core_type = #tpu.core_type<tc>, window_params = [{transform_indices = @transform_0, window_bounds = array<i64: 32, 128>}, {pipeline_mode = #tpu.pipeline_mode<synchronous>, transform_indices = @transform_1, window_bounds = array<i64: 1, 128>}, {pipeline_mode = #tpu.pipeline_mode<synchronous>, transform_indices = @transform_2, window_bounds = array<i64: 1, 128>}, {transform_indices = @transform_3, window_bounds = array<i64: 32, 128>}, {transform_indices = @transform_4, window_bounds = array<i64: 32, 128>}]} {
    %c0 = arith.constant 0 : index
    %c0_0 = arith.constant 0 : index
    %0 = vector.load %arg1[%c0, %c0_0] : memref<32x128xbf16, #tpu.memory_space<vmem>>, vector<32x128xbf16>
    %1 = arith.extf %0 : vector<32x128xbf16> to vector<32x128xf32>
    %c0_1 = arith.constant 0 : index
    %c0_2 = arith.constant 0 : index
    %2 = vector.load %arg2[%c0_1, %c0_2] : memref<1x128xf32, #tpu.memory_space<vmem>>, vector<1x128xf32>
    %3 = vector.broadcast %2 : vector<1x128xf32> to vector<32x128xf32>
    %4 = arith.mulf %1, %3 : vector<32x128xf32>
    %c0_3 = arith.constant 0 : index
    %c0_4 = arith.constant 0 : index
    %5 = vector.load %arg3[%c0_3, %c0_4] : memref<1x128xf32, #tpu.memory_space<vmem>>, vector<1x128xf32>
    %6 = vector.broadcast %5 : vector<1x128xf32> to vector<32x128xf32>
    %7 = arith.addf %4, %6 : vector<32x128xf32>
    %c0_5 = arith.constant 0 : index
    %c0_6 = arith.constant 0 : index
    %8 = vector.load %arg4[%c0_5, %c0_6] : memref<32x128xbf16, #tpu.memory_space<vmem>>, vector<32x128xbf16>
    %9 = arith.extf %8 : vector<32x128xbf16> to vector<32x128xf32>
    %10 = arith.addf %7, %9 : vector<32x128xf32>
    %cst = arith.constant 0.000000e+00 : f32
    %11 = vector.broadcast %cst : f32 to vector<32x128xf32>
    %12 = arith.maximumf %10, %11 : vector<32x128xf32>
    %13 = arith.truncf %12 : vector<32x128xf32> to vector<32x128xbf16>
    %c0_7 = arith.constant 0 : index
    %c0_8 = arith.constant 0 : index
    %14 = vector.load %arg5[%c0_7, %c0_8] : memref<32x128xbf16, #tpu.memory_space<vmem>>, vector<32x128xbf16>
    tpu.vector_store %arg5[%c0_7, %c0_8], %13 {strides = array<i32>} : memref<32x128xbf16, #tpu.memory_space<vmem>>, vector<32x128xbf16>,
    return
  }
  func.func @transform_0(%arg0: i32) -> (i32, i32) {
    %c0_i32 = arith.constant 0 : i32
    %c0_i32_0 = arith.constant 0 : i32
    return %arg0, %c0_i32 : i32, i32
  }
  func.func @transform_1(%arg0: i32) -> (i32, i32) {
    %c0_i32 = arith.constant 0 : i32
    %c0_i32_0 = arith.constant 0 : i32
    %c0_i32_1 = arith.constant 0 : i32
    return %c0_i32, %c0_i32_0 : i32, i32
  }
  func.func @transform_2(%arg0: i32) -> (i32, i32) {
    %c0_i32 = arith.constant 0 : i32
    %c0_i32_0 = arith.constant 0 : i32
    %c0_i32_1 = arith.constant 0 : i32
    return %c0_i32, %c0_i32_0 : i32, i32
  }
  func.func @transform_3(%arg0: i32) -> (i32, i32) {
    %c0_i32 = arith.constant 0 : i32
    %c0_i32_0 = arith.constant 0 : i32
    return %arg0, %c0_i32 : i32, i32
  }
  func.func @transform_4(%arg0: i32) -> (i32, i32) {
    %c0_i32 = arith.constant 0 : i32
    %c0_i32_0 = arith.constant 0 : i32
    return %arg0, %c0_i32 : i32, i32
  }
}

module attributes {stable_mosaic.version = 11 : i64} {
  func.func @_matmul_stats_kernel(%arg0: i32, %arg1: memref<64x8xbf16, #tpu.memory_space<vmem>>, %arg2: memref<8x16xbf16, #tpu.memory_space<vmem>>, %arg3: memref<1x16xf32, #tpu.memory_space<vmem>>, %arg4: memref<64x16xbf16, #tpu.memory_space<vmem>>, %arg5: memref<1x1x16xf32, #tpu.memory_space<vmem>>, %arg6: memref<1x1x16xf32, #tpu.memory_space<vmem>>) attributes {dimension_semantics = [#tpu.dimension_semantics<parallel>], iteration_bounds = array<i64: 2>, scalar_prefetch = 0 : i64, scratch_operands = 0 : i64, tpu.core_type = #tpu.core_type<tc>, window_params = [{transform_indices = @transform_0, window_bounds = array<i64: 64, 8>}, {pipeline_mode = #tpu.pipeline_mode<synchronous>, transform_indices = @transform_1, window_bounds = array<i64: 8, 16>}, {pipeline_mode = #tpu.pipeline_mode<synchronous>, transform_indices = @transform_2, window_bounds = array<i64: 1, 16>}, {transform_indices = @transform_3, window_bounds = array<i64: 64, 16>}, {transform_indices = @transform_4, window_bounds = array<i64: 1, 1, 16>}, {transform_indices = @transform_5, window_bounds = array<i64: 1, 1, 16>}]} {
    %c0 = arith.constant 0 : index
    %c0_0 = arith.constant 0 : index
    %0 = vector.load %arg1[%c0, %c0_0] : memref<64x8xbf16, #tpu.memory_space<vmem>>, vector<64x8xbf16>
    %c0_1 = arith.constant 0 : index
    %c0_2 = arith.constant 0 : index
    %1 = vector.load %arg2[%c0_1, %c0_2] : memref<8x16xbf16, #tpu.memory_space<vmem>>, vector<8x16xbf16>
    %cst = arith.constant dense<0.000000e+00> : vector<64x16xf32>
    %2 = tpu.matmul %0, %1, %cst {dimension_numbers = #tpu.dot_dimension_numbers<[1], [0], [0], [1], [0, 0, 1, 1], [], []>} : vector<64x8xbf16>, vector<8x16xbf16>, vector<64x16xf32> -> vector<64x16xf32>
    %c0_3 = arith.constant 0 : index
    %c0_4 = arith.constant 0 : index
    %3 = vector.load %arg3[%c0_3, %c0_4] : memref<1x16xf32, #tpu.memory_space<vmem>>, vector<1x16xf32>
    %4 = vector.broadcast %3 : vector<1x16xf32> to vector<64x16xf32>
    %5 = arith.addf %2, %4 : vector<64x16xf32>
    %6 = arith.truncf %5 : vector<64x16xf32> to vector<64x16xbf16>
    %c0_5 = arith.constant 0 : index
    %c0_6 = arith.constant 0 : index
    %7 = vector.load %arg4[%c0_5, %c0_6] : memref<64x16xbf16, #tpu.memory_space<vmem>>, vector<64x16xbf16>
    tpu.vector_store %arg4[%c0_5, %c0_6], %6 {strides = array<i32>} : memref<64x16xbf16, #tpu.memory_space<vmem>>, vector<64x16xbf16>,
    %cst_7 = arith.constant dense<0.000000e+00> : vector<16xf32>
    %8 = vector.multi_reduction <add>, %5, %cst_7 [0] : vector<64x16xf32> to vector<16xf32>
    %9 = vector.shape_cast %8 : vector<16xf32> to vector<1x16xf32>
    %10 = vector.shape_cast %9 : vector<1x16xf32> to vector<1x1x16xf32>
    %c0_8 = arith.constant 0 : index
    %c0_9 = arith.constant 0 : index
    %c0_10 = arith.constant 0 : index
    %11 = vector.load %arg5[%c0_8, %c0_9, %c0_10] : memref<1x1x16xf32, #tpu.memory_space<vmem>>, vector<1x1x16xf32>
    tpu.vector_store %arg5[%c0_8, %c0_9, %c0_10], %10 {strides = array<i32>} : memref<1x1x16xf32, #tpu.memory_space<vmem>>, vector<1x1x16xf32>,
    %12 = arith.mulf %5, %5 : vector<64x16xf32>
    %cst_11 = arith.constant dense<0.000000e+00> : vector<16xf32>
    %13 = vector.multi_reduction <add>, %12, %cst_11 [0] : vector<64x16xf32> to vector<16xf32>
    %14 = vector.shape_cast %13 : vector<16xf32> to vector<1x16xf32>
    %15 = vector.shape_cast %14 : vector<1x16xf32> to vector<1x1x16xf32>
    %c0_12 = arith.constant 0 : index
    %c0_13 = arith.constant 0 : index
    %c0_14 = arith.constant 0 : index
    %16 = vector.load %arg6[%c0_12, %c0_13, %c0_14] : memref<1x1x16xf32, #tpu.memory_space<vmem>>, vector<1x1x16xf32>
    tpu.vector_store %arg6[%c0_12, %c0_13, %c0_14], %15 {strides = array<i32>} : memref<1x1x16xf32, #tpu.memory_space<vmem>>, vector<1x1x16xf32>,
    return
  }
  func.func @transform_0(%arg0: i32) -> (i32, i32) {
    %c0_i32 = arith.constant 0 : i32
    %c0_i32_0 = arith.constant 0 : i32
    return %arg0, %c0_i32 : i32, i32
  }
  func.func @transform_1(%arg0: i32) -> (i32, i32) {
    %c0_i32 = arith.constant 0 : i32
    %c0_i32_0 = arith.constant 0 : i32
    %c0_i32_1 = arith.constant 0 : i32
    return %c0_i32, %c0_i32_0 : i32, i32
  }
  func.func @transform_2(%arg0: i32) -> (i32, i32) {
    %c0_i32 = arith.constant 0 : i32
    %c0_i32_0 = arith.constant 0 : i32
    %c0_i32_1 = arith.constant 0 : i32
    return %c0_i32, %c0_i32_0 : i32, i32
  }
  func.func @transform_3(%arg0: i32) -> (i32, i32) {
    %c0_i32 = arith.constant 0 : i32
    %c0_i32_0 = arith.constant 0 : i32
    return %arg0, %c0_i32 : i32, i32
  }
  func.func @transform_4(%arg0: i32) -> (i32, i32, i32) {
    %c0_i32 = arith.constant 0 : i32
    %c0_i32_0 = arith.constant 0 : i32
    %c0_i32_1 = arith.constant 0 : i32
    return %arg0, %c0_i32, %c0_i32_0 : i32, i32, i32
  }
  func.func @transform_5(%arg0: i32) -> (i32, i32, i32) {
    %c0_i32 = arith.constant 0 : i32
    %c0_i32_0 = arith.constant 0 : i32
    %c0_i32_1 = arith.constant 0 : i32
    return %arg0, %c0_i32, %c0_i32_0 : i32, i32, i32
  }
}

module attributes {stable_mosaic.version = 11 : i64} {
  func.func @_matmul_stats_kernel(%arg0: i32, %arg1: memref<64x216xbf16, #tpu.memory_space<vmem>>, %arg2: memref<216x16xbf16, #tpu.memory_space<vmem>>, %arg3: memref<1x16xf32, #tpu.memory_space<vmem>>, %arg4: memref<64x16xbf16, #tpu.memory_space<vmem>>, %arg5: memref<1x1x16xf32, #tpu.memory_space<vmem>>, %arg6: memref<1x1x16xf32, #tpu.memory_space<vmem>>) attributes {dimension_semantics = [#tpu.dimension_semantics<parallel>], iteration_bounds = array<i64: 2>, scalar_prefetch = 0 : i64, scratch_operands = 0 : i64, tpu.core_type = #tpu.core_type<tc>, window_params = [{transform_indices = @transform_0, window_bounds = array<i64: 64, 216>}, {pipeline_mode = #tpu.pipeline_mode<synchronous>, transform_indices = @transform_1, window_bounds = array<i64: 216, 16>}, {pipeline_mode = #tpu.pipeline_mode<synchronous>, transform_indices = @transform_2, window_bounds = array<i64: 1, 16>}, {transform_indices = @transform_3, window_bounds = array<i64: 64, 16>}, {transform_indices = @transform_4, window_bounds = array<i64: 1, 1, 16>}, {transform_indices = @transform_5, window_bounds = array<i64: 1, 1, 16>}]} {
    %c0 = arith.constant 0 : index
    %c0_0 = arith.constant 0 : index
    %0 = vector.load %arg1[%c0, %c0_0] : memref<64x216xbf16, #tpu.memory_space<vmem>>, vector<64x216xbf16>
    %c0_1 = arith.constant 0 : index
    %c0_2 = arith.constant 0 : index
    %1 = vector.load %arg2[%c0_1, %c0_2] : memref<216x16xbf16, #tpu.memory_space<vmem>>, vector<216x16xbf16>
    %cst = arith.constant dense<0.000000e+00> : vector<64x16xf32>
    %2 = tpu.matmul %0, %1, %cst {dimension_numbers = #tpu.dot_dimension_numbers<[1], [0], [0], [1], [0, 0, 1, 1], [], []>} : vector<64x216xbf16>, vector<216x16xbf16>, vector<64x16xf32> -> vector<64x16xf32>
    %c0_3 = arith.constant 0 : index
    %c0_4 = arith.constant 0 : index
    %3 = vector.load %arg3[%c0_3, %c0_4] : memref<1x16xf32, #tpu.memory_space<vmem>>, vector<1x16xf32>
    %4 = vector.broadcast %3 : vector<1x16xf32> to vector<64x16xf32>
    %5 = arith.addf %2, %4 : vector<64x16xf32>
    %6 = arith.truncf %5 : vector<64x16xf32> to vector<64x16xbf16>
    %c0_5 = arith.constant 0 : index
    %c0_6 = arith.constant 0 : index
    %7 = vector.load %arg4[%c0_5, %c0_6] : memref<64x16xbf16, #tpu.memory_space<vmem>>, vector<64x16xbf16>
    tpu.vector_store %arg4[%c0_5, %c0_6], %6 {strides = array<i32>} : memref<64x16xbf16, #tpu.memory_space<vmem>>, vector<64x16xbf16>,
    %cst_7 = arith.constant dense<0.000000e+00> : vector<16xf32>
    %8 = vector.multi_reduction <add>, %5, %cst_7 [0] : vector<64x16xf32> to vector<16xf32>
    %9 = vector.shape_cast %8 : vector<16xf32> to vector<1x16xf32>
    %10 = vector.shape_cast %9 : vector<1x16xf32> to vector<1x1x16xf32>
    %c0_8 = arith.constant 0 : index
    %c0_9 = arith.constant 0 : index
    %c0_10 = arith.constant 0 : index
    %11 = vector.load %arg5[%c0_8, %c0_9, %c0_10] : memref<1x1x16xf32, #tpu.memory_space<vmem>>, vector<1x1x16xf32>
    tpu.vector_store %arg5[%c0_8, %c0_9, %c0_10], %10 {strides = array<i32>} : memref<1x1x16xf32, #tpu.memory_space<vmem>>, vector<1x1x16xf32>,
    %12 = arith.mulf %5, %5 : vector<64x16xf32>
    %cst_11 = arith.constant dense<0.000000e+00> : vector<16xf32>
    %13 = vector.multi_reduction <add>, %12, %cst_11 [0] : vector<64x16xf32> to vector<16xf32>
    %14 = vector.shape_cast %13 : vector<16xf32> to vector<1x16xf32>
    %15 = vector.shape_cast %14 : vector<1x16xf32> to vector<1x1x16xf32>
    %c0_12 = arith.constant 0 : index
    %c0_13 = arith.constant 0 : index
    %c0_14 = arith.constant 0 : index
    %16 = vector.load %arg6[%c0_12, %c0_13, %c0_14] : memref<1x1x16xf32, #tpu.memory_space<vmem>>, vector<1x1x16xf32>
    tpu.vector_store %arg6[%c0_12, %c0_13, %c0_14], %15 {strides = array<i32>} : memref<1x1x16xf32, #tpu.memory_space<vmem>>, vector<1x1x16xf32>,
    return
  }
  func.func @transform_0(%arg0: i32) -> (i32, i32) {
    %c0_i32 = arith.constant 0 : i32
    %c0_i32_0 = arith.constant 0 : i32
    return %arg0, %c0_i32 : i32, i32
  }
  func.func @transform_1(%arg0: i32) -> (i32, i32) {
    %c0_i32 = arith.constant 0 : i32
    %c0_i32_0 = arith.constant 0 : i32
    %c0_i32_1 = arith.constant 0 : i32
    return %c0_i32, %c0_i32_0 : i32, i32
  }
  func.func @transform_2(%arg0: i32) -> (i32, i32) {
    %c0_i32 = arith.constant 0 : i32
    %c0_i32_0 = arith.constant 0 : i32
    %c0_i32_1 = arith.constant 0 : i32
    return %c0_i32, %c0_i32_0 : i32, i32
  }
  func.func @transform_3(%arg0: i32) -> (i32, i32) {
    %c0_i32 = arith.constant 0 : i32
    %c0_i32_0 = arith.constant 0 : i32
    return %arg0, %c0_i32 : i32, i32
  }
  func.func @transform_4(%arg0: i32) -> (i32, i32, i32) {
    %c0_i32 = arith.constant 0 : i32
    %c0_i32_0 = arith.constant 0 : i32
    %c0_i32_1 = arith.constant 0 : i32
    return %arg0, %c0_i32, %c0_i32_0 : i32, i32, i32
  }
  func.func @transform_5(%arg0: i32) -> (i32, i32, i32) {
    %c0_i32 = arith.constant 0 : i32
    %c0_i32_0 = arith.constant 0 : i32
    %c0_i32_1 = arith.constant 0 : i32
    return %arg0, %c0_i32, %c0_i32_0 : i32, i32, i32
  }
}

module attributes {stable_mosaic.version = 11 : i64} {
  func.func @kern(%arg0: i32, %arg1: memref<8x128xbf16, #tpu.memory_space<vmem>>, %arg2: memref<1x128xf32, #tpu.memory_space<vmem>>, %arg3: memref<1x128xf32, #tpu.memory_space<vmem>>, %arg4: memref<8x128xbf16, #tpu.memory_space<vmem>>) attributes {dimension_semantics = [#tpu.dimension_semantics<parallel>], iteration_bounds = array<i64: 2>, scalar_prefetch = 0 : i64, scratch_operands = 0 : i64, tpu.core_type = #tpu.core_type<tc>, window_params = [{transform_indices = @transform_0, window_bounds = array<i64: 8, 128>}, {pipeline_mode = #tpu.pipeline_mode<synchronous>, transform_indices = @transform_1, window_bounds = array<i64: 1, 128>}, {pipeline_mode = #tpu.pipeline_mode<synchronous>, transform_indices = @transform_2, window_bounds = array<i64: 1, 128>}, {transform_indices = @transform_3, window_bounds = array<i64: 8, 128>}]} {
    %c0 = arith.constant 0 : index
    %c0_0 = arith.constant 0 : index
    %0 = vector.load %arg1[%c0, %c0_0] : memref<8x128xbf16, #tpu.memory_space<vmem>>, vector<8x128xbf16>
    %1 = arith.extf %0 : vector<8x128xbf16> to vector<8x128xf32>
    %c0_1 = arith.constant 0 : index
    %c0_2 = arith.constant 0 : index
    %2 = vector.load %arg2[%c0_1, %c0_2] : memref<1x128xf32, #tpu.memory_space<vmem>>, vector<1x128xf32>
    %3 = vector.broadcast %2 : vector<1x128xf32> to vector<8x128xf32>
    %4 = arith.mulf %1, %3 : vector<8x128xf32>
    %c0_3 = arith.constant 0 : index
    %c0_4 = arith.constant 0 : index
    %5 = vector.load %arg3[%c0_3, %c0_4] : memref<1x128xf32, #tpu.memory_space<vmem>>, vector<1x128xf32>
    %6 = vector.broadcast %5 : vector<1x128xf32> to vector<8x128xf32>
    %7 = arith.addf %4, %6 : vector<8x128xf32>
    %cst = arith.constant 0.000000e+00 : f32
    %8 = vector.broadcast %cst : f32 to vector<8x128xf32>
    %9 = arith.maximumf %7, %8 : vector<8x128xf32>
    %10 = arith.truncf %9 : vector<8x128xf32> to vector<8x128xbf16>
    %c0_5 = arith.constant 0 : index
    %c0_6 = arith.constant 0 : index
    %11 = vector.load %arg4[%c0_5, %c0_6] : memref<8x128xbf16, #tpu.memory_space<vmem>>, vector<8x128xbf16>
    tpu.vector_store %arg4[%c0_5, %c0_6], %10 {strides = array<i32>} : memref<8x128xbf16, #tpu.memory_space<vmem>>, vector<8x128xbf16>,
    return
  }
  func.func @transform_0(%arg0: i32) -> (i32, i32) {
    %c0_i32 = arith.constant 0 : i32
    %c0_i32_0 = arith.constant 0 : i32
    return %arg0, %c0_i32 : i32, i32
  }
  func.func @transform_1(%arg0: i32) -> (i32, i32) {
    %c0_i32 = arith.constant 0 : i32
    %c0_i32_0 = arith.constant 0 : i32
    %c0_i32_1 = arith.constant 0 : i32
    return %c0_i32, %c0_i32_0 : i32, i32
  }
  func.func @transform_2(%arg0: i32) -> (i32, i32) {
    %c0_i32 = arith.constant 0 : i32
    %c0_i32_0 = arith.constant 0 : i32
    %c0_i32_1 = arith.constant 0 : i32
    return %c0_i32, %c0_i32_0 : i32, i32
  }
  func.func @transform_3(%arg0: i32) -> (i32, i32) {
    %c0_i32 = arith.constant 0 : i32
    %c0_i32_0 = arith.constant 0 : i32
    return %arg0, %c0_i32 : i32, i32
  }
}

module attributes {stable_mosaic.version = 11 : i64} {
  func.func @_matmul_stats_kernel(%arg0: i32, %arg1: memref<64x432xbf16, #tpu.memory_space<vmem>>, %arg2: memref<432x16xbf16, #tpu.memory_space<vmem>>, %arg3: memref<1x16xf32, #tpu.memory_space<vmem>>, %arg4: memref<64x16xbf16, #tpu.memory_space<vmem>>, %arg5: memref<1x1x16xf32, #tpu.memory_space<vmem>>, %arg6: memref<1x1x16xf32, #tpu.memory_space<vmem>>) attributes {dimension_semantics = [#tpu.dimension_semantics<parallel>], iteration_bounds = array<i64: 2>, scalar_prefetch = 0 : i64, scratch_operands = 0 : i64, tpu.core_type = #tpu.core_type<tc>, window_params = [{transform_indices = @transform_0, window_bounds = array<i64: 64, 432>}, {pipeline_mode = #tpu.pipeline_mode<synchronous>, transform_indices = @transform_1, window_bounds = array<i64: 432, 16>}, {pipeline_mode = #tpu.pipeline_mode<synchronous>, transform_indices = @transform_2, window_bounds = array<i64: 1, 16>}, {transform_indices = @transform_3, window_bounds = array<i64: 64, 16>}, {transform_indices = @transform_4, window_bounds = array<i64: 1, 1, 16>}, {transform_indices = @transform_5, window_bounds = array<i64: 1, 1, 16>}]} {
    %c0 = arith.constant 0 : index
    %c0_0 = arith.constant 0 : index
    %0 = vector.load %arg1[%c0, %c0_0] : memref<64x432xbf16, #tpu.memory_space<vmem>>, vector<64x432xbf16>
    %c0_1 = arith.constant 0 : index
    %c0_2 = arith.constant 0 : index
    %1 = vector.load %arg2[%c0_1, %c0_2] : memref<432x16xbf16, #tpu.memory_space<vmem>>, vector<432x16xbf16>
    %cst = arith.constant dense<0.000000e+00> : vector<64x16xf32>
    %2 = tpu.matmul %0, %1, %cst {dimension_numbers = #tpu.dot_dimension_numbers<[1], [0], [0], [1], [0, 0, 1, 1], [], []>} : vector<64x432xbf16>, vector<432x16xbf16>, vector<64x16xf32> -> vector<64x16xf32>
    %c0_3 = arith.constant 0 : index
    %c0_4 = arith.constant 0 : index
    %3 = vector.load %arg3[%c0_3, %c0_4] : memref<1x16xf32, #tpu.memory_space<vmem>>, vector<1x16xf32>
    %4 = vector.broadcast %3 : vector<1x16xf32> to vector<64x16xf32>
    %5 = arith.addf %2, %4 : vector<64x16xf32>
    %6 = arith.truncf %5 : vector<64x16xf32> to vector<64x16xbf16>
    %c0_5 = arith.constant 0 : index
    %c0_6 = arith.constant 0 : index
    %7 = vector.load %arg4[%c0_5, %c0_6] : memref<64x16xbf16, #tpu.memory_space<vmem>>, vector<64x16xbf16>
    tpu.vector_store %arg4[%c0_5, %c0_6], %6 {strides = array<i32>} : memref<64x16xbf16, #tpu.memory_space<vmem>>, vector<64x16xbf16>,
    %cst_7 = arith.constant dense<0.000000e+00> : vector<16xf32>
    %8 = vector.multi_reduction <add>, %5, %cst_7 [0] : vector<64x16xf32> to vector<16xf32>
    %9 = vector.shape_cast %8 : vector<16xf32> to vector<1x16xf32>
    %10 = vector.shape_cast %9 : vector<1x16xf32> to vector<1x1x16xf32>
    %c0_8 = arith.constant 0 : index
    %c0_9 = arith.constant 0 : index
    %c0_10 = arith.constant 0 : index
    %11 = vector.load %arg5[%c0_8, %c0_9, %c0_10] : memref<1x1x16xf32, #tpu.memory_space<vmem>>, vector<1x1x16xf32>
    tpu.vector_store %arg5[%c0_8, %c0_9, %c0_10], %10 {strides = array<i32>} : memref<1x1x16xf32, #tpu.memory_space<vmem>>, vector<1x1x16xf32>,
    %12 = arith.mulf %5, %5 : vector<64x16xf32>
    %cst_11 = arith.constant dense<0.000000e+00> : vector<16xf32>
    %13 = vector.multi_reduction <add>, %12, %cst_11 [0] : vector<64x16xf32> to vector<16xf32>
    %14 = vector.shape_cast %13 : vector<16xf32> to vector<1x16xf32>
    %15 = vector.shape_cast %14 : vector<1x16xf32> to vector<1x1x16xf32>
    %c0_12 = arith.constant 0 : index
    %c0_13 = arith.constant 0 : index
    %c0_14 = arith.constant 0 : index
    %16 = vector.load %arg6[%c0_12, %c0_13, %c0_14] : memref<1x1x16xf32, #tpu.memory_space<vmem>>, vector<1x1x16xf32>
    tpu.vector_store %arg6[%c0_12, %c0_13, %c0_14], %15 {strides = array<i32>} : memref<1x1x16xf32, #tpu.memory_space<vmem>>, vector<1x1x16xf32>,
    return
  }
  func.func @transform_0(%arg0: i32) -> (i32, i32) {
    %c0_i32 = arith.constant 0 : i32
    %c0_i32_0 = arith.constant 0 : i32
    return %arg0, %c0_i32 : i32, i32
  }
  func.func @transform_1(%arg0: i32) -> (i32, i32) {
    %c0_i32 = arith.constant 0 : i32
    %c0_i32_0 = arith.constant 0 : i32
    %c0_i32_1 = arith.constant 0 : i32
    return %c0_i32, %c0_i32_0 : i32, i32
  }
  func.func @transform_2(%arg0: i32) -> (i32, i32) {
    %c0_i32 = arith.constant 0 : i32
    %c0_i32_0 = arith.constant 0 : i32
    %c0_i32_1 = arith.constant 0 : i32
    return %c0_i32, %c0_i32_0 : i32, i32
  }
  func.func @transform_3(%arg0: i32) -> (i32, i32) {
    %c0_i32 = arith.constant 0 : i32
    %c0_i32_0 = arith.constant 0 : i32
    return %arg0, %c0_i32 : i32, i32
  }
  func.func @transform_4(%arg0: i32) -> (i32, i32, i32) {
    %c0_i32 = arith.constant 0 : i32
    %c0_i32_0 = arith.constant 0 : i32
    %c0_i32_1 = arith.constant 0 : i32
    return %arg0, %c0_i32, %c0_i32_0 : i32, i32, i32
  }
  func.func @transform_5(%arg0: i32) -> (i32, i32, i32) {
    %c0_i32 = arith.constant 0 : i32
    %c0_i32_0 = arith.constant 0 : i32
    %c0_i32_1 = arith.constant 0 : i32
    return %arg0, %c0_i32, %c0_i32_0 : i32, i32, i32
  }
}

module attributes {stable_mosaic.version = 11 : i64} {
  func.func @kern(%arg0: i32, %arg1: memref<8x128xbf16, #tpu.memory_space<vmem>>, %arg2: memref<1x128xf32, #tpu.memory_space<vmem>>, %arg3: memref<1x128xf32, #tpu.memory_space<vmem>>, %arg4: memref<8x128xbf16, #tpu.memory_space<vmem>>, %arg5: memref<1x128xf32, #tpu.memory_space<vmem>>, %arg6: memref<1x128xf32, #tpu.memory_space<vmem>>, %arg7: memref<8x128xbf16, #tpu.memory_space<vmem>>) attributes {dimension_semantics = [#tpu.dimension_semantics<parallel>], iteration_bounds = array<i64: 2>, scalar_prefetch = 0 : i64, scratch_operands = 0 : i64, tpu.core_type = #tpu.core_type<tc>, window_params = [{transform_indices = @transform_0, window_bounds = array<i64: 8, 128>}, {pipeline_mode = #tpu.pipeline_mode<synchronous>, transform_indices = @transform_1, window_bounds = array<i64: 1, 128>}, {pipeline_mode = #tpu.pipeline_mode<synchronous>, transform_indices = @transform_2, window_bounds = array<i64: 1, 128>}, {transform_indices = @transform_3, window_bounds = array<i64: 8, 128>}, {pipeline_mode = #tpu.pipeline_mode<synchronous>, transform_indices = @transform_4, window_bounds = array<i64: 1, 128>}, {pipeline_mode = #tpu.pipeline_mode<synchronous>, transform_indices = @transform_5, window_bounds = array<i64: 1, 128>}, {transform_indices = @transform_6, window_bounds = array<i64: 8, 128>}]} {
    %c0 = arith.constant 0 : index
    %c0_0 = arith.constant 0 : index
    %0 = vector.load %arg1[%c0, %c0_0] : memref<8x128xbf16, #tpu.memory_space<vmem>>, vector<8x128xbf16>
    %1 = arith.extf %0 : vector<8x128xbf16> to vector<8x128xf32>
    %c0_1 = arith.constant 0 : index
    %c0_2 = arith.constant 0 : index
    %2 = vector.load %arg2[%c0_1, %c0_2] : memref<1x128xf32, #tpu.memory_space<vmem>>, vector<1x128xf32>
    %3 = vector.broadcast %2 : vector<1x128xf32> to vector<8x128xf32>
    %4 = arith.mulf %1, %3 : vector<8x128xf32>
    %c0_3 = arith.constant 0 : index
    %c0_4 = arith.constant 0 : index
    %5 = vector.load %arg3[%c0_3, %c0_4] : memref<1x128xf32, #tpu.memory_space<vmem>>, vector<1x128xf32>
    %6 = vector.broadcast %5 : vector<1x128xf32> to vector<8x128xf32>
    %7 = arith.addf %4, %6 : vector<8x128xf32>
    %c0_5 = arith.constant 0 : index
    %c0_6 = arith.constant 0 : index
    %8 = vector.load %arg4[%c0_5, %c0_6] : memref<8x128xbf16, #tpu.memory_space<vmem>>, vector<8x128xbf16>
    %9 = arith.extf %8 : vector<8x128xbf16> to vector<8x128xf32>
    %c0_7 = arith.constant 0 : index
    %c0_8 = arith.constant 0 : index
    %10 = vector.load %arg5[%c0_7, %c0_8] : memref<1x128xf32, #tpu.memory_space<vmem>>, vector<1x128xf32>
    %11 = vector.broadcast %10 : vector<1x128xf32> to vector<8x128xf32>
    %12 = arith.mulf %9, %11 : vector<8x128xf32>
    %13 = arith.addf %7, %12 : vector<8x128xf32>
    %c0_9 = arith.constant 0 : index
    %c0_10 = arith.constant 0 : index
    %14 = vector.load %arg6[%c0_9, %c0_10] : memref<1x128xf32, #tpu.memory_space<vmem>>, vector<1x128xf32>
    %15 = vector.broadcast %14 : vector<1x128xf32> to vector<8x128xf32>
    %16 = arith.addf %13, %15 : vector<8x128xf32>
    %cst = arith.constant 0.000000e+00 : f32
    %17 = vector.broadcast %cst : f32 to vector<8x128xf32>
    %18 = arith.maximumf %16, %17 : vector<8x128xf32>
    %19 = arith.truncf %18 : vector<8x128xf32> to vector<8x128xbf16>
    %c0_11 = arith.constant 0 : index
    %c0_12 = arith.constant 0 : index
    %20 = vector.load %arg7[%c0_11, %c0_12] : memref<8x128xbf16, #tpu.memory_space<vmem>>, vector<8x128xbf16>
    tpu.vector_store %arg7[%c0_11, %c0_12], %19 {strides = array<i32>} : memref<8x128xbf16, #tpu.memory_space<vmem>>, vector<8x128xbf16>,
    return
  }
  func.func @transform_0(%arg0: i32) -> (i32, i32) {
    %c0_i32 = arith.constant 0 : i32
    %c0_i32_0 = arith.constant 0 : i32
    return %arg0, %c0_i32 : i32, i32
  }
  func.func @transform_1(%arg0: i32) -> (i32, i32) {
    %c0_i32 = arith.constant 0 : i32
    %c0_i32_0 = arith.constant 0 : i32
    %c0_i32_1 = arith.constant 0 : i32
    return %c0_i32, %c0_i32_0 : i32, i32
  }
  func.func @transform_2(%arg0: i32) -> (i32, i32) {
    %c0_i32 = arith.constant 0 : i32
    %c0_i32_0 = arith.constant 0 : i32
    %c0_i32_1 = arith.constant 0 : i32
    return %c0_i32, %c0_i32_0 : i32, i32
  }
  func.func @transform_3(%arg0: i32) -> (i32, i32) {
    %c0_i32 = arith.constant 0 : i32
    %c0_i32_0 = arith.constant 0 : i32
    return %arg0, %c0_i32 : i32, i32
  }
  func.func @transform_4(%arg0: i32) -> (i32, i32) {
    %c0_i32 = arith.constant 0 : i32
    %c0_i32_0 = arith.constant 0 : i32
    %c0_i32_1 = arith.constant 0 : i32
    return %c0_i32, %c0_i32_0 : i32, i32
  }
  func.func @transform_5(%arg0: i32) -> (i32, i32) {
    %c0_i32 = arith.constant 0 : i32
    %c0_i32_0 = arith.constant 0 : i32
    %c0_i32_1 = arith.constant 0 : i32
    return %c0_i32, %c0_i32_0 : i32, i32
  }
  func.func @transform_6(%arg0: i32) -> (i32, i32) {
    %c0_i32 = arith.constant 0 : i32
    %c0_i32_0 = arith.constant 0 : i32
    return %arg0, %c0_i32 : i32, i32
  }
}

module attributes {stable_mosaic.version = 11 : i64} {
  func.func @kern(%arg0: i32, %arg1: memref<8x128xbf16, #tpu.memory_space<vmem>>, %arg2: memref<1x128xf32, #tpu.memory_space<vmem>>, %arg3: memref<1x128xf32, #tpu.memory_space<vmem>>, %arg4: memref<8x128xbf16, #tpu.memory_space<vmem>>, %arg5: memref<8x128xbf16, #tpu.memory_space<vmem>>) attributes {dimension_semantics = [#tpu.dimension_semantics<parallel>], iteration_bounds = array<i64: 2>, scalar_prefetch = 0 : i64, scratch_operands = 0 : i64, tpu.core_type = #tpu.core_type<tc>, window_params = [{transform_indices = @transform_0, window_bounds = array<i64: 8, 128>}, {pipeline_mode = #tpu.pipeline_mode<synchronous>, transform_indices = @transform_1, window_bounds = array<i64: 1, 128>}, {pipeline_mode = #tpu.pipeline_mode<synchronous>, transform_indices = @transform_2, window_bounds = array<i64: 1, 128>}, {transform_indices = @transform_3, window_bounds = array<i64: 8, 128>}, {transform_indices = @transform_4, window_bounds = array<i64: 8, 128>}]} {
    %c0 = arith.constant 0 : index
    %c0_0 = arith.constant 0 : index
    %0 = vector.load %arg1[%c0, %c0_0] : memref<8x128xbf16, #tpu.memory_space<vmem>>, vector<8x128xbf16>
    %1 = arith.extf %0 : vector<8x128xbf16> to vector<8x128xf32>
    %c0_1 = arith.constant 0 : index
    %c0_2 = arith.constant 0 : index
    %2 = vector.load %arg2[%c0_1, %c0_2] : memref<1x128xf32, #tpu.memory_space<vmem>>, vector<1x128xf32>
    %3 = vector.broadcast %2 : vector<1x128xf32> to vector<8x128xf32>
    %4 = arith.mulf %1, %3 : vector<8x128xf32>
    %c0_3 = arith.constant 0 : index
    %c0_4 = arith.constant 0 : index
    %5 = vector.load %arg3[%c0_3, %c0_4] : memref<1x128xf32, #tpu.memory_space<vmem>>, vector<1x128xf32>
    %6 = vector.broadcast %5 : vector<1x128xf32> to vector<8x128xf32>
    %7 = arith.addf %4, %6 : vector<8x128xf32>
    %c0_5 = arith.constant 0 : index
    %c0_6 = arith.constant 0 : index
    %8 = vector.load %arg4[%c0_5, %c0_6] : memref<8x128xbf16, #tpu.memory_space<vmem>>, vector<8x128xbf16>
    %9 = arith.extf %8 : vector<8x128xbf16> to vector<8x128xf32>
    %10 = arith.addf %7, %9 : vector<8x128xf32>
    %cst = arith.constant 0.000000e+00 : f32
    %11 = vector.broadcast %cst : f32 to vector<8x128xf32>
    %12 = arith.maximumf %10, %11 : vector<8x128xf32>
    %13 = arith.truncf %12 : vector<8x128xf32> to vector<8x128xbf16>
    %c0_7 = arith.constant 0 : index
    %c0_8 = arith.constant 0 : index
    %14 = vector.load %arg5[%c0_7, %c0_8] : memref<8x128xbf16, #tpu.memory_space<vmem>>, vector<8x128xbf16>
    tpu.vector_store %arg5[%c0_7, %c0_8], %13 {strides = array<i32>} : memref<8x128xbf16, #tpu.memory_space<vmem>>, vector<8x128xbf16>,
    return
  }
  func.func @transform_0(%arg0: i32) -> (i32, i32) {
    %c0_i32 = arith.constant 0 : i32
    %c0_i32_0 = arith.constant 0 : i32
    return %arg0, %c0_i32 : i32, i32
  }
  func.func @transform_1(%arg0: i32) -> (i32, i32) {
    %c0_i32 = arith.constant 0 : i32
    %c0_i32_0 = arith.constant 0 : i32
    %c0_i32_1 = arith.constant 0 : i32
    return %c0_i32, %c0_i32_0 : i32, i32
  }
  func.func @transform_2(%arg0: i32) -> (i32, i32) {
    %c0_i32 = arith.constant 0 : i32
    %c0_i32_0 = arith.constant 0 : i32
    %c0_i32_1 = arith.constant 0 : i32
    return %c0_i32, %c0_i32_0 : i32, i32
  }
  func.func @transform_3(%arg0: i32) -> (i32, i32) {
    %c0_i32 = arith.constant 0 : i32
    %c0_i32_0 = arith.constant 0 : i32
    return %arg0, %c0_i32 : i32, i32
  }
  func.func @transform_4(%arg0: i32) -> (i32, i32) {
    %c0_i32 = arith.constant 0 : i32
    %c0_i32_0 = arith.constant 0 : i32
    return %arg0, %c0_i32 : i32, i32
  }
}

module attributes {stable_mosaic.version = 11 : i64} {
  func.func @_matmul_stats_kernel(%arg0: i32, %arg1: memref<8x16xbf16, #tpu.memory_space<vmem>>, %arg2: memref<16x32xbf16, #tpu.memory_space<vmem>>, %arg3: memref<1x32xf32, #tpu.memory_space<vmem>>, %arg4: memref<8x32xbf16, #tpu.memory_space<vmem>>, %arg5: memref<1x1x32xf32, #tpu.memory_space<vmem>>, %arg6: memref<1x1x32xf32, #tpu.memory_space<vmem>>) attributes {dimension_semantics = [#tpu.dimension_semantics<parallel>], iteration_bounds = array<i64: 2>, scalar_prefetch = 0 : i64, scratch_operands = 0 : i64, tpu.core_type = #tpu.core_type<tc>, window_params = [{transform_indices = @transform_0, window_bounds = array<i64: 8, 16>}, {pipeline_mode = #tpu.pipeline_mode<synchronous>, transform_indices = @transform_1, window_bounds = array<i64: 16, 32>}, {pipeline_mode = #tpu.pipeline_mode<synchronous>, transform_indices = @transform_2, window_bounds = array<i64: 1, 32>}, {transform_indices = @transform_3, window_bounds = array<i64: 8, 32>}, {transform_indices = @transform_4, window_bounds = array<i64: 1, 1, 32>}, {transform_indices = @transform_5, window_bounds = array<i64: 1, 1, 32>}]} {
    %c0 = arith.constant 0 : index
    %c0_0 = arith.constant 0 : index
    %0 = vector.load %arg1[%c0, %c0_0] : memref<8x16xbf16, #tpu.memory_space<vmem>>, vector<8x16xbf16>
    %c0_1 = arith.constant 0 : index
    %c0_2 = arith.constant 0 : index
    %1 = vector.load %arg2[%c0_1, %c0_2] : memref<16x32xbf16, #tpu.memory_space<vmem>>, vector<16x32xbf16>
    %cst = arith.constant dense<0.000000e+00> : vector<8x32xf32>
    %2 = tpu.matmul %0, %1, %cst {dimension_numbers = #tpu.dot_dimension_numbers<[1], [0], [0], [1], [0, 0, 1, 1], [], []>} : vector<8x16xbf16>, vector<16x32xbf16>, vector<8x32xf32> -> vector<8x32xf32>
    %c0_3 = arith.constant 0 : index
    %c0_4 = arith.constant 0 : index
    %3 = vector.load %arg3[%c0_3, %c0_4] : memref<1x32xf32, #tpu.memory_space<vmem>>, vector<1x32xf32>
    %4 = vector.broadcast %3 : vector<1x32xf32> to vector<8x32xf32>
    %5 = arith.addf %2, %4 : vector<8x32xf32>
    %6 = arith.truncf %5 : vector<8x32xf32> to vector<8x32xbf16>
    %c0_5 = arith.constant 0 : index
    %c0_6 = arith.constant 0 : index
    %7 = vector.load %arg4[%c0_5, %c0_6] : memref<8x32xbf16, #tpu.memory_space<vmem>>, vector<8x32xbf16>
    tpu.vector_store %arg4[%c0_5, %c0_6], %6 {strides = array<i32>} : memref<8x32xbf16, #tpu.memory_space<vmem>>, vector<8x32xbf16>,
    %cst_7 = arith.constant dense<0.000000e+00> : vector<32xf32>
    %8 = vector.multi_reduction <add>, %5, %cst_7 [0] : vector<8x32xf32> to vector<32xf32>
    %9 = vector.shape_cast %8 : vector<32xf32> to vector<1x32xf32>
    %10 = vector.shape_cast %9 : vector<1x32xf32> to vector<1x1x32xf32>
    %c0_8 = arith.constant 0 : index
    %c0_9 = arith.constant 0 : index
    %c0_10 = arith.constant 0 : index
    %11 = vector.load %arg5[%c0_8, %c0_9, %c0_10] : memref<1x1x32xf32, #tpu.memory_space<vmem>>, vector<1x1x32xf32>
    tpu.vector_store %arg5[%c0_8, %c0_9, %c0_10], %10 {strides = array<i32>} : memref<1x1x32xf32, #tpu.memory_space<vmem>>, vector<1x1x32xf32>,
    %12 = arith.mulf %5, %5 : vector<8x32xf32>
    %cst_11 = arith.constant dense<0.000000e+00> : vector<32xf32>
    %13 = vector.multi_reduction <add>, %12, %cst_11 [0] : vector<8x32xf32> to vector<32xf32>
    %14 = vector.shape_cast %13 : vector<32xf32> to vector<1x32xf32>
    %15 = vector.shape_cast %14 : vector<1x32xf32> to vector<1x1x32xf32>
    %c0_12 = arith.constant 0 : index
    %c0_13 = arith.constant 0 : index
    %c0_14 = arith.constant 0 : index
    %16 = vector.load %arg6[%c0_12, %c0_13, %c0_14] : memref<1x1x32xf32, #tpu.memory_space<vmem>>, vector<1x1x32xf32>
    tpu.vector_store %arg6[%c0_12, %c0_13, %c0_14], %15 {strides = array<i32>} : memref<1x1x32xf32, #tpu.memory_space<vmem>>, vector<1x1x32xf32>,
    return
  }
  func.func @transform_0(%arg0: i32) -> (i32, i32) {
    %c0_i32 = arith.constant 0 : i32
    %c0_i32_0 = arith.constant 0 : i32
    return %arg0, %c0_i32 : i32, i32
  }
  func.func @transform_1(%arg0: i32) -> (i32, i32) {
    %c0_i32 = arith.constant 0 : i32
    %c0_i32_0 = arith.constant 0 : i32
    %c0_i32_1 = arith.constant 0 : i32
    return %c0_i32, %c0_i32_0 : i32, i32
  }
  func.func @transform_2(%arg0: i32) -> (i32, i32) {
    %c0_i32 = arith.constant 0 : i32
    %c0_i32_0 = arith.constant 0 : i32
    %c0_i32_1 = arith.constant 0 : i32
    return %c0_i32, %c0_i32_0 : i32, i32
  }
  func.func @transform_3(%arg0: i32) -> (i32, i32) {
    %c0_i32 = arith.constant 0 : i32
    %c0_i32_0 = arith.constant 0 : i32
    return %arg0, %c0_i32 : i32, i32
  }
  func.func @transform_4(%arg0: i32) -> (i32, i32, i32) {
    %c0_i32 = arith.constant 0 : i32
    %c0_i32_0 = arith.constant 0 : i32
    %c0_i32_1 = arith.constant 0 : i32
    return %arg0, %c0_i32, %c0_i32_0 : i32, i32, i32
  }
  func.func @transform_5(%arg0: i32) -> (i32, i32, i32) {
    %c0_i32 = arith.constant 0 : i32
    %c0_i32_0 = arith.constant 0 : i32
    %c0_i32_1 = arith.constant 0 : i32
    return %arg0, %c0_i32, %c0_i32_0 : i32, i32, i32
  }
}

module attributes {stable_mosaic.version = 11 : i64} {
  func.func @_matmul_stats_kernel(%arg0: i32, %arg1: memref<8x432xbf16, #tpu.memory_space<vmem>>, %arg2: memref<432x32xbf16, #tpu.memory_space<vmem>>, %arg3: memref<1x32xf32, #tpu.memory_space<vmem>>, %arg4: memref<8x32xbf16, #tpu.memory_space<vmem>>, %arg5: memref<1x1x32xf32, #tpu.memory_space<vmem>>, %arg6: memref<1x1x32xf32, #tpu.memory_space<vmem>>) attributes {dimension_semantics = [#tpu.dimension_semantics<parallel>], iteration_bounds = array<i64: 2>, scalar_prefetch = 0 : i64, scratch_operands = 0 : i64, tpu.core_type = #tpu.core_type<tc>, window_params = [{transform_indices = @transform_0, window_bounds = array<i64: 8, 432>}, {pipeline_mode = #tpu.pipeline_mode<synchronous>, transform_indices = @transform_1, window_bounds = array<i64: 432, 32>}, {pipeline_mode = #tpu.pipeline_mode<synchronous>, transform_indices = @transform_2, window_bounds = array<i64: 1, 32>}, {transform_indices = @transform_3, window_bounds = array<i64: 8, 32>}, {transform_indices = @transform_4, window_bounds = array<i64: 1, 1, 32>}, {transform_indices = @transform_5, window_bounds = array<i64: 1, 1, 32>}]} {
    %c0 = arith.constant 0 : index
    %c0_0 = arith.constant 0 : index
    %0 = vector.load %arg1[%c0, %c0_0] : memref<8x432xbf16, #tpu.memory_space<vmem>>, vector<8x432xbf16>
    %c0_1 = arith.constant 0 : index
    %c0_2 = arith.constant 0 : index
    %1 = vector.load %arg2[%c0_1, %c0_2] : memref<432x32xbf16, #tpu.memory_space<vmem>>, vector<432x32xbf16>
    %cst = arith.constant dense<0.000000e+00> : vector<8x32xf32>
    %2 = tpu.matmul %0, %1, %cst {dimension_numbers = #tpu.dot_dimension_numbers<[1], [0], [0], [1], [0, 0, 1, 1], [], []>} : vector<8x432xbf16>, vector<432x32xbf16>, vector<8x32xf32> -> vector<8x32xf32>
    %c0_3 = arith.constant 0 : index
    %c0_4 = arith.constant 0 : index
    %3 = vector.load %arg3[%c0_3, %c0_4] : memref<1x32xf32, #tpu.memory_space<vmem>>, vector<1x32xf32>
    %4 = vector.broadcast %3 : vector<1x32xf32> to vector<8x32xf32>
    %5 = arith.addf %2, %4 : vector<8x32xf32>
    %6 = arith.truncf %5 : vector<8x32xf32> to vector<8x32xbf16>
    %c0_5 = arith.constant 0 : index
    %c0_6 = arith.constant 0 : index
    %7 = vector.load %arg4[%c0_5, %c0_6] : memref<8x32xbf16, #tpu.memory_space<vmem>>, vector<8x32xbf16>
    tpu.vector_store %arg4[%c0_5, %c0_6], %6 {strides = array<i32>} : memref<8x32xbf16, #tpu.memory_space<vmem>>, vector<8x32xbf16>,
    %cst_7 = arith.constant dense<0.000000e+00> : vector<32xf32>
    %8 = vector.multi_reduction <add>, %5, %cst_7 [0] : vector<8x32xf32> to vector<32xf32>
    %9 = vector.shape_cast %8 : vector<32xf32> to vector<1x32xf32>
    %10 = vector.shape_cast %9 : vector<1x32xf32> to vector<1x1x32xf32>
    %c0_8 = arith.constant 0 : index
    %c0_9 = arith.constant 0 : index
    %c0_10 = arith.constant 0 : index
    %11 = vector.load %arg5[%c0_8, %c0_9, %c0_10] : memref<1x1x32xf32, #tpu.memory_space<vmem>>, vector<1x1x32xf32>
    tpu.vector_store %arg5[%c0_8, %c0_9, %c0_10], %10 {strides = array<i32>} : memref<1x1x32xf32, #tpu.memory_space<vmem>>, vector<1x1x32xf32>,
    %12 = arith.mulf %5, %5 : vector<8x32xf32>
    %cst_11 = arith.constant dense<0.000000e+00> : vector<32xf32>
    %13 = vector.multi_reduction <add>, %12, %cst_11 [0] : vector<8x32xf32> to vector<32xf32>
    %14 = vector.shape_cast %13 : vector<32xf32> to vector<1x32xf32>
    %15 = vector.shape_cast %14 : vector<1x32xf32> to vector<1x1x32xf32>
    %c0_12 = arith.constant 0 : index
    %c0_13 = arith.constant 0 : index
    %c0_14 = arith.constant 0 : index
    %16 = vector.load %arg6[%c0_12, %c0_13, %c0_14] : memref<1x1x32xf32, #tpu.memory_space<vmem>>, vector<1x1x32xf32>
    tpu.vector_store %arg6[%c0_12, %c0_13, %c0_14], %15 {strides = array<i32>} : memref<1x1x32xf32, #tpu.memory_space<vmem>>, vector<1x1x32xf32>,
    return
  }
  func.func @transform_0(%arg0: i32) -> (i32, i32) {
    %c0_i32 = arith.constant 0 : i32
    %c0_i32_0 = arith.constant 0 : i32
    return %arg0, %c0_i32 : i32, i32
  }
  func.func @transform_1(%arg0: i32) -> (i32, i32) {
    %c0_i32 = arith.constant 0 : i32
    %c0_i32_0 = arith.constant 0 : i32
    %c0_i32_1 = arith.constant 0 : i32
    return %c0_i32, %c0_i32_0 : i32, i32
  }
  func.func @transform_2(%arg0: i32) -> (i32, i32) {
    %c0_i32 = arith.constant 0 : i32
    %c0_i32_0 = arith.constant 0 : i32
    %c0_i32_1 = arith.constant 0 : i32
    return %c0_i32, %c0_i32_0 : i32, i32
  }
  func.func @transform_3(%arg0: i32) -> (i32, i32) {
    %c0_i32 = arith.constant 0 : i32
    %c0_i32_0 = arith.constant 0 : i32
    return %arg0, %c0_i32 : i32, i32
  }
  func.func @transform_4(%arg0: i32) -> (i32, i32, i32) {
    %c0_i32 = arith.constant 0 : i32
    %c0_i32_0 = arith.constant 0 : i32
    %c0_i32_1 = arith.constant 0 : i32
    return %arg0, %c0_i32, %c0_i32_0 : i32, i32, i32
  }
  func.func @transform_5(%arg0: i32) -> (i32, i32, i32) {
    %c0_i32 = arith.constant 0 : i32
    %c0_i32_0 = arith.constant 0 : i32
    %c0_i32_1 = arith.constant 0 : i32
    return %arg0, %c0_i32, %c0_i32_0 : i32, i32, i32
  }
}

module attributes {stable_mosaic.version = 11 : i64} {
  func.func @kern(%arg0: i32, %arg1: memref<4x128xbf16, #tpu.memory_space<vmem>>, %arg2: memref<1x128xf32, #tpu.memory_space<vmem>>, %arg3: memref<1x128xf32, #tpu.memory_space<vmem>>, %arg4: memref<4x128xbf16, #tpu.memory_space<vmem>>) attributes {dimension_semantics = [#tpu.dimension_semantics<parallel>], iteration_bounds = array<i64: 1>, scalar_prefetch = 0 : i64, scratch_operands = 0 : i64, tpu.core_type = #tpu.core_type<tc>, window_params = [{transform_indices = @transform_0, window_bounds = array<i64: 4, 128>}, {pipeline_mode = #tpu.pipeline_mode<synchronous>, transform_indices = @transform_1, window_bounds = array<i64: 1, 128>}, {pipeline_mode = #tpu.pipeline_mode<synchronous>, transform_indices = @transform_2, window_bounds = array<i64: 1, 128>}, {transform_indices = @transform_3, window_bounds = array<i64: 4, 128>}]} {
    %c0 = arith.constant 0 : index
    %c0_0 = arith.constant 0 : index
    %0 = vector.load %arg1[%c0, %c0_0] : memref<4x128xbf16, #tpu.memory_space<vmem>>, vector<4x128xbf16>
    %1 = arith.extf %0 : vector<4x128xbf16> to vector<4x128xf32>
    %c0_1 = arith.constant 0 : index
    %c0_2 = arith.constant 0 : index
    %2 = vector.load %arg2[%c0_1, %c0_2] : memref<1x128xf32, #tpu.memory_space<vmem>>, vector<1x128xf32>
    %3 = vector.broadcast %2 : vector<1x128xf32> to vector<4x128xf32>
    %4 = arith.mulf %1, %3 : vector<4x128xf32>
    %c0_3 = arith.constant 0 : index
    %c0_4 = arith.constant 0 : index
    %5 = vector.load %arg3[%c0_3, %c0_4] : memref<1x128xf32, #tpu.memory_space<vmem>>, vector<1x128xf32>
    %6 = vector.broadcast %5 : vector<1x128xf32> to vector<4x128xf32>
    %7 = arith.addf %4, %6 : vector<4x128xf32>
    %cst = arith.constant 0.000000e+00 : f32
    %8 = vector.broadcast %cst : f32 to vector<4x128xf32>
    %9 = arith.maximumf %7, %8 : vector<4x128xf32>
    %10 = arith.truncf %9 : vector<4x128xf32> to vector<4x128xbf16>
    %c0_5 = arith.constant 0 : index
    %c0_6 = arith.constant 0 : index
    %11 = vector.load %arg4[%c0_5, %c0_6] : memref<4x128xbf16, #tpu.memory_space<vmem>>, vector<4x128xbf16>
    tpu.vector_store %arg4[%c0_5, %c0_6], %10 {strides = array<i32>} : memref<4x128xbf16, #tpu.memory_space<vmem>>, vector<4x128xbf16>,
    return
  }
  func.func @transform_0(%arg0: i32) -> (i32, i32) {
    %c0_i32 = arith.constant 0 : i32
    %c0_i32_0 = arith.constant 0 : i32
    return %arg0, %c0_i32 : i32, i32
  }
  func.func @transform_1(%arg0: i32) -> (i32, i32) {
    %c0_i32 = arith.constant 0 : i32
    %c0_i32_0 = arith.constant 0 : i32
    %c0_i32_1 = arith.constant 0 : i32
    return %c0_i32, %c0_i32_0 : i32, i32
  }
  func.func @transform_2(%arg0: i32) -> (i32, i32) {
    %c0_i32 = arith.constant 0 : i32
    %c0_i32_0 = arith.constant 0 : i32
    %c0_i32_1 = arith.constant 0 : i32
    return %c0_i32, %c0_i32_0 : i32, i32
  }
  func.func @transform_3(%arg0: i32) -> (i32, i32) {
    %c0_i32 = arith.constant 0 : i32
    %c0_i32_0 = arith.constant 0 : i32
    return %arg0, %c0_i32 : i32, i32
  }
}

module attributes {stable_mosaic.version = 11 : i64} {
  func.func @_matmul_stats_kernel(%arg0: i32, %arg1: memref<8x864xbf16, #tpu.memory_space<vmem>>, %arg2: memref<864x32xbf16, #tpu.memory_space<vmem>>, %arg3: memref<1x32xf32, #tpu.memory_space<vmem>>, %arg4: memref<8x32xbf16, #tpu.memory_space<vmem>>, %arg5: memref<1x1x32xf32, #tpu.memory_space<vmem>>, %arg6: memref<1x1x32xf32, #tpu.memory_space<vmem>>) attributes {dimension_semantics = [#tpu.dimension_semantics<parallel>], iteration_bounds = array<i64: 2>, scalar_prefetch = 0 : i64, scratch_operands = 0 : i64, tpu.core_type = #tpu.core_type<tc>, window_params = [{transform_indices = @transform_0, window_bounds = array<i64: 8, 864>}, {pipeline_mode = #tpu.pipeline_mode<synchronous>, transform_indices = @transform_1, window_bounds = array<i64: 864, 32>}, {pipeline_mode = #tpu.pipeline_mode<synchronous>, transform_indices = @transform_2, window_bounds = array<i64: 1, 32>}, {transform_indices = @transform_3, window_bounds = array<i64: 8, 32>}, {transform_indices = @transform_4, window_bounds = array<i64: 1, 1, 32>}, {transform_indices = @transform_5, window_bounds = array<i64: 1, 1, 32>}]} {
    %c0 = arith.constant 0 : index
    %c0_0 = arith.constant 0 : index
    %0 = vector.load %arg1[%c0, %c0_0] : memref<8x864xbf16, #tpu.memory_space<vmem>>, vector<8x864xbf16>
    %c0_1 = arith.constant 0 : index
    %c0_2 = arith.constant 0 : index
    %1 = vector.load %arg2[%c0_1, %c0_2] : memref<864x32xbf16, #tpu.memory_space<vmem>>, vector<864x32xbf16>
    %cst = arith.constant dense<0.000000e+00> : vector<8x32xf32>
    %2 = tpu.matmul %0, %1, %cst {dimension_numbers = #tpu.dot_dimension_numbers<[1], [0], [0], [1], [0, 0, 1, 1], [], []>} : vector<8x864xbf16>, vector<864x32xbf16>, vector<8x32xf32> -> vector<8x32xf32>
    %c0_3 = arith.constant 0 : index
    %c0_4 = arith.constant 0 : index
    %3 = vector.load %arg3[%c0_3, %c0_4] : memref<1x32xf32, #tpu.memory_space<vmem>>, vector<1x32xf32>
    %4 = vector.broadcast %3 : vector<1x32xf32> to vector<8x32xf32>
    %5 = arith.addf %2, %4 : vector<8x32xf32>
    %6 = arith.truncf %5 : vector<8x32xf32> to vector<8x32xbf16>
    %c0_5 = arith.constant 0 : index
    %c0_6 = arith.constant 0 : index
    %7 = vector.load %arg4[%c0_5, %c0_6] : memref<8x32xbf16, #tpu.memory_space<vmem>>, vector<8x32xbf16>
    tpu.vector_store %arg4[%c0_5, %c0_6], %6 {strides = array<i32>} : memref<8x32xbf16, #tpu.memory_space<vmem>>, vector<8x32xbf16>,
    %cst_7 = arith.constant dense<0.000000e+00> : vector<32xf32>
    %8 = vector.multi_reduction <add>, %5, %cst_7 [0] : vector<8x32xf32> to vector<32xf32>
    %9 = vector.shape_cast %8 : vector<32xf32> to vector<1x32xf32>
    %10 = vector.shape_cast %9 : vector<1x32xf32> to vector<1x1x32xf32>
    %c0_8 = arith.constant 0 : index
    %c0_9 = arith.constant 0 : index
    %c0_10 = arith.constant 0 : index
    %11 = vector.load %arg5[%c0_8, %c0_9, %c0_10] : memref<1x1x32xf32, #tpu.memory_space<vmem>>, vector<1x1x32xf32>
    tpu.vector_store %arg5[%c0_8, %c0_9, %c0_10], %10 {strides = array<i32>} : memref<1x1x32xf32, #tpu.memory_space<vmem>>, vector<1x1x32xf32>,
    %12 = arith.mulf %5, %5 : vector<8x32xf32>
    %cst_11 = arith.constant dense<0.000000e+00> : vector<32xf32>
    %13 = vector.multi_reduction <add>, %12, %cst_11 [0] : vector<8x32xf32> to vector<32xf32>
    %14 = vector.shape_cast %13 : vector<32xf32> to vector<1x32xf32>
    %15 = vector.shape_cast %14 : vector<1x32xf32> to vector<1x1x32xf32>
    %c0_12 = arith.constant 0 : index
    %c0_13 = arith.constant 0 : index
    %c0_14 = arith.constant 0 : index
    %16 = vector.load %arg6[%c0_12, %c0_13, %c0_14] : memref<1x1x32xf32, #tpu.memory_space<vmem>>, vector<1x1x32xf32>
    tpu.vector_store %arg6[%c0_12, %c0_13, %c0_14], %15 {strides = array<i32>} : memref<1x1x32xf32, #tpu.memory_space<vmem>>, vector<1x1x32xf32>,
    return
  }
  func.func @transform_0(%arg0: i32) -> (i32, i32) {
    %c0_i32 = arith.constant 0 : i32
    %c0_i32_0 = arith.constant 0 : i32
    return %arg0, %c0_i32 : i32, i32
  }
  func.func @transform_1(%arg0: i32) -> (i32, i32) {
    %c0_i32 = arith.constant 0 : i32
    %c0_i32_0 = arith.constant 0 : i32
    %c0_i32_1 = arith.constant 0 : i32
    return %c0_i32, %c0_i32_0 : i32, i32
  }
  func.func @transform_2(%arg0: i32) -> (i32, i32) {
    %c0_i32 = arith.constant 0 : i32
    %c0_i32_0 = arith.constant 0 : i32
    %c0_i32_1 = arith.constant 0 : i32
    return %c0_i32, %c0_i32_0 : i32, i32
  }
  func.func @transform_3(%arg0: i32) -> (i32, i32) {
    %c0_i32 = arith.constant 0 : i32
    %c0_i32_0 = arith.constant 0 : i32
    return %arg0, %c0_i32 : i32, i32
  }
  func.func @transform_4(%arg0: i32) -> (i32, i32, i32) {
    %c0_i32 = arith.constant 0 : i32
    %c0_i32_0 = arith.constant 0 : i32
    %c0_i32_1 = arith.constant 0 : i32
    return %arg0, %c0_i32, %c0_i32_0 : i32, i32, i32
  }
  func.func @transform_5(%arg0: i32) -> (i32, i32, i32) {
    %c0_i32 = arith.constant 0 : i32
    %c0_i32_0 = arith.constant 0 : i32
    %c0_i32_1 = arith.constant 0 : i32
    return %arg0, %c0_i32, %c0_i32_0 : i32, i32, i32
  }
}

module attributes {stable_mosaic.version = 11 : i64} {
  func.func @kern(%arg0: i32, %arg1: memref<4x128xbf16, #tpu.memory_space<vmem>>, %arg2: memref<1x128xf32, #tpu.memory_space<vmem>>, %arg3: memref<1x128xf32, #tpu.memory_space<vmem>>, %arg4: memref<4x128xbf16, #tpu.memory_space<vmem>>, %arg5: memref<1x128xf32, #tpu.memory_space<vmem>>, %arg6: memref<1x128xf32, #tpu.memory_space<vmem>>, %arg7: memref<4x128xbf16, #tpu.memory_space<vmem>>) attributes {dimension_semantics = [#tpu.dimension_semantics<parallel>], iteration_bounds = array<i64: 1>, scalar_prefetch = 0 : i64, scratch_operands = 0 : i64, tpu.core_type = #tpu.core_type<tc>, window_params = [{transform_indices = @transform_0, window_bounds = array<i64: 4, 128>}, {pipeline_mode = #tpu.pipeline_mode<synchronous>, transform_indices = @transform_1, window_bounds = array<i64: 1, 128>}, {pipeline_mode = #tpu.pipeline_mode<synchronous>, transform_indices = @transform_2, window_bounds = array<i64: 1, 128>}, {transform_indices = @transform_3, window_bounds = array<i64: 4, 128>}, {pipeline_mode = #tpu.pipeline_mode<synchronous>, transform_indices = @transform_4, window_bounds = array<i64: 1, 128>}, {pipeline_mode = #tpu.pipeline_mode<synchronous>, transform_indices = @transform_5, window_bounds = array<i64: 1, 128>}, {transform_indices = @transform_6, window_bounds = array<i64: 4, 128>}]} {
    %c0 = arith.constant 0 : index
    %c0_0 = arith.constant 0 : index
    %0 = vector.load %arg1[%c0, %c0_0] : memref<4x128xbf16, #tpu.memory_space<vmem>>, vector<4x128xbf16>
    %1 = arith.extf %0 : vector<4x128xbf16> to vector<4x128xf32>
    %c0_1 = arith.constant 0 : index
    %c0_2 = arith.constant 0 : index
    %2 = vector.load %arg2[%c0_1, %c0_2] : memref<1x128xf32, #tpu.memory_space<vmem>>, vector<1x128xf32>
    %3 = vector.broadcast %2 : vector<1x128xf32> to vector<4x128xf32>
    %4 = arith.mulf %1, %3 : vector<4x128xf32>
    %c0_3 = arith.constant 0 : index
    %c0_4 = arith.constant 0 : index
    %5 = vector.load %arg3[%c0_3, %c0_4] : memref<1x128xf32, #tpu.memory_space<vmem>>, vector<1x128xf32>
    %6 = vector.broadcast %5 : vector<1x128xf32> to vector<4x128xf32>
    %7 = arith.addf %4, %6 : vector<4x128xf32>
    %c0_5 = arith.constant 0 : index
    %c0_6 = arith.constant 0 : index
    %8 = vector.load %arg4[%c0_5, %c0_6] : memref<4x128xbf16, #tpu.memory_space<vmem>>, vector<4x128xbf16>
    %9 = arith.extf %8 : vector<4x128xbf16> to vector<4x128xf32>
    %c0_7 = arith.constant 0 : index
    %c0_8 = arith.constant 0 : index
    %10 = vector.load %arg5[%c0_7, %c0_8] : memref<1x128xf32, #tpu.memory_space<vmem>>, vector<1x128xf32>
    %11 = vector.broadcast %10 : vector<1x128xf32> to vector<4x128xf32>
    %12 = arith.mulf %9, %11 : vector<4x128xf32>
    %13 = arith.addf %7, %12 : vector<4x128xf32>
    %c0_9 = arith.constant 0 : index
    %c0_10 = arith.constant 0 : index
    %14 = vector.load %arg6[%c0_9, %c0_10] : memref<1x128xf32, #tpu.memory_space<vmem>>, vector<1x128xf32>
    %15 = vector.broadcast %14 : vector<1x128xf32> to vector<4x128xf32>
    %16 = arith.addf %13, %15 : vector<4x128xf32>
    %cst = arith.constant 0.000000e+00 : f32
    %17 = vector.broadcast %cst : f32 to vector<4x128xf32>
    %18 = arith.maximumf %16, %17 : vector<4x128xf32>
    %19 = arith.truncf %18 : vector<4x128xf32> to vector<4x128xbf16>
    %c0_11 = arith.constant 0 : index
    %c0_12 = arith.constant 0 : index
    %20 = vector.load %arg7[%c0_11, %c0_12] : memref<4x128xbf16, #tpu.memory_space<vmem>>, vector<4x128xbf16>
    tpu.vector_store %arg7[%c0_11, %c0_12], %19 {strides = array<i32>} : memref<4x128xbf16, #tpu.memory_space<vmem>>, vector<4x128xbf16>,
    return
  }
  func.func @transform_0(%arg0: i32) -> (i32, i32) {
    %c0_i32 = arith.constant 0 : i32
    %c0_i32_0 = arith.constant 0 : i32
    return %arg0, %c0_i32 : i32, i32
  }
  func.func @transform_1(%arg0: i32) -> (i32, i32) {
    %c0_i32 = arith.constant 0 : i32
    %c0_i32_0 = arith.constant 0 : i32
    %c0_i32_1 = arith.constant 0 : i32
    return %c0_i32, %c0_i32_0 : i32, i32
  }
  func.func @transform_2(%arg0: i32) -> (i32, i32) {
    %c0_i32 = arith.constant 0 : i32
    %c0_i32_0 = arith.constant 0 : i32
    %c0_i32_1 = arith.constant 0 : i32
    return %c0_i32, %c0_i32_0 : i32, i32
  }
  func.func @transform_3(%arg0: i32) -> (i32, i32) {
    %c0_i32 = arith.constant 0 : i32
    %c0_i32_0 = arith.constant 0 : i32
    return %arg0, %c0_i32 : i32, i32
  }
  func.func @transform_4(%arg0: i32) -> (i32, i32) {
    %c0_i32 = arith.constant 0 : i32
    %c0_i32_0 = arith.constant 0 : i32
    %c0_i32_1 = arith.constant 0 : i32
    return %c0_i32, %c0_i32_0 : i32, i32
  }
  func.func @transform_5(%arg0: i32) -> (i32, i32) {
    %c0_i32 = arith.constant 0 : i32
    %c0_i32_0 = arith.constant 0 : i32
    %c0_i32_1 = arith.constant 0 : i32
    return %c0_i32, %c0_i32_0 : i32, i32
  }
  func.func @transform_6(%arg0: i32) -> (i32, i32) {
    %c0_i32 = arith.constant 0 : i32
    %c0_i32_0 = arith.constant 0 : i32
    return %arg0, %c0_i32 : i32, i32
  }
}

module attributes {stable_mosaic.version = 11 : i64} {
  func.func @kern(%arg0: i32, %arg1: memref<4x128xbf16, #tpu.memory_space<vmem>>, %arg2: memref<1x128xf32, #tpu.memory_space<vmem>>, %arg3: memref<1x128xf32, #tpu.memory_space<vmem>>, %arg4: memref<4x128xbf16, #tpu.memory_space<vmem>>, %arg5: memref<4x128xbf16, #tpu.memory_space<vmem>>) attributes {dimension_semantics = [#tpu.dimension_semantics<parallel>], iteration_bounds = array<i64: 1>, scalar_prefetch = 0 : i64, scratch_operands = 0 : i64, tpu.core_type = #tpu.core_type<tc>, window_params = [{transform_indices = @transform_0, window_bounds = array<i64: 4, 128>}, {pipeline_mode = #tpu.pipeline_mode<synchronous>, transform_indices = @transform_1, window_bounds = array<i64: 1, 128>}, {pipeline_mode = #tpu.pipeline_mode<synchronous>, transform_indices = @transform_2, window_bounds = array<i64: 1, 128>}, {transform_indices = @transform_3, window_bounds = array<i64: 4, 128>}, {transform_indices = @transform_4, window_bounds = array<i64: 4, 128>}]} {
    %c0 = arith.constant 0 : index
    %c0_0 = arith.constant 0 : index
    %0 = vector.load %arg1[%c0, %c0_0] : memref<4x128xbf16, #tpu.memory_space<vmem>>, vector<4x128xbf16>
    %1 = arith.extf %0 : vector<4x128xbf16> to vector<4x128xf32>
    %c0_1 = arith.constant 0 : index
    %c0_2 = arith.constant 0 : index
    %2 = vector.load %arg2[%c0_1, %c0_2] : memref<1x128xf32, #tpu.memory_space<vmem>>, vector<1x128xf32>
    %3 = vector.broadcast %2 : vector<1x128xf32> to vector<4x128xf32>
    %4 = arith.mulf %1, %3 : vector<4x128xf32>
    %c0_3 = arith.constant 0 : index
    %c0_4 = arith.constant 0 : index
    %5 = vector.load %arg3[%c0_3, %c0_4] : memref<1x128xf32, #tpu.memory_space<vmem>>, vector<1x128xf32>
    %6 = vector.broadcast %5 : vector<1x128xf32> to vector<4x128xf32>
    %7 = arith.addf %4, %6 : vector<4x128xf32>
    %c0_5 = arith.constant 0 : index
    %c0_6 = arith.constant 0 : index
    %8 = vector.load %arg4[%c0_5, %c0_6] : memref<4x128xbf16, #tpu.memory_space<vmem>>, vector<4x128xbf16>
    %9 = arith.extf %8 : vector<4x128xbf16> to vector<4x128xf32>
    %10 = arith.addf %7, %9 : vector<4x128xf32>
    %cst = arith.constant 0.000000e+00 : f32
    %11 = vector.broadcast %cst : f32 to vector<4x128xf32>
    %12 = arith.maximumf %10, %11 : vector<4x128xf32>
    %13 = arith.truncf %12 : vector<4x128xf32> to vector<4x128xbf16>
    %c0_7 = arith.constant 0 : index
    %c0_8 = arith.constant 0 : index
    %14 = vector.load %arg5[%c0_7, %c0_8] : memref<4x128xbf16, #tpu.memory_space<vmem>>, vector<4x128xbf16>
    tpu.vector_store %arg5[%c0_7, %c0_8], %13 {strides = array<i32>} : memref<4x128xbf16, #tpu.memory_space<vmem>>, vector<4x128xbf16>,
    return
  }
  func.func @transform_0(%arg0: i32) -> (i32, i32) {
    %c0_i32 = arith.constant 0 : i32
    %c0_i32_0 = arith.constant 0 : i32
    return %arg0, %c0_i32 : i32, i32
  }
  func.func @transform_1(%arg0: i32) -> (i32, i32) {
    %c0_i32 = arith.constant 0 : i32
    %c0_i32_0 = arith.constant 0 : i32
    %c0_i32_1 = arith.constant 0 : i32
    return %c0_i32, %c0_i32_0 : i32, i32
  }
  func.func @transform_2(%arg0: i32) -> (i32, i32) {
    %c0_i32 = arith.constant 0 : i32
    %c0_i32_0 = arith.constant 0 : i32
    %c0_i32_1 = arith.constant 0 : i32
    return %c0_i32, %c0_i32_0 : i32, i32
  }
  func.func @transform_3(%arg0: i32) -> (i32, i32) {
    %c0_i32 = arith.constant 0 : i32
    %c0_i32_0 = arith.constant 0 : i32
    return %arg0, %c0_i32 : i32, i32
  }
  func.func @transform_4(%arg0: i32) -> (i32, i32) {
    %c0_i32 = arith.constant 0 : i32
    %c0_i32_0 = arith.constant 0 : i32
    return %arg0, %c0_i32 : i32, i32
  }
}

module attributes {stable_mosaic.version = 11 : i64} {
  func.func @_matmul_stats_kernel(%arg0: i32, %arg1: memref<2x32xbf16, #tpu.memory_space<vmem>>, %arg2: memref<32x64xbf16, #tpu.memory_space<vmem>>, %arg3: memref<1x64xf32, #tpu.memory_space<vmem>>, %arg4: memref<2x64xbf16, #tpu.memory_space<vmem>>, %arg5: memref<1x1x64xf32, #tpu.memory_space<vmem>>, %arg6: memref<1x1x64xf32, #tpu.memory_space<vmem>>) attributes {dimension_semantics = [#tpu.dimension_semantics<parallel>], iteration_bounds = array<i64: 1>, scalar_prefetch = 0 : i64, scratch_operands = 0 : i64, tpu.core_type = #tpu.core_type<tc>, window_params = [{transform_indices = @transform_0, window_bounds = array<i64: 2, 32>}, {pipeline_mode = #tpu.pipeline_mode<synchronous>, transform_indices = @transform_1, window_bounds = array<i64: 32, 64>}, {pipeline_mode = #tpu.pipeline_mode<synchronous>, transform_indices = @transform_2, window_bounds = array<i64: 1, 64>}, {transform_indices = @transform_3, window_bounds = array<i64: 2, 64>}, {transform_indices = @transform_4, window_bounds = array<i64: 1, 1, 64>}, {transform_indices = @transform_5, window_bounds = array<i64: 1, 1, 64>}]} {
    %c0 = arith.constant 0 : index
    %c0_0 = arith.constant 0 : index
    %0 = vector.load %arg1[%c0, %c0_0] : memref<2x32xbf16, #tpu.memory_space<vmem>>, vector<2x32xbf16>
    %c0_1 = arith.constant 0 : index
    %c0_2 = arith.constant 0 : index
    %1 = vector.load %arg2[%c0_1, %c0_2] : memref<32x64xbf16, #tpu.memory_space<vmem>>, vector<32x64xbf16>
    %cst = arith.constant dense<0.000000e+00> : vector<2x64xf32>
    %2 = tpu.matmul %0, %1, %cst {dimension_numbers = #tpu.dot_dimension_numbers<[1], [0], [0], [1], [0, 0, 1, 1], [], []>} : vector<2x32xbf16>, vector<32x64xbf16>, vector<2x64xf32> -> vector<2x64xf32>
    %c0_3 = arith.constant 0 : index
    %c0_4 = arith.constant 0 : index
    %3 = vector.load %arg3[%c0_3, %c0_4] : memref<1x64xf32, #tpu.memory_space<vmem>>, vector<1x64xf32>
    %4 = vector.broadcast %3 : vector<1x64xf32> to vector<2x64xf32>
    %5 = arith.addf %2, %4 : vector<2x64xf32>
    %6 = arith.truncf %5 : vector<2x64xf32> to vector<2x64xbf16>
    %c0_5 = arith.constant 0 : index
    %c0_6 = arith.constant 0 : index
    %7 = vector.load %arg4[%c0_5, %c0_6] : memref<2x64xbf16, #tpu.memory_space<vmem>>, vector<2x64xbf16>
    tpu.vector_store %arg4[%c0_5, %c0_6], %6 {strides = array<i32>} : memref<2x64xbf16, #tpu.memory_space<vmem>>, vector<2x64xbf16>,
    %cst_7 = arith.constant dense<0.000000e+00> : vector<64xf32>
    %8 = vector.multi_reduction <add>, %5, %cst_7 [0] : vector<2x64xf32> to vector<64xf32>
    %9 = vector.shape_cast %8 : vector<64xf32> to vector<1x64xf32>
    %10 = vector.shape_cast %9 : vector<1x64xf32> to vector<1x1x64xf32>
    %c0_8 = arith.constant 0 : index
    %c0_9 = arith.constant 0 : index
    %c0_10 = arith.constant 0 : index
    %11 = vector.load %arg5[%c0_8, %c0_9, %c0_10] : memref<1x1x64xf32, #tpu.memory_space<vmem>>, vector<1x1x64xf32>
    tpu.vector_store %arg5[%c0_8, %c0_9, %c0_10], %10 {strides = array<i32>} : memref<1x1x64xf32, #tpu.memory_space<vmem>>, vector<1x1x64xf32>,
    %12 = arith.mulf %5, %5 : vector<2x64xf32>
    %cst_11 = arith.constant dense<0.000000e+00> : vector<64xf32>
    %13 = vector.multi_reduction <add>, %12, %cst_11 [0] : vector<2x64xf32> to vector<64xf32>
    %14 = vector.shape_cast %13 : vector<64xf32> to vector<1x64xf32>
    %15 = vector.shape_cast %14 : vector<1x64xf32> to vector<1x1x64xf32>
    %c0_12 = arith.constant 0 : index
    %c0_13 = arith.constant 0 : index
    %c0_14 = arith.constant 0 : index
    %16 = vector.load %arg6[%c0_12, %c0_13, %c0_14] : memref<1x1x64xf32, #tpu.memory_space<vmem>>, vector<1x1x64xf32>
    tpu.vector_store %arg6[%c0_12, %c0_13, %c0_14], %15 {strides = array<i32>} : memref<1x1x64xf32, #tpu.memory_space<vmem>>, vector<1x1x64xf32>,
    return
  }
  func.func @transform_0(%arg0: i32) -> (i32, i32) {
    %c0_i32 = arith.constant 0 : i32
    %c0_i32_0 = arith.constant 0 : i32
    return %arg0, %c0_i32 : i32, i32
  }
  func.func @transform_1(%arg0: i32) -> (i32, i32) {
    %c0_i32 = arith.constant 0 : i32
    %c0_i32_0 = arith.constant 0 : i32
    %c0_i32_1 = arith.constant 0 : i32
    return %c0_i32, %c0_i32_0 : i32, i32
  }
  func.func @transform_2(%arg0: i32) -> (i32, i32) {
    %c0_i32 = arith.constant 0 : i32
    %c0_i32_0 = arith.constant 0 : i32
    %c0_i32_1 = arith.constant 0 : i32
    return %c0_i32, %c0_i32_0 : i32, i32
  }
  func.func @transform_3(%arg0: i32) -> (i32, i32) {
    %c0_i32 = arith.constant 0 : i32
    %c0_i32_0 = arith.constant 0 : i32
    return %arg0, %c0_i32 : i32, i32
  }
  func.func @transform_4(%arg0: i32) -> (i32, i32, i32) {
    %c0_i32 = arith.constant 0 : i32
    %c0_i32_0 = arith.constant 0 : i32
    %c0_i32_1 = arith.constant 0 : i32
    return %arg0, %c0_i32, %c0_i32_0 : i32, i32, i32
  }
  func.func @transform_5(%arg0: i32) -> (i32, i32, i32) {
    %c0_i32 = arith.constant 0 : i32
    %c0_i32_0 = arith.constant 0 : i32
    %c0_i32_1 = arith.constant 0 : i32
    return %arg0, %c0_i32, %c0_i32_0 : i32, i32, i32
  }
}

module attributes {stable_mosaic.version = 11 : i64} {
  func.func @_matmul_stats_kernel(%arg0: i32, %arg1: memref<2x864xbf16, #tpu.memory_space<vmem>>, %arg2: memref<864x64xbf16, #tpu.memory_space<vmem>>, %arg3: memref<1x64xf32, #tpu.memory_space<vmem>>, %arg4: memref<2x64xbf16, #tpu.memory_space<vmem>>, %arg5: memref<1x1x64xf32, #tpu.memory_space<vmem>>, %arg6: memref<1x1x64xf32, #tpu.memory_space<vmem>>) attributes {dimension_semantics = [#tpu.dimension_semantics<parallel>], iteration_bounds = array<i64: 1>, scalar_prefetch = 0 : i64, scratch_operands = 0 : i64, tpu.core_type = #tpu.core_type<tc>, window_params = [{transform_indices = @transform_0, window_bounds = array<i64: 2, 864>}, {pipeline_mode = #tpu.pipeline_mode<synchronous>, transform_indices = @transform_1, window_bounds = array<i64: 864, 64>}, {pipeline_mode = #tpu.pipeline_mode<synchronous>, transform_indices = @transform_2, window_bounds = array<i64: 1, 64>}, {transform_indices = @transform_3, window_bounds = array<i64: 2, 64>}, {transform_indices = @transform_4, window_bounds = array<i64: 1, 1, 64>}, {transform_indices = @transform_5, window_bounds = array<i64: 1, 1, 64>}]} {
    %c0 = arith.constant 0 : index
    %c0_0 = arith.constant 0 : index
    %0 = vector.load %arg1[%c0, %c0_0] : memref<2x864xbf16, #tpu.memory_space<vmem>>, vector<2x864xbf16>
    %c0_1 = arith.constant 0 : index
    %c0_2 = arith.constant 0 : index
    %1 = vector.load %arg2[%c0_1, %c0_2] : memref<864x64xbf16, #tpu.memory_space<vmem>>, vector<864x64xbf16>
    %cst = arith.constant dense<0.000000e+00> : vector<2x64xf32>
    %2 = tpu.matmul %0, %1, %cst {dimension_numbers = #tpu.dot_dimension_numbers<[1], [0], [0], [1], [0, 0, 1, 1], [], []>} : vector<2x864xbf16>, vector<864x64xbf16>, vector<2x64xf32> -> vector<2x64xf32>
    %c0_3 = arith.constant 0 : index
    %c0_4 = arith.constant 0 : index
    %3 = vector.load %arg3[%c0_3, %c0_4] : memref<1x64xf32, #tpu.memory_space<vmem>>, vector<1x64xf32>
    %4 = vector.broadcast %3 : vector<1x64xf32> to vector<2x64xf32>
    %5 = arith.addf %2, %4 : vector<2x64xf32>
    %6 = arith.truncf %5 : vector<2x64xf32> to vector<2x64xbf16>
    %c0_5 = arith.constant 0 : index
    %c0_6 = arith.constant 0 : index
    %7 = vector.load %arg4[%c0_5, %c0_6] : memref<2x64xbf16, #tpu.memory_space<vmem>>, vector<2x64xbf16>
    tpu.vector_store %arg4[%c0_5, %c0_6], %6 {strides = array<i32>} : memref<2x64xbf16, #tpu.memory_space<vmem>>, vector<2x64xbf16>,
    %cst_7 = arith.constant dense<0.000000e+00> : vector<64xf32>
    %8 = vector.multi_reduction <add>, %5, %cst_7 [0] : vector<2x64xf32> to vector<64xf32>
    %9 = vector.shape_cast %8 : vector<64xf32> to vector<1x64xf32>
    %10 = vector.shape_cast %9 : vector<1x64xf32> to vector<1x1x64xf32>
    %c0_8 = arith.constant 0 : index
    %c0_9 = arith.constant 0 : index
    %c0_10 = arith.constant 0 : index
    %11 = vector.load %arg5[%c0_8, %c0_9, %c0_10] : memref<1x1x64xf32, #tpu.memory_space<vmem>>, vector<1x1x64xf32>
    tpu.vector_store %arg5[%c0_8, %c0_9, %c0_10], %10 {strides = array<i32>} : memref<1x1x64xf32, #tpu.memory_space<vmem>>, vector<1x1x64xf32>,
    %12 = arith.mulf %5, %5 : vector<2x64xf32>
    %cst_11 = arith.constant dense<0.000000e+00> : vector<64xf32>
    %13 = vector.multi_reduction <add>, %12, %cst_11 [0] : vector<2x64xf32> to vector<64xf32>
    %14 = vector.shape_cast %13 : vector<64xf32> to vector<1x64xf32>
    %15 = vector.shape_cast %14 : vector<1x64xf32> to vector<1x1x64xf32>
    %c0_12 = arith.constant 0 : index
    %c0_13 = arith.constant 0 : index
    %c0_14 = arith.constant 0 : index
    %16 = vector.load %arg6[%c0_12, %c0_13, %c0_14] : memref<1x1x64xf32, #tpu.memory_space<vmem>>, vector<1x1x64xf32>
    tpu.vector_store %arg6[%c0_12, %c0_13, %c0_14], %15 {strides = array<i32>} : memref<1x1x64xf32, #tpu.memory_space<vmem>>, vector<1x1x64xf32>,
    return
  }
  func.func @transform_0(%arg0: i32) -> (i32, i32) {
    %c0_i32 = arith.constant 0 : i32
    %c0_i32_0 = arith.constant 0 : i32
    return %arg0, %c0_i32 : i32, i32
  }
  func.func @transform_1(%arg0: i32) -> (i32, i32) {
    %c0_i32 = arith.constant 0 : i32
    %c0_i32_0 = arith.constant 0 : i32
    %c0_i32_1 = arith.constant 0 : i32
    return %c0_i32, %c0_i32_0 : i32, i32
  }
  func.func @transform_2(%arg0: i32) -> (i32, i32) {
    %c0_i32 = arith.constant 0 : i32
    %c0_i32_0 = arith.constant 0 : i32
    %c0_i32_1 = arith.constant 0 : i32
    return %c0_i32, %c0_i32_0 : i32, i32
  }
  func.func @transform_3(%arg0: i32) -> (i32, i32) {
    %c0_i32 = arith.constant 0 : i32
    %c0_i32_0 = arith.constant 0 : i32
    return %arg0, %c0_i32 : i32, i32
  }
  func.func @transform_4(%arg0: i32) -> (i32, i32, i32) {
    %c0_i32 = arith.constant 0 : i32
    %c0_i32_0 = arith.constant 0 : i32
    %c0_i32_1 = arith.constant 0 : i32
    return %arg0, %c0_i32, %c0_i32_0 : i32, i32, i32
  }
  func.func @transform_5(%arg0: i32) -> (i32, i32, i32) {
    %c0_i32 = arith.constant 0 : i32
    %c0_i32_0 = arith.constant 0 : i32
    %c0_i32_1 = arith.constant 0 : i32
    return %arg0, %c0_i32, %c0_i32_0 : i32, i32, i32
  }
}

module attributes {stable_mosaic.version = 11 : i64} {
  func.func @kern(%arg0: i32, %arg1: memref<1x128xbf16, #tpu.memory_space<vmem>>, %arg2: memref<1x128xf32, #tpu.memory_space<vmem>>, %arg3: memref<1x128xf32, #tpu.memory_space<vmem>>, %arg4: memref<1x128xbf16, #tpu.memory_space<vmem>>) attributes {dimension_semantics = [#tpu.dimension_semantics<parallel>], iteration_bounds = array<i64: 1>, scalar_prefetch = 0 : i64, scratch_operands = 0 : i64, tpu.core_type = #tpu.core_type<tc>, window_params = [{transform_indices = @transform_0, window_bounds = array<i64: 1, 128>}, {pipeline_mode = #tpu.pipeline_mode<synchronous>, transform_indices = @transform_1, window_bounds = array<i64: 1, 128>}, {pipeline_mode = #tpu.pipeline_mode<synchronous>, transform_indices = @transform_2, window_bounds = array<i64: 1, 128>}, {transform_indices = @transform_3, window_bounds = array<i64: 1, 128>}]} {
    %c0 = arith.constant 0 : index
    %c0_0 = arith.constant 0 : index
    %0 = vector.load %arg1[%c0, %c0_0] : memref<1x128xbf16, #tpu.memory_space<vmem>>, vector<1x128xbf16>
    %1 = arith.extf %0 : vector<1x128xbf16> to vector<1x128xf32>
    %c0_1 = arith.constant 0 : index
    %c0_2 = arith.constant 0 : index
    %2 = vector.load %arg2[%c0_1, %c0_2] : memref<1x128xf32, #tpu.memory_space<vmem>>, vector<1x128xf32>
    %3 = arith.mulf %1, %2 : vector<1x128xf32>
    %c0_3 = arith.constant 0 : index
    %c0_4 = arith.constant 0 : index
    %4 = vector.load %arg3[%c0_3, %c0_4] : memref<1x128xf32, #tpu.memory_space<vmem>>, vector<1x128xf32>
    %5 = arith.addf %3, %4 : vector<1x128xf32>
    %cst = arith.constant 0.000000e+00 : f32
    %6 = vector.broadcast %cst : f32 to vector<1x128xf32>
    %7 = arith.maximumf %5, %6 : vector<1x128xf32>
    %8 = arith.truncf %7 : vector<1x128xf32> to vector<1x128xbf16>
    %c0_5 = arith.constant 0 : index
    %c0_6 = arith.constant 0 : index
    %9 = vector.load %arg4[%c0_5, %c0_6] : memref<1x128xbf16, #tpu.memory_space<vmem>>, vector<1x128xbf16>
    tpu.vector_store %arg4[%c0_5, %c0_6], %8 {strides = array<i32>} : memref<1x128xbf16, #tpu.memory_space<vmem>>, vector<1x128xbf16>,
    return
  }
  func.func @transform_0(%arg0: i32) -> (i32, i32) {
    %c0_i32 = arith.constant 0 : i32
    %c0_i32_0 = arith.constant 0 : i32
    return %arg0, %c0_i32 : i32, i32
  }
  func.func @transform_1(%arg0: i32) -> (i32, i32) {
    %c0_i32 = arith.constant 0 : i32
    %c0_i32_0 = arith.constant 0 : i32
    %c0_i32_1 = arith.constant 0 : i32
    return %c0_i32, %c0_i32_0 : i32, i32
  }
  func.func @transform_2(%arg0: i32) -> (i32, i32) {
    %c0_i32 = arith.constant 0 : i32
    %c0_i32_0 = arith.constant 0 : i32
    %c0_i32_1 = arith.constant 0 : i32
    return %c0_i32, %c0_i32_0 : i32, i32
  }
  func.func @transform_3(%arg0: i32) -> (i32, i32) {
    %c0_i32 = arith.constant 0 : i32
    %c0_i32_0 = arith.constant 0 : i32
    return %arg0, %c0_i32 : i32, i32
  }
}

module attributes {stable_mosaic.version = 11 : i64} {
  func.func @_matmul_stats_kernel(%arg0: i32, %arg1: memref<2x1728xbf16, #tpu.memory_space<vmem>>, %arg2: memref<1728x64xbf16, #tpu.memory_space<vmem>>, %arg3: memref<1x64xf32, #tpu.memory_space<vmem>>, %arg4: memref<2x64xbf16, #tpu.memory_space<vmem>>, %arg5: memref<1x1x64xf32, #tpu.memory_space<vmem>>, %arg6: memref<1x1x64xf32, #tpu.memory_space<vmem>>) attributes {dimension_semantics = [#tpu.dimension_semantics<parallel>], iteration_bounds = array<i64: 1>, scalar_prefetch = 0 : i64, scratch_operands = 0 : i64, tpu.core_type = #tpu.core_type<tc>, window_params = [{transform_indices = @transform_0, window_bounds = array<i64: 2, 1728>}, {pipeline_mode = #tpu.pipeline_mode<synchronous>, transform_indices = @transform_1, window_bounds = array<i64: 1728, 64>}, {pipeline_mode = #tpu.pipeline_mode<synchronous>, transform_indices = @transform_2, window_bounds = array<i64: 1, 64>}, {transform_indices = @transform_3, window_bounds = array<i64: 2, 64>}, {transform_indices = @transform_4, window_bounds = array<i64: 1, 1, 64>}, {transform_indices = @transform_5, window_bounds = array<i64: 1, 1, 64>}]} {
    %c0 = arith.constant 0 : index
    %c0_0 = arith.constant 0 : index
    %0 = vector.load %arg1[%c0, %c0_0] : memref<2x1728xbf16, #tpu.memory_space<vmem>>, vector<2x1728xbf16>
    %c0_1 = arith.constant 0 : index
    %c0_2 = arith.constant 0 : index
    %1 = vector.load %arg2[%c0_1, %c0_2] : memref<1728x64xbf16, #tpu.memory_space<vmem>>, vector<1728x64xbf16>
    %cst = arith.constant dense<0.000000e+00> : vector<2x64xf32>
    %2 = tpu.matmul %0, %1, %cst {dimension_numbers = #tpu.dot_dimension_numbers<[1], [0], [0], [1], [0, 0, 1, 1], [], []>} : vector<2x1728xbf16>, vector<1728x64xbf16>, vector<2x64xf32> -> vector<2x64xf32>
    %c0_3 = arith.constant 0 : index
    %c0_4 = arith.constant 0 : index
    %3 = vector.load %arg3[%c0_3, %c0_4] : memref<1x64xf32, #tpu.memory_space<vmem>>, vector<1x64xf32>
    %4 = vector.broadcast %3 : vector<1x64xf32> to vector<2x64xf32>
    %5 = arith.addf %2, %4 : vector<2x64xf32>
    %6 = arith.truncf %5 : vector<2x64xf32> to vector<2x64xbf16>
    %c0_5 = arith.constant 0 : index
    %c0_6 = arith.constant 0 : index
    %7 = vector.load %arg4[%c0_5, %c0_6] : memref<2x64xbf16, #tpu.memory_space<vmem>>, vector<2x64xbf16>
    tpu.vector_store %arg4[%c0_5, %c0_6], %6 {strides = array<i32>} : memref<2x64xbf16, #tpu.memory_space<vmem>>, vector<2x64xbf16>,
    %cst_7 = arith.constant dense<0.000000e+00> : vector<64xf32>
    %8 = vector.multi_reduction <add>, %5, %cst_7 [0] : vector<2x64xf32> to vector<64xf32>
    %9 = vector.shape_cast %8 : vector<64xf32> to vector<1x64xf32>
    %10 = vector.shape_cast %9 : vector<1x64xf32> to vector<1x1x64xf32>
    %c0_8 = arith.constant 0 : index
    %c0_9 = arith.constant 0 : index
    %c0_10 = arith.constant 0 : index
    %11 = vector.load %arg5[%c0_8, %c0_9, %c0_10] : memref<1x1x64xf32, #tpu.memory_space<vmem>>, vector<1x1x64xf32>
    tpu.vector_store %arg5[%c0_8, %c0_9, %c0_10], %10 {strides = array<i32>} : memref<1x1x64xf32, #tpu.memory_space<vmem>>, vector<1x1x64xf32>,
    %12 = arith.mulf %5, %5 : vector<2x64xf32>
    %cst_11 = arith.constant dense<0.000000e+00> : vector<64xf32>
    %13 = vector.multi_reduction <add>, %12, %cst_11 [0] : vector<2x64xf32> to vector<64xf32>
    %14 = vector.shape_cast %13 : vector<64xf32> to vector<1x64xf32>
    %15 = vector.shape_cast %14 : vector<1x64xf32> to vector<1x1x64xf32>
    %c0_12 = arith.constant 0 : index
    %c0_13 = arith.constant 0 : index
    %c0_14 = arith.constant 0 : index
    %16 = vector.load %arg6[%c0_12, %c0_13, %c0_14] : memref<1x1x64xf32, #tpu.memory_space<vmem>>, vector<1x1x64xf32>
    tpu.vector_store %arg6[%c0_12, %c0_13, %c0_14], %15 {strides = array<i32>} : memref<1x1x64xf32, #tpu.memory_space<vmem>>, vector<1x1x64xf32>,
    return
  }
  func.func @transform_0(%arg0: i32) -> (i32, i32) {
    %c0_i32 = arith.constant 0 : i32
    %c0_i32_0 = arith.constant 0 : i32
    return %arg0, %c0_i32 : i32, i32
  }
  func.func @transform_1(%arg0: i32) -> (i32, i32) {
    %c0_i32 = arith.constant 0 : i32
    %c0_i32_0 = arith.constant 0 : i32
    %c0_i32_1 = arith.constant 0 : i32
    return %c0_i32, %c0_i32_0 : i32, i32
  }
  func.func @transform_2(%arg0: i32) -> (i32, i32) {
    %c0_i32 = arith.constant 0 : i32
    %c0_i32_0 = arith.constant 0 : i32
    %c0_i32_1 = arith.constant 0 : i32
    return %c0_i32, %c0_i32_0 : i32, i32
  }
  func.func @transform_3(%arg0: i32) -> (i32, i32) {
    %c0_i32 = arith.constant 0 : i32
    %c0_i32_0 = arith.constant 0 : i32
    return %arg0, %c0_i32 : i32, i32
  }
  func.func @transform_4(%arg0: i32) -> (i32, i32, i32) {
    %c0_i32 = arith.constant 0 : i32
    %c0_i32_0 = arith.constant 0 : i32
    %c0_i32_1 = arith.constant 0 : i32
    return %arg0, %c0_i32, %c0_i32_0 : i32, i32, i32
  }
  func.func @transform_5(%arg0: i32) -> (i32, i32, i32) {
    %c0_i32 = arith.constant 0 : i32
    %c0_i32_0 = arith.constant 0 : i32
    %c0_i32_1 = arith.constant 0 : i32
    return %arg0, %c0_i32, %c0_i32_0 : i32, i32, i32
  }
}

module attributes {stable_mosaic.version = 11 : i64} {
  func.func @kern(%arg0: i32, %arg1: memref<1x128xbf16, #tpu.memory_space<vmem>>, %arg2: memref<1x128xf32, #tpu.memory_space<vmem>>, %arg3: memref<1x128xf32, #tpu.memory_space<vmem>>, %arg4: memref<1x128xbf16, #tpu.memory_space<vmem>>, %arg5: memref<1x128xf32, #tpu.memory_space<vmem>>, %arg6: memref<1x128xf32, #tpu.memory_space<vmem>>, %arg7: memref<1x128xbf16, #tpu.memory_space<vmem>>) attributes {dimension_semantics = [#tpu.dimension_semantics<parallel>], iteration_bounds = array<i64: 1>, scalar_prefetch = 0 : i64, scratch_operands = 0 : i64, tpu.core_type = #tpu.core_type<tc>, window_params = [{transform_indices = @transform_0, window_bounds = array<i64: 1, 128>}, {pipeline_mode = #tpu.pipeline_mode<synchronous>, transform_indices = @transform_1, window_bounds = array<i64: 1, 128>}, {pipeline_mode = #tpu.pipeline_mode<synchronous>, transform_indices = @transform_2, window_bounds = array<i64: 1, 128>}, {transform_indices = @transform_3, window_bounds = array<i64: 1, 128>}, {pipeline_mode = #tpu.pipeline_mode<synchronous>, transform_indices = @transform_4, window_bounds = array<i64: 1, 128>}, {pipeline_mode = #tpu.pipeline_mode<synchronous>, transform_indices = @transform_5, window_bounds = array<i64: 1, 128>}, {transform_indices = @transform_6, window_bounds = array<i64: 1, 128>}]} {
    %c0 = arith.constant 0 : index
    %c0_0 = arith.constant 0 : index
    %0 = vector.load %arg1[%c0, %c0_0] : memref<1x128xbf16, #tpu.memory_space<vmem>>, vector<1x128xbf16>
    %1 = arith.extf %0 : vector<1x128xbf16> to vector<1x128xf32>
    %c0_1 = arith.constant 0 : index
    %c0_2 = arith.constant 0 : index
    %2 = vector.load %arg2[%c0_1, %c0_2] : memref<1x128xf32, #tpu.memory_space<vmem>>, vector<1x128xf32>
    %3 = arith.mulf %1, %2 : vector<1x128xf32>
    %c0_3 = arith.constant 0 : index
    %c0_4 = arith.constant 0 : index
    %4 = vector.load %arg3[%c0_3, %c0_4] : memref<1x128xf32, #tpu.memory_space<vmem>>, vector<1x128xf32>
    %5 = arith.addf %3, %4 : vector<1x128xf32>
    %c0_5 = arith.constant 0 : index
    %c0_6 = arith.constant 0 : index
    %6 = vector.load %arg4[%c0_5, %c0_6] : memref<1x128xbf16, #tpu.memory_space<vmem>>, vector<1x128xbf16>
    %7 = arith.extf %6 : vector<1x128xbf16> to vector<1x128xf32>
    %c0_7 = arith.constant 0 : index
    %c0_8 = arith.constant 0 : index
    %8 = vector.load %arg5[%c0_7, %c0_8] : memref<1x128xf32, #tpu.memory_space<vmem>>, vector<1x128xf32>
    %9 = arith.mulf %7, %8 : vector<1x128xf32>
    %10 = arith.addf %5, %9 : vector<1x128xf32>
    %c0_9 = arith.constant 0 : index
    %c0_10 = arith.constant 0 : index
    %11 = vector.load %arg6[%c0_9, %c0_10] : memref<1x128xf32, #tpu.memory_space<vmem>>, vector<1x128xf32>
    %12 = arith.addf %10, %11 : vector<1x128xf32>
    %cst = arith.constant 0.000000e+00 : f32
    %13 = vector.broadcast %cst : f32 to vector<1x128xf32>
    %14 = arith.maximumf %12, %13 : vector<1x128xf32>
    %15 = arith.truncf %14 : vector<1x128xf32> to vector<1x128xbf16>
    %c0_11 = arith.constant 0 : index
    %c0_12 = arith.constant 0 : index
    %16 = vector.load %arg7[%c0_11, %c0_12] : memref<1x128xbf16, #tpu.memory_space<vmem>>, vector<1x128xbf16>
    tpu.vector_store %arg7[%c0_11, %c0_12], %15 {strides = array<i32>} : memref<1x128xbf16, #tpu.memory_space<vmem>>, vector<1x128xbf16>,
    return
  }
  func.func @transform_0(%arg0: i32) -> (i32, i32) {
    %c0_i32 = arith.constant 0 : i32
    %c0_i32_0 = arith.constant 0 : i32
    return %arg0, %c0_i32 : i32, i32
  }
  func.func @transform_1(%arg0: i32) -> (i32, i32) {
    %c0_i32 = arith.constant 0 : i32
    %c0_i32_0 = arith.constant 0 : i32
    %c0_i32_1 = arith.constant 0 : i32
    return %c0_i32, %c0_i32_0 : i32, i32
  }
  func.func @transform_2(%arg0: i32) -> (i32, i32) {
    %c0_i32 = arith.constant 0 : i32
    %c0_i32_0 = arith.constant 0 : i32
    %c0_i32_1 = arith.constant 0 : i32
    return %c0_i32, %c0_i32_0 : i32, i32
  }
  func.func @transform_3(%arg0: i32) -> (i32, i32) {
    %c0_i32 = arith.constant 0 : i32
    %c0_i32_0 = arith.constant 0 : i32
    return %arg0, %c0_i32 : i32, i32
  }
  func.func @transform_4(%arg0: i32) -> (i32, i32) {
    %c0_i32 = arith.constant 0 : i32
    %c0_i32_0 = arith.constant 0 : i32
    %c0_i32_1 = arith.constant 0 : i32
    return %c0_i32, %c0_i32_0 : i32, i32
  }
  func.func @transform_5(%arg0: i32) -> (i32, i32) {
    %c0_i32 = arith.constant 0 : i32
    %c0_i32_0 = arith.constant 0 : i32
    %c0_i32_1 = arith.constant 0 : i32
    return %c0_i32, %c0_i32_0 : i32, i32
  }
  func.func @transform_6(%arg0: i32) -> (i32, i32) {
    %c0_i32 = arith.constant 0 : i32
    %c0_i32_0 = arith.constant 0 : i32
    return %arg0, %c0_i32 : i32, i32
  }
}

module attributes {stable_mosaic.version = 11 : i64} {
  func.func @kern(%arg0: i32, %arg1: memref<1x128xbf16, #tpu.memory_space<vmem>>, %arg2: memref<1x128xf32, #tpu.memory_space<vmem>>, %arg3: memref<1x128xf32, #tpu.memory_space<vmem>>, %arg4: memref<1x128xbf16, #tpu.memory_space<vmem>>, %arg5: memref<1x128xbf16, #tpu.memory_space<vmem>>) attributes {dimension_semantics = [#tpu.dimension_semantics<parallel>], iteration_bounds = array<i64: 1>, scalar_prefetch = 0 : i64, scratch_operands = 0 : i64, tpu.core_type = #tpu.core_type<tc>, window_params = [{transform_indices = @transform_0, window_bounds = array<i64: 1, 128>}, {pipeline_mode = #tpu.pipeline_mode<synchronous>, transform_indices = @transform_1, window_bounds = array<i64: 1, 128>}, {pipeline_mode = #tpu.pipeline_mode<synchronous>, transform_indices = @transform_2, window_bounds = array<i64: 1, 128>}, {transform_indices = @transform_3, window_bounds = array<i64: 1, 128>}, {transform_indices = @transform_4, window_bounds = array<i64: 1, 128>}]} {
    %c0 = arith.constant 0 : index
    %c0_0 = arith.constant 0 : index
    %0 = vector.load %arg1[%c0, %c0_0] : memref<1x128xbf16, #tpu.memory_space<vmem>>, vector<1x128xbf16>
    %1 = arith.extf %0 : vector<1x128xbf16> to vector<1x128xf32>
    %c0_1 = arith.constant 0 : index
    %c0_2 = arith.constant 0 : index
    %2 = vector.load %arg2[%c0_1, %c0_2] : memref<1x128xf32, #tpu.memory_space<vmem>>, vector<1x128xf32>
    %3 = arith.mulf %1, %2 : vector<1x128xf32>
    %c0_3 = arith.constant 0 : index
    %c0_4 = arith.constant 0 : index
    %4 = vector.load %arg3[%c0_3, %c0_4] : memref<1x128xf32, #tpu.memory_space<vmem>>, vector<1x128xf32>
    %5 = arith.addf %3, %4 : vector<1x128xf32>
    %c0_5 = arith.constant 0 : index
    %c0_6 = arith.constant 0 : index
    %6 = vector.load %arg4[%c0_5, %c0_6] : memref<1x128xbf16, #tpu.memory_space<vmem>>, vector<1x128xbf16>
    %7 = arith.extf %6 : vector<1x128xbf16> to vector<1x128xf32>
    %8 = arith.addf %5, %7 : vector<1x128xf32>
    %cst = arith.constant 0.000000e+00 : f32
    %9 = vector.broadcast %cst : f32 to vector<1x128xf32>
    %10 = arith.maximumf %8, %9 : vector<1x128xf32>
    %11 = arith.truncf %10 : vector<1x128xf32> to vector<1x128xbf16>
    %c0_7 = arith.constant 0 : index
    %c0_8 = arith.constant 0 : index
    %12 = vector.load %arg5[%c0_7, %c0_8] : memref<1x128xbf16, #tpu.memory_space<vmem>>, vector<1x128xbf16>
    tpu.vector_store %arg5[%c0_7, %c0_8], %11 {strides = array<i32>} : memref<1x128xbf16, #tpu.memory_space<vmem>>, vector<1x128xbf16>,
    return
  }
  func.func @transform_0(%arg0: i32) -> (i32, i32) {
    %c0_i32 = arith.constant 0 : i32
    %c0_i32_0 = arith.constant 0 : i32
    return %arg0, %c0_i32 : i32, i32
  }
  func.func @transform_1(%arg0: i32) -> (i32, i32) {
    %c0_i32 = arith.constant 0 : i32
    %c0_i32_0 = arith.constant 0 : i32
    %c0_i32_1 = arith.constant 0 : i32
    return %c0_i32, %c0_i32_0 : i32, i32
  }
  func.func @transform_2(%arg0: i32) -> (i32, i32) {
    %c0_i32 = arith.constant 0 : i32
    %c0_i32_0 = arith.constant 0 : i32
    %c0_i32_1 = arith.constant 0 : i32
    return %c0_i32, %c0_i32_0 : i32, i32
  }
  func.func @transform_3(%arg0: i32) -> (i32, i32) {
    %c0_i32 = arith.constant 0 : i32
    %c0_i32_0 = arith.constant 0 : i32
    return %arg0, %c0_i32 : i32, i32
  }
  func.func @transform_4(%arg0: i32) -> (i32, i32) {
    %c0_i32 = arith.constant 0 : i32
    %c0_i32_0 = arith.constant 0 : i32
    return %arg0, %c0_i32 : i32, i32
  }
}

module attributes {stable_mosaic.version = 11 : i64} {
  func.func @_matmul_kernel(%arg0: i32, %arg1: memref<2x64xbf16, #tpu.memory_space<vmem>>, %arg2: memref<64x64xbf16, #tpu.memory_space<vmem>>, %arg3: memref<1x64xf32, #tpu.memory_space<vmem>>, %arg4: memref<2x64xbf16, #tpu.memory_space<vmem>>) attributes {dimension_semantics = [#tpu.dimension_semantics<parallel>], iteration_bounds = array<i64: 1>, scalar_prefetch = 0 : i64, scratch_operands = 0 : i64, tpu.core_type = #tpu.core_type<tc>, window_params = [{transform_indices = @transform_0, window_bounds = array<i64: 2, 64>}, {pipeline_mode = #tpu.pipeline_mode<synchronous>, transform_indices = @transform_1, window_bounds = array<i64: 64, 64>}, {pipeline_mode = #tpu.pipeline_mode<synchronous>, transform_indices = @transform_2, window_bounds = array<i64: 1, 64>}, {transform_indices = @transform_3, window_bounds = array<i64: 2, 64>}]} {
    %c0 = arith.constant 0 : index
    %c0_0 = arith.constant 0 : index
    %0 = vector.load %arg1[%c0, %c0_0] : memref<2x64xbf16, #tpu.memory_space<vmem>>, vector<2x64xbf16>
    %c0_1 = arith.constant 0 : index
    %c0_2 = arith.constant 0 : index
    %1 = vector.load %arg2[%c0_1, %c0_2] : memref<64x64xbf16, #tpu.memory_space<vmem>>, vector<64x64xbf16>
    %cst = arith.constant dense<0.000000e+00> : vector<2x64xf32>
    %2 = tpu.matmul %0, %1, %cst {dimension_numbers = #tpu.dot_dimension_numbers<[1], [0], [0], [1], [0, 0, 1, 1], [], []>} : vector<2x64xbf16>, vector<64x64xbf16>, vector<2x64xf32> -> vector<2x64xf32>
    %c0_3 = arith.constant 0 : index
    %c0_4 = arith.constant 0 : index
    %3 = vector.load %arg3[%c0_3, %c0_4] : memref<1x64xf32, #tpu.memory_space<vmem>>, vector<1x64xf32>
    %4 = vector.broadcast %3 : vector<1x64xf32> to vector<2x64xf32>
    %5 = arith.addf %2, %4 : vector<2x64xf32>
    %6 = arith.truncf %5 : vector<2x64xf32> to vector<2x64xbf16>
    %c0_5 = arith.constant 0 : index
    %c0_6 = arith.constant 0 : index
    %7 = vector.load %arg4[%c0_5, %c0_6] : memref<2x64xbf16, #tpu.memory_space<vmem>>, vector<2x64xbf16>
    tpu.vector_store %arg4[%c0_5, %c0_6], %6 {strides = array<i32>} : memref<2x64xbf16, #tpu.memory_space<vmem>>, vector<2x64xbf16>,
    return
  }
  func.func @transform_0(%arg0: i32) -> (i32, i32) {
    %c0_i32 = arith.constant 0 : i32
    %c0_i32_0 = arith.constant 0 : i32
    return %arg0, %c0_i32 : i32, i32
  }
  func.func @transform_1(%arg0: i32) -> (i32, i32) {
    %c0_i32 = arith.constant 0 : i32
    %c0_i32_0 = arith.constant 0 : i32
    %c0_i32_1 = arith.constant 0 : i32
    return %c0_i32, %c0_i32_0 : i32, i32
  }
  func.func @transform_2(%arg0: i32) -> (i32, i32) {
    %c0_i32 = arith.constant 0 : i32
    %c0_i32_0 = arith.constant 0 : i32
    %c0_i32_1 = arith.constant 0 : i32
    return %c0_i32, %c0_i32_0 : i32, i32
  }
  func.func @transform_3(%arg0: i32) -> (i32, i32) {
    %c0_i32 = arith.constant 0 : i32
    %c0_i32_0 = arith.constant 0 : i32
    return %arg0, %c0_i32 : i32, i32
  }
}

module attributes {stable_mosaic.version = 11 : i64} {
  func.func @_se_attn_kernel(%arg0: i32, %arg1: memref<1x2x8xbf16, #tpu.memory_space<vmem>>, %arg2: memref<1x2x8xbf16, #tpu.memory_space<vmem>>, %arg3: memref<1x2x8xbf16, #tpu.memory_space<vmem>>, %arg4: memref<64x8xf32, #tpu.memory_space<vmem>>, %arg5: memref<1x64xf32, #tpu.memory_space<vmem>>, %arg6: memref<8x64xf32, #tpu.memory_space<vmem>>, %arg7: memref<1x8xf32, #tpu.memory_space<vmem>>, %arg8: memref<1x2x8xbf16, #tpu.memory_space<vmem>>, %arg9: memref<1x2x8xbf16, #tpu.memory_space<vmem>>) attributes {dimension_semantics = [#tpu.dimension_semantics<parallel>], iteration_bounds = array<i64: 8>, scalar_prefetch = 0 : i64, scratch_operands = 0 : i64, tpu.core_type = #tpu.core_type<tc>, window_params = [{transform_indices = @transform_0, window_bounds = array<i64: 1, 2, 8>}, {transform_indices = @transform_1, window_bounds = array<i64: 1, 2, 8>}, {transform_indices = @transform_2, window_bounds = array<i64: 1, 2, 8>}, {pipeline_mode = #tpu.pipeline_mode<synchronous>, transform_indices = @transform_3, window_bounds = array<i64: 64, 8>}, {pipeline_mode = #tpu.pipeline_mode<synchronous>, transform_indices = @transform_4, window_bounds = array<i64: 1, 64>}, {pipeline_mode = #tpu.pipeline_mode<synchronous>, transform_indices = @transform_5, window_bounds = array<i64: 8, 64>}, {pipeline_mode = #tpu.pipeline_mode<synchronous>, transform_indices = @transform_6, window_bounds = array<i64: 1, 8>}, {transform_indices = @transform_7, window_bounds = array<i64: 1, 2, 8>}, {transform_indices = @transform_8, window_bounds = array<i64: 1, 2, 8>}]} {
    %c0 = arith.constant 0 : index
    %c0_0 = arith.constant 0 : index
    %c0_1 = arith.constant 0 : index
    %0 = vector.load %arg1[%c0, %c0_0, %c0_1] : memref<1x2x8xbf16, #tpu.memory_space<vmem>>, vector<1x2x8xbf16>
    %1 = vector.shape_cast %0 : vector<1x2x8xbf16> to vector<2x8xbf16>
    %c0_2 = arith.constant 0 : index
    %c0_3 = arith.constant 0 : index
    %c0_4 = arith.constant 0 : index
    %2 = vector.load %arg2[%c0_2, %c0_3, %c0_4] : memref<1x2x8xbf16, #tpu.memory_space<vmem>>, vector<1x2x8xbf16>
    %3 = vector.shape_cast %2 : vector<1x2x8xbf16> to vector<2x8xbf16>
    %c0_5 = arith.constant 0 : index
    %c0_6 = arith.constant 0 : index
    %c0_7 = arith.constant 0 : index
    %4 = vector.load %arg3[%c0_5, %c0_6, %c0_7] : memref<1x2x8xbf16, #tpu.memory_space<vmem>>, vector<1x2x8xbf16>
    %5 = vector.shape_cast %4 : vector<1x2x8xbf16> to vector<2x8xbf16>
    %cst = arith.constant dense<0.000000e+00> : vector<2x2xf32>
    %6 = tpu.matmul %1, %3, %cst {dimension_numbers = #tpu.dot_dimension_numbers<[1], [1], [0], [0], [0, 0, 1, 0], [], []>} : vector<2x8xbf16>, vector<2x8xbf16>, vector<2x2xf32> -> vector<2x2xf32>
    %cst_8 = arith.constant 0.353553385 : f32
    %7 = vector.broadcast %cst_8 : f32 to vector<2x2xf32>
    %8 = arith.mulf %6, %7 : vector<2x2xf32>
    %cst_9 = arith.constant dense<0xFF800000> : vector<2xf32>
    %9 = vector.multi_reduction <maximumf>, %8, %cst_9 [1] : vector<2x2xf32> to vector<2xf32>
    %10 = vector.shape_cast %9 : vector<2xf32> to vector<2x1xf32>
    %11 = vector.broadcast %10 : vector<2x1xf32> to vector<2x2xf32>
    %12 = arith.subf %8, %11 : vector<2x2xf32>
    %13 = math.exp %12 : vector<2x2xf32>
    %cst_10 = arith.constant dense<0.000000e+00> : vector<2xf32>
    %14 = vector.multi_reduction <add>, %13, %cst_10 [1] : vector<2x2xf32> to vector<2xf32>
    %15 = vector.shape_cast %14 : vector<2xf32> to vector<2x1xf32>
    %16 = vector.broadcast %15 : vector<2x1xf32> to vector<2x2xf32>
    %17 = arith.divf %13, %16 : vector<2x2xf32>
    %18 = arith.truncf %17 : vector<2x2xf32> to vector<2x2xbf16>
    %cst_11 = arith.constant dense<0.000000e+00> : vector<2x8xf32>
    %19 = tpu.matmul %18, %5, %cst_11 {dimension_numbers = #tpu.dot_dimension_numbers<[1], [0], [0], [1], [0, 0, 1, 1], [], []>} : vector<2x2xbf16>, vector<2x8xbf16>, vector<2x8xf32> -> vector<2x8xf32>
    %20 = arith.truncf %19 : vector<2x8xf32> to vector<2x8xbf16>
    %c0_12 = arith.constant 0 : index
    %c0_13 = arith.constant 0 : index
    %c0_14 = arith.constant 0 : index
    %21 = vector.load %arg8[%c0_12, %c0_13, %c0_14] : memref<1x2x8xbf16, #tpu.memory_space<vmem>>, vector<1x2x8xbf16>
    %22 = vector.shape_cast %21 : vector<1x2x8xbf16> to vector<2x8xbf16>
    %23 = vector.shape_cast %20 : vector<2x8xbf16> to vector<1x2x8xbf16>
    tpu.vector_store %arg8[%c0_12, %c0_13, %c0_14], %23 {strides = array<i32>} : memref<1x2x8xbf16, #tpu.memory_space<vmem>>, vector<1x2x8xbf16>,
    %c0_15 = arith.constant 0 : index
    %c0_16 = arith.constant 0 : index
    %24 = vector.load %arg4[%c0_15, %c0_16] : memref<64x8xf32, #tpu.memory_space<vmem>>, vector<64x8xf32>
    %25 = arith.truncf %24 : vector<64x8xf32> to vector<64x8xbf16>
    %cst_17 = arith.constant dense<0.000000e+00> : vector<2x64xf32>
    %26 = tpu.matmul %1, %25, %cst_17 {dimension_numbers = #tpu.dot_dimension_numbers<[1], [1], [0], [0], [0, 0, 1, 0], [], []>} : vector<2x8xbf16>, vector<64x8xbf16>, vector<2x64xf32> -> vector<2x64xf32>
    %c0_18 = arith.constant 0 : index
    %c0_19 = arith.constant 0 : index
    %27 = vector.load %arg5[%c0_18, %c0_19] : memref<1x64xf32, #tpu.memory_space<vmem>>, vector<1x64xf32>
    %28 = vector.broadcast %27 : vector<1x64xf32> to vector<2x64xf32>
    %29 = arith.addf %26, %28 : vector<2x64xf32>
    %cst_20 = arith.constant dense<0xFF800000> : vector<64xf32>
    %30 = vector.multi_reduction <maximumf>, %29, %cst_20 [0] : vector<2x64xf32> to vector<64xf32>
    %31 = vector.shape_cast %30 : vector<64xf32> to vector<1x64xf32>
    %32 = vector.broadcast %31 : vector<1x64xf32> to vector<2x64xf32>
    %33 = arith.subf %29, %32 : vector<2x64xf32>
    %34 = math.exp %33 : vector<2x64xf32>
    %cst_21 = arith.constant dense<0.000000e+00> : vector<64xf32>
    %35 = vector.multi_reduction <add>, %34, %cst_21 [0] : vector<2x64xf32> to vector<64xf32>
    %36 = vector.shape_cast %35 : vector<64xf32> to vector<1x64xf32>
    %37 = vector.broadcast %36 : vector<1x64xf32> to vector<2x64xf32>
    %38 = arith.divf %34, %37 : vector<2x64xf32>
    %cst_22 = arith.constant dense<0.000000e+00> : vector<2xf32>
    %39 = vector.multi_reduction <add>, %38, %cst_22 [1] : vector<2x64xf32> to vector<2xf32>
    %40 = vector.shape_cast %39 : vector<2xf32> to vector<2x1xf32>
    %cst_23 = arith.constant 9.99999971E-10 : f32
    %41 = vector.broadcast %cst_23 : f32 to vector<2x1xf32>
    %42 = arith.addf %41, %40 : vector<2x1xf32>
    %43 = vector.broadcast %42 : vector<2x1xf32> to vector<2x64xf32>
    %44 = arith.divf %38, %43 : vector<2x64xf32>
    %c0_24 = arith.constant 0 : index
    %c0_25 = arith.constant 0 : index
    %45 = vector.load %arg6[%c0_24, %c0_25] : memref<8x64xf32, #tpu.memory_space<vmem>>, vector<8x64xf32>
    %46 = arith.truncf %45 : vector<8x64xf32> to vector<8x64xbf16>
    %47 = arith.truncf %44 : vector<2x64xf32> to vector<2x64xbf16>
    %cst_26 = arith.constant dense<0.000000e+00> : vector<2x8xf32>
    %48 = tpu.matmul %47, %46, %cst_26 {dimension_numbers = #tpu.dot_dimension_numbers<[1], [1], [0], [0], [0, 0, 1, 0], [], []>} : vector<2x64xbf16>, vector<8x64xbf16>, vector<2x8xf32> -> vector<2x8xf32>
    %c0_27 = arith.constant 0 : index
    %c0_28 = arith.constant 0 : index
    %49 = vector.load %arg7[%c0_27, %c0_28] : memref<1x8xf32, #tpu.memory_space<vmem>>, vector<1x8xf32>
    %50 = vector.broadcast %49 : vector<1x8xf32> to vector<2x8xf32>
    %51 = arith.addf %48, %50 : vector<2x8xf32>
    %52 = arith.truncf %51 : vector<2x8xf32> to vector<2x8xbf16>
    %c0_29 = arith.constant 0 : index
    %c0_30 = arith.constant 0 : index
    %c0_31 = arith.constant 0 : index
    %53 = vector.load %arg9[%c0_29, %c0_30, %c0_31] : memref<1x2x8xbf16, #tpu.memory_space<vmem>>, vector<1x2x8xbf16>
    %54 = vector.shape_cast %53 : vector<1x2x8xbf16> to vector<2x8xbf16>
    %55 = vector.shape_cast %52 : vector<2x8xbf16> to vector<1x2x8xbf16>
    tpu.vector_store %arg9[%c0_29, %c0_30, %c0_31], %55 {strides = array<i32>} : memref<1x2x8xbf16, #tpu.memory_space<vmem>>, vector<1x2x8xbf16>,
    return
  }
  func.func @transform_0(%arg0: i32) -> (i32, i32, i32) {
    %c0_i32 = arith.constant 0 : i32
    %c0_i32_0 = arith.constant 0 : i32
    %c0_i32_1 = arith.constant 0 : i32
    return %arg0, %c0_i32, %c0_i32_0 : i32, i32, i32
  }
  func.func @transform_1(%arg0: i32) -> (i32, i32, i32) {
    %c0_i32 = arith.constant 0 : i32
    %c0_i32_0 = arith.constant 0 : i32
    %c0_i32_1 = arith.constant 0 : i32
    return %arg0, %c0_i32, %c0_i32_0 : i32, i32, i32
  }
  func.func @transform_2(%arg0: i32) -> (i32, i32, i32) {
    %c0_i32 = arith.constant 0 : i32
    %c0_i32_0 = arith.constant 0 : i32
    %c0_i32_1 = arith.constant 0 : i32
    return %arg0, %c0_i32, %c0_i32_0 : i32, i32, i32
  }
  func.func @transform_3(%arg0: i32) -> (i32, i32) {
    %c0_i32 = arith.constant 0 : i32
    %c0_i32_0 = arith.constant 0 : i32
    %c0_i32_1 = arith.constant 0 : i32
    return %c0_i32, %c0_i32_0 : i32, i32
  }
  func.func @transform_4(%arg0: i32) -> (i32, i32) {
    %c0_i32 = arith.constant 0 : i32
    %c0_i32_0 = arith.constant 0 : i32
    %c0_i32_1 = arith.constant 0 : i32
    return %c0_i32, %c0_i32_0 : i32, i32
  }
  func.func @transform_5(%arg0: i32) -> (i32, i32) {
    %c0_i32 = arith.constant 0 : i32
    %c0_i32_0 = arith.constant 0 : i32
    %c0_i32_1 = arith.constant 0 : i32
    return %c0_i32, %c0_i32_0 : i32, i32
  }
  func.func @transform_6(%arg0: i32) -> (i32, i32) {
    %c0_i32 = arith.constant 0 : i32
    %c0_i32_0 = arith.constant 0 : i32
    %c0_i32_1 = arith.constant 0 : i32
    return %c0_i32, %c0_i32_0 : i32, i32
  }
  func.func @transform_7(%arg0: i32) -> (i32, i32, i32) {
    %c0_i32 = arith.constant 0 : i32
    %c0_i32_0 = arith.constant 0 : i32
    %c0_i32_1 = arith.constant 0 : i32
    return %arg0, %c0_i32, %c0_i32_0 : i32, i32, i32
  }
  func.func @transform_8(%arg0: i32) -> (i32, i32, i32) {
    %c0_i32 = arith.constant 0 : i32
    %c0_i32_0 = arith.constant 0 : i32
    %c0_i32_1 = arith.constant 0 : i32
    return %arg0, %c0_i32, %c0_i32_0 : i32, i32, i32
  }
}

module attributes {stable_mosaic.version = 11 : i64} {
  func.func @_matmul_kernel(%arg0: i32, %arg1: memref<2x128xbf16, #tpu.memory_space<vmem>>, %arg2: memref<128x64xbf16, #tpu.memory_space<vmem>>, %arg3: memref<1x64xf32, #tpu.memory_space<vmem>>, %arg4: memref<2x64xbf16, #tpu.memory_space<vmem>>) attributes {dimension_semantics = [#tpu.dimension_semantics<parallel>], iteration_bounds = array<i64: 1>, scalar_prefetch = 0 : i64, scratch_operands = 0 : i64, tpu.core_type = #tpu.core_type<tc>, window_params = [{transform_indices = @transform_0, window_bounds = array<i64: 2, 128>}, {pipeline_mode = #tpu.pipeline_mode<synchronous>, transform_indices = @transform_1, window_bounds = array<i64: 128, 64>}, {pipeline_mode = #tpu.pipeline_mode<synchronous>, transform_indices = @transform_2, window_bounds = array<i64: 1, 64>}, {transform_indices = @transform_3, window_bounds = array<i64: 2, 64>}]} {
    %c0 = arith.constant 0 : index
    %c0_0 = arith.constant 0 : index
    %0 = vector.load %arg1[%c0, %c0_0] : memref<2x128xbf16, #tpu.memory_space<vmem>>, vector<2x128xbf16>
    %c0_1 = arith.constant 0 : index
    %c0_2 = arith.constant 0 : index
    %1 = vector.load %arg2[%c0_1, %c0_2] : memref<128x64xbf16, #tpu.memory_space<vmem>>, vector<128x64xbf16>
    %cst = arith.constant dense<0.000000e+00> : vector<2x64xf32>
    %2 = tpu.matmul %0, %1, %cst {dimension_numbers = #tpu.dot_dimension_numbers<[1], [0], [0], [1], [0, 0, 1, 1], [], []>} : vector<2x128xbf16>, vector<128x64xbf16>, vector<2x64xf32> -> vector<2x64xf32>
    %c0_3 = arith.constant 0 : index
    %c0_4 = arith.constant 0 : index
    %3 = vector.load %arg3[%c0_3, %c0_4] : memref<1x64xf32, #tpu.memory_space<vmem>>, vector<1x64xf32>
    %4 = vector.broadcast %3 : vector<1x64xf32> to vector<2x64xf32>
    %5 = arith.addf %2, %4 : vector<2x64xf32>
    %6 = arith.truncf %5 : vector<2x64xf32> to vector<2x64xbf16>
    %c0_5 = arith.constant 0 : index
    %c0_6 = arith.constant 0 : index
    %7 = vector.load %arg4[%c0_5, %c0_6] : memref<2x64xbf16, #tpu.memory_space<vmem>>, vector<2x64xbf16>
    tpu.vector_store %arg4[%c0_5, %c0_6], %6 {strides = array<i32>} : memref<2x64xbf16, #tpu.memory_space<vmem>>, vector<2x64xbf16>,
    return
  }
  func.func @transform_0(%arg0: i32) -> (i32, i32) {
    %c0_i32 = arith.constant 0 : i32
    %c0_i32_0 = arith.constant 0 : i32
    return %arg0, %c0_i32 : i32, i32
  }
  func.func @transform_1(%arg0: i32) -> (i32, i32) {
    %c0_i32 = arith.constant 0 : i32
    %c0_i32_0 = arith.constant 0 : i32
    %c0_i32_1 = arith.constant 0 : i32
    return %c0_i32, %c0_i32_0 : i32, i32
  }
  func.func @transform_2(%arg0: i32) -> (i32, i32) {
    %c0_i32 = arith.constant 0 : i32
    %c0_i32_0 = arith.constant 0 : i32
    %c0_i32_1 = arith.constant 0 : i32
    return %c0_i32, %c0_i32_0 : i32, i32
  }
  func.func @transform_3(%arg0: i32) -> (i32, i32) {
    %c0_i32 = arith.constant 0 : i32
    %c0_i32_0 = arith.constant 0 : i32
    return %arg0, %c0_i32 : i32, i32
  }
}

module attributes {stable_mosaic.version = 11 : i64} {
  func.func @_cross_attn_kernel(%arg0: i32, %arg1: memref<1x2x8xbf16, #tpu.memory_space<vmem>>, %arg2: memref<1x2x8xbf16, #tpu.memory_space<vmem>>, %arg3: memref<1x2x8xbf16, #tpu.memory_space<vmem>>, %arg4: memref<1x2x8xbf16, #tpu.memory_space<vmem>>, %arg5: memref<1x2x8xbf16, #tpu.memory_space<vmem>>, %arg6: memref<1x2x8xbf16, #tpu.memory_space<vmem>>) attributes {dimension_semantics = [#tpu.dimension_semantics<parallel>], iteration_bounds = array<i64: 8>, scalar_prefetch = 0 : i64, scratch_operands = 0 : i64, tpu.core_type = #tpu.core_type<tc>, window_params = [{transform_indices = @transform_0, window_bounds = array<i64: 1, 2, 8>}, {transform_indices = @transform_1, window_bounds = array<i64: 1, 2, 8>}, {transform_indices = @transform_2, window_bounds = array<i64: 1, 2, 8>}, {transform_indices = @transform_3, window_bounds = array<i64: 1, 2, 8>}, {transform_indices = @transform_4, window_bounds = array<i64: 1, 2, 8>}, {transform_indices = @transform_5, window_bounds = array<i64: 1, 2, 8>}]} {
    %c0 = arith.constant 0 : index
    %c0_0 = arith.constant 0 : index
    %c0_1 = arith.constant 0 : index
    %0 = vector.load %arg1[%c0, %c0_0, %c0_1] : memref<1x2x8xbf16, #tpu.memory_space<vmem>>, vector<1x2x8xbf16>
    %1 = vector.shape_cast %0 : vector<1x2x8xbf16> to vector<2x8xbf16>
    %c0_2 = arith.constant 0 : index
    %c0_3 = arith.constant 0 : index
    %c0_4 = arith.constant 0 : index
    %2 = vector.load %arg2[%c0_2, %c0_3, %c0_4] : memref<1x2x8xbf16, #tpu.memory_space<vmem>>, vector<1x2x8xbf16>
    %3 = vector.shape_cast %2 : vector<1x2x8xbf16> to vector<2x8xbf16>
    %cst = arith.constant dense<0.000000e+00> : vector<2x2xf32>
    %4 = tpu.matmul %1, %3, %cst {dimension_numbers = #tpu.dot_dimension_numbers<[1], [1], [0], [0], [0, 0, 1, 0], [], []>} : vector<2x8xbf16>, vector<2x8xbf16>, vector<2x2xf32> -> vector<2x2xf32>
    %cst_5 = arith.constant 0.353553385 : f32
    %5 = vector.broadcast %cst_5 : f32 to vector<2x2xf32>
    %6 = arith.mulf %4, %5 : vector<2x2xf32>
    %cst_6 = arith.constant dense<0xFF800000> : vector<2xf32>
    %7 = vector.multi_reduction <maximumf>, %6, %cst_6 [0] : vector<2x2xf32> to vector<2xf32>
    %8 = vector.shape_cast %7 : vector<2xf32> to vector<1x2xf32>
    %9 = vector.broadcast %8 : vector<1x2xf32> to vector<2x2xf32>
    %10 = arith.subf %6, %9 : vector<2x2xf32>
    %11 = math.exp %10 : vector<2x2xf32>
    %cst_7 = arith.constant dense<0.000000e+00> : vector<2xf32>
    %12 = vector.multi_reduction <add>, %11, %cst_7 [0] : vector<2x2xf32> to vector<2xf32>
    %13 = vector.shape_cast %12 : vector<2xf32> to vector<1x2xf32>
    %14 = vector.broadcast %13 : vector<1x2xf32> to vector<2x2xf32>
    %15 = arith.divf %11, %14 : vector<2x2xf32>
    %cst_8 = arith.constant dense<0xFF800000> : vector<2xf32>
    %16 = vector.multi_reduction <maximumf>, %6, %cst_8 [1] : vector<2x2xf32> to vector<2xf32>
    %17 = vector.shape_cast %16 : vector<2xf32> to vector<2x1xf32>
    %18 = vector.broadcast %17 : vector<2x1xf32> to vector<2x2xf32>
    %19 = arith.subf %6, %18 : vector<2x2xf32>
    %20 = math.exp %19 : vector<2x2xf32>
    %cst_9 = arith.constant dense<0.000000e+00> : vector<2xf32>
    %21 = vector.multi_reduction <add>, %20, %cst_9 [1] : vector<2x2xf32> to vector<2xf32>
    %22 = vector.shape_cast %21 : vector<2xf32> to vector<2x1xf32>
    %23 = vector.broadcast %22 : vector<2x1xf32> to vector<2x2xf32>
    %24 = arith.divf %20, %23 : vector<2x2xf32>
    %c0_10 = arith.constant 0 : index
    %c0_11 = arith.constant 0 : index
    %c0_12 = arith.constant 0 : index
    %25 = vector.load %arg3[%c0_10, %c0_11, %c0_12] : memref<1x2x8xbf16, #tpu.memory_space<vmem>>, vector<1x2x8xbf16>
    %26 = vector.shape_cast %25 : vector<1x2x8xbf16> to vector<2x8xbf16>
    %c0_13 = arith.constant 0 : index
    %c0_14 = arith.constant 0 : index
    %c0_15 = arith.constant 0 : index
    %27 = vector.load %arg4[%c0_13, %c0_14, %c0_15] : memref<1x2x8xbf16, #tpu.memory_space<vmem>>, vector<1x2x8xbf16>
    %28 = vector.shape_cast %27 : vector<1x2x8xbf16> to vector<2x8xbf16>
    %29 = arith.truncf %15 : vector<2x2xf32> to vector<2x2xbf16>
    %cst_16 = arith.constant dense<0.000000e+00> : vector<2x8xf32>
    %30 = tpu.matmul %29, %26, %cst_16 {dimension_numbers = #tpu.dot_dimension_numbers<[1], [0], [0], [1], [0, 0, 1, 1], [], []>} : vector<2x2xbf16>, vector<2x8xbf16>, vector<2x8xf32> -> vector<2x8xf32>
    %31 = arith.truncf %30 : vector<2x8xf32> to vector<2x8xbf16>
    %c0_17 = arith.constant 0 : index
    %c0_18 = arith.constant 0 : index
    %c0_19 = arith.constant 0 : index
    %32 = vector.load %arg5[%c0_17, %c0_18, %c0_19] : memref<1x2x8xbf16, #tpu.memory_space<vmem>>, vector<1x2x8xbf16>
    %33 = vector.shape_cast %32 : vector<1x2x8xbf16> to vector<2x8xbf16>
    %34 = vector.shape_cast %31 : vector<2x8xbf16> to vector<1x2x8xbf16>
    tpu.vector_store %arg5[%c0_17, %c0_18, %c0_19], %34 {strides = array<i32>} : memref<1x2x8xbf16, #tpu.memory_space<vmem>>, vector<1x2x8xbf16>,
    %35 = arith.truncf %24 : vector<2x2xf32> to vector<2x2xbf16>
    %cst_20 = arith.constant dense<0.000000e+00> : vector<2x8xf32>
    %36 = tpu.matmul %35, %28, %cst_20 {dimension_numbers = #tpu.dot_dimension_numbers<[0], [0], [1], [1], [0, 1, 1, 1], [], []>} : vector<2x2xbf16>, vector<2x8xbf16>, vector<2x8xf32> -> vector<2x8xf32>
    %37 = arith.truncf %36 : vector<2x8xf32> to vector<2x8xbf16>
    %c0_21 = arith.constant 0 : index
    %c0_22 = arith.constant 0 : index
    %c0_23 = arith.constant 0 : index
    %38 = vector.load %arg6[%c0_21, %c0_22, %c0_23] : memref<1x2x8xbf16, #tpu.memory_space<vmem>>, vector<1x2x8xbf16>
    %39 = vector.shape_cast %38 : vector<1x2x8xbf16> to vector<2x8xbf16>
    %40 = vector.shape_cast %37 : vector<2x8xbf16> to vector<1x2x8xbf16>
    tpu.vector_store %arg6[%c0_21, %c0_22, %c0_23], %40 {strides = array<i32>} : memref<1x2x8xbf16, #tpu.memory_space<vmem>>, vector<1x2x8xbf16>,
    return
  }
  func.func @transform_0(%arg0: i32) -> (i32, i32, i32) {
    %c0_i32 = arith.constant 0 : i32
    %c0_i32_0 = arith.constant 0 : i32
    %c0_i32_1 = arith.constant 0 : i32
    return %arg0, %c0_i32, %c0_i32_0 : i32, i32, i32
  }
  func.func @transform_1(%arg0: i32) -> (i32, i32, i32) {
    %c0_i32 = arith.constant 0 : i32
    %c0_i32_0 = arith.constant 0 : i32
    %c0_i32_1 = arith.constant 0 : i32
    return %arg0, %c0_i32, %c0_i32_0 : i32, i32, i32
  }
  func.func @transform_2(%arg0: i32) -> (i32, i32, i32) {
    %c0_i32 = arith.constant 0 : i32
    %c0_i32_0 = arith.constant 0 : i32
    %c0_i32_1 = arith.constant 0 : i32
    return %arg0, %c0_i32, %c0_i32_0 : i32, i32, i32
  }
  func.func @transform_3(%arg0: i32) -> (i32, i32, i32) {
    %c0_i32 = arith.constant 0 : i32
    %c0_i32_0 = arith.constant 0 : i32
    %c0_i32_1 = arith.constant 0 : i32
    return %arg0, %c0_i32, %c0_i32_0 : i32, i32, i32
  }
  func.func @transform_4(%arg0: i32) -> (i32, i32, i32) {
    %c0_i32 = arith.constant 0 : i32
    %c0_i32_0 = arith.constant 0 : i32
    %c0_i32_1 = arith.constant 0 : i32
    return %arg0, %c0_i32, %c0_i32_0 : i32, i32, i32
  }
  func.func @transform_5(%arg0: i32) -> (i32, i32, i32) {
    %c0_i32 = arith.constant 0 : i32
    %c0_i32_0 = arith.constant 0 : i32
    %c0_i32_1 = arith.constant 0 : i32
    return %arg0, %c0_i32, %c0_i32_0 : i32, i32, i32
  }
}

module attributes {stable_mosaic.version = 11 : i64} {
  func.func @_matmul_kernel(%arg0: i32, %arg1: memref<2x128xbf16, #tpu.memory_space<vmem>>, %arg2: memref<128x64xbf16, #tpu.memory_space<vmem>>, %arg3: memref<1x64xf32, #tpu.memory_space<vmem>>, %arg4: memref<2x64xbf16, #tpu.memory_space<vmem>>) attributes {dimension_semantics = [#tpu.dimension_semantics<parallel>], iteration_bounds = array<i64: 1>, scalar_prefetch = 0 : i64, scratch_operands = 0 : i64, tpu.core_type = #tpu.core_type<tc>, window_params = [{transform_indices = @transform_0, window_bounds = array<i64: 2, 128>}, {pipeline_mode = #tpu.pipeline_mode<synchronous>, transform_indices = @transform_1, window_bounds = array<i64: 128, 64>}, {pipeline_mode = #tpu.pipeline_mode<synchronous>, transform_indices = @transform_2, window_bounds = array<i64: 1, 64>}, {transform_indices = @transform_3, window_bounds = array<i64: 2, 64>}]} {
    %c0 = arith.constant 0 : index
    %c0_0 = arith.constant 0 : index
    %0 = vector.load %arg1[%c0, %c0_0] : memref<2x128xbf16, #tpu.memory_space<vmem>>, vector<2x128xbf16>
    %c0_1 = arith.constant 0 : index
    %c0_2 = arith.constant 0 : index
    %1 = vector.load %arg2[%c0_1, %c0_2] : memref<128x64xbf16, #tpu.memory_space<vmem>>, vector<128x64xbf16>
    %cst = arith.constant dense<0.000000e+00> : vector<2x64xf32>
    %2 = tpu.matmul %0, %1, %cst {dimension_numbers = #tpu.dot_dimension_numbers<[1], [0], [0], [1], [0, 0, 1, 1], [], []>} : vector<2x128xbf16>, vector<128x64xbf16>, vector<2x64xf32> -> vector<2x64xf32>
    %c0_3 = arith.constant 0 : index
    %c0_4 = arith.constant 0 : index
    %3 = vector.load %arg3[%c0_3, %c0_4] : memref<1x64xf32, #tpu.memory_space<vmem>>, vector<1x64xf32>
    %4 = vector.broadcast %3 : vector<1x64xf32> to vector<2x64xf32>
    %5 = arith.addf %2, %4 : vector<2x64xf32>
    %6 = arith.truncf %5 : vector<2x64xf32> to vector<2x64xbf16>
    %c0_5 = arith.constant 0 : index
    %c0_6 = arith.constant 0 : index
    %7 = vector.load %arg4[%c0_5, %c0_6] : memref<2x64xbf16, #tpu.memory_space<vmem>>, vector<2x64xbf16>
    tpu.vector_store %arg4[%c0_5, %c0_6], %6 {strides = array<i32>} : memref<2x64xbf16, #tpu.memory_space<vmem>>, vector<2x64xbf16>,
    return
  }
  func.func @transform_0(%arg0: i32) -> (i32, i32) {
    %c0_i32 = arith.constant 0 : i32
    %c0_i32_0 = arith.constant 0 : i32
    return %arg0, %c0_i32 : i32, i32
  }
  func.func @transform_1(%arg0: i32) -> (i32, i32) {
    %c0_i32 = arith.constant 0 : i32
    %c0_i32_0 = arith.constant 0 : i32
    %c0_i32_1 = arith.constant 0 : i32
    return %c0_i32, %c0_i32_0 : i32, i32
  }
  func.func @transform_2(%arg0: i32) -> (i32, i32) {
    %c0_i32 = arith.constant 0 : i32
    %c0_i32_0 = arith.constant 0 : i32
    %c0_i32_1 = arith.constant 0 : i32
    return %c0_i32, %c0_i32_0 : i32, i32
  }
  func.func @transform_3(%arg0: i32) -> (i32, i32) {
    %c0_i32 = arith.constant 0 : i32
    %c0_i32_0 = arith.constant 0 : i32
    return %arg0, %c0_i32 : i32, i32
  }
}

module attributes {stable_mosaic.version = 11 : i64} {
  func.func @_matmul_stats_kernel(%arg0: i32, %arg1: memref<8x6912xbf16, #tpu.memory_space<vmem>>, %arg2: memref<6912x32xbf16, #tpu.memory_space<vmem>>, %arg3: memref<1x32xf32, #tpu.memory_space<vmem>>, %arg4: memref<8x32xbf16, #tpu.memory_space<vmem>>, %arg5: memref<1x1x32xf32, #tpu.memory_space<vmem>>, %arg6: memref<1x1x32xf32, #tpu.memory_space<vmem>>) attributes {dimension_semantics = [#tpu.dimension_semantics<parallel>], iteration_bounds = array<i64: 2>, scalar_prefetch = 0 : i64, scratch_operands = 0 : i64, tpu.core_type = #tpu.core_type<tc>, window_params = [{transform_indices = @transform_0, window_bounds = array<i64: 8, 6912>}, {pipeline_mode = #tpu.pipeline_mode<synchronous>, transform_indices = @transform_1, window_bounds = array<i64: 6912, 32>}, {pipeline_mode = #tpu.pipeline_mode<synchronous>, transform_indices = @transform_2, window_bounds = array<i64: 1, 32>}, {transform_indices = @transform_3, window_bounds = array<i64: 8, 32>}, {transform_indices = @transform_4, window_bounds = array<i64: 1, 1, 32>}, {transform_indices = @transform_5, window_bounds = array<i64: 1, 1, 32>}]} {
    %c0 = arith.constant 0 : index
    %c0_0 = arith.constant 0 : index
    %0 = vector.load %arg1[%c0, %c0_0] : memref<8x6912xbf16, #tpu.memory_space<vmem>>, vector<8x6912xbf16>
    %c0_1 = arith.constant 0 : index
    %c0_2 = arith.constant 0 : index
    %1 = vector.load %arg2[%c0_1, %c0_2] : memref<6912x32xbf16, #tpu.memory_space<vmem>>, vector<6912x32xbf16>
    %cst = arith.constant dense<0.000000e+00> : vector<8x32xf32>
    %2 = tpu.matmul %0, %1, %cst {dimension_numbers = #tpu.dot_dimension_numbers<[1], [0], [0], [1], [0, 0, 1, 1], [], []>} : vector<8x6912xbf16>, vector<6912x32xbf16>, vector<8x32xf32> -> vector<8x32xf32>
    %c0_3 = arith.constant 0 : index
    %c0_4 = arith.constant 0 : index
    %3 = vector.load %arg3[%c0_3, %c0_4] : memref<1x32xf32, #tpu.memory_space<vmem>>, vector<1x32xf32>
    %4 = vector.broadcast %3 : vector<1x32xf32> to vector<8x32xf32>
    %5 = arith.addf %2, %4 : vector<8x32xf32>
    %6 = arith.truncf %5 : vector<8x32xf32> to vector<8x32xbf16>
    %c0_5 = arith.constant 0 : index
    %c0_6 = arith.constant 0 : index
    %7 = vector.load %arg4[%c0_5, %c0_6] : memref<8x32xbf16, #tpu.memory_space<vmem>>, vector<8x32xbf16>
    tpu.vector_store %arg4[%c0_5, %c0_6], %6 {strides = array<i32>} : memref<8x32xbf16, #tpu.memory_space<vmem>>, vector<8x32xbf16>,
    %cst_7 = arith.constant dense<0.000000e+00> : vector<32xf32>
    %8 = vector.multi_reduction <add>, %5, %cst_7 [0] : vector<8x32xf32> to vector<32xf32>
    %9 = vector.shape_cast %8 : vector<32xf32> to vector<1x32xf32>
    %10 = vector.shape_cast %9 : vector<1x32xf32> to vector<1x1x32xf32>
    %c0_8 = arith.constant 0 : index
    %c0_9 = arith.constant 0 : index
    %c0_10 = arith.constant 0 : index
    %11 = vector.load %arg5[%c0_8, %c0_9, %c0_10] : memref<1x1x32xf32, #tpu.memory_space<vmem>>, vector<1x1x32xf32>
    tpu.vector_store %arg5[%c0_8, %c0_9, %c0_10], %10 {strides = array<i32>} : memref<1x1x32xf32, #tpu.memory_space<vmem>>, vector<1x1x32xf32>,
    %12 = arith.mulf %5, %5 : vector<8x32xf32>
    %cst_11 = arith.constant dense<0.000000e+00> : vector<32xf32>
    %13 = vector.multi_reduction <add>, %12, %cst_11 [0] : vector<8x32xf32> to vector<32xf32>
    %14 = vector.shape_cast %13 : vector<32xf32> to vector<1x32xf32>
    %15 = vector.shape_cast %14 : vector<1x32xf32> to vector<1x1x32xf32>
    %c0_12 = arith.constant 0 : index
    %c0_13 = arith.constant 0 : index
    %c0_14 = arith.constant 0 : index
    %16 = vector.load %arg6[%c0_12, %c0_13, %c0_14] : memref<1x1x32xf32, #tpu.memory_space<vmem>>, vector<1x1x32xf32>
    tpu.vector_store %arg6[%c0_12, %c0_13, %c0_14], %15 {strides = array<i32>} : memref<1x1x32xf32, #tpu.memory_space<vmem>>, vector<1x1x32xf32>,
    return
  }
  func.func @transform_0(%arg0: i32) -> (i32, i32) {
    %c0_i32 = arith.constant 0 : i32
    %c0_i32_0 = arith.constant 0 : i32
    return %arg0, %c0_i32 : i32, i32
  }
  func.func @transform_1(%arg0: i32) -> (i32, i32) {
    %c0_i32 = arith.constant 0 : i32
    %c0_i32_0 = arith.constant 0 : i32
    %c0_i32_1 = arith.constant 0 : i32
    return %c0_i32, %c0_i32_0 : i32, i32
  }
  func.func @transform_2(%arg0: i32) -> (i32, i32) {
    %c0_i32 = arith.constant 0 : i32
    %c0_i32_0 = arith.constant 0 : i32
    %c0_i32_1 = arith.constant 0 : i32
    return %c0_i32, %c0_i32_0 : i32, i32
  }
  func.func @transform_3(%arg0: i32) -> (i32, i32) {
    %c0_i32 = arith.constant 0 : i32
    %c0_i32_0 = arith.constant 0 : i32
    return %arg0, %c0_i32 : i32, i32
  }
  func.func @transform_4(%arg0: i32) -> (i32, i32, i32) {
    %c0_i32 = arith.constant 0 : i32
    %c0_i32_0 = arith.constant 0 : i32
    %c0_i32_1 = arith.constant 0 : i32
    return %arg0, %c0_i32, %c0_i32_0 : i32, i32, i32
  }
  func.func @transform_5(%arg0: i32) -> (i32, i32, i32) {
    %c0_i32 = arith.constant 0 : i32
    %c0_i32_0 = arith.constant 0 : i32
    %c0_i32_1 = arith.constant 0 : i32
    return %arg0, %c0_i32, %c0_i32_0 : i32, i32, i32
  }
}

module attributes {stable_mosaic.version = 11 : i64} {
  func.func @_matmul_stats_kernel(%arg0: i32, %arg1: memref<8x96xbf16, #tpu.memory_space<vmem>>, %arg2: memref<96x32xbf16, #tpu.memory_space<vmem>>, %arg3: memref<1x32xf32, #tpu.memory_space<vmem>>, %arg4: memref<8x32xbf16, #tpu.memory_space<vmem>>, %arg5: memref<1x1x32xf32, #tpu.memory_space<vmem>>, %arg6: memref<1x1x32xf32, #tpu.memory_space<vmem>>) attributes {dimension_semantics = [#tpu.dimension_semantics<parallel>], iteration_bounds = array<i64: 2>, scalar_prefetch = 0 : i64, scratch_operands = 0 : i64, tpu.core_type = #tpu.core_type<tc>, window_params = [{transform_indices = @transform_0, window_bounds = array<i64: 8, 96>}, {pipeline_mode = #tpu.pipeline_mode<synchronous>, transform_indices = @transform_1, window_bounds = array<i64: 96, 32>}, {pipeline_mode = #tpu.pipeline_mode<synchronous>, transform_indices = @transform_2, window_bounds = array<i64: 1, 32>}, {transform_indices = @transform_3, window_bounds = array<i64: 8, 32>}, {transform_indices = @transform_4, window_bounds = array<i64: 1, 1, 32>}, {transform_indices = @transform_5, window_bounds = array<i64: 1, 1, 32>}]} {
    %c0 = arith.constant 0 : index
    %c0_0 = arith.constant 0 : index
    %0 = vector.load %arg1[%c0, %c0_0] : memref<8x96xbf16, #tpu.memory_space<vmem>>, vector<8x96xbf16>
    %c0_1 = arith.constant 0 : index
    %c0_2 = arith.constant 0 : index
    %1 = vector.load %arg2[%c0_1, %c0_2] : memref<96x32xbf16, #tpu.memory_space<vmem>>, vector<96x32xbf16>
    %cst = arith.constant dense<0.000000e+00> : vector<8x32xf32>
    %2 = tpu.matmul %0, %1, %cst {dimension_numbers = #tpu.dot_dimension_numbers<[1], [0], [0], [1], [0, 0, 1, 1], [], []>} : vector<8x96xbf16>, vector<96x32xbf16>, vector<8x32xf32> -> vector<8x32xf32>
    %c0_3 = arith.constant 0 : index
    %c0_4 = arith.constant 0 : index
    %3 = vector.load %arg3[%c0_3, %c0_4] : memref<1x32xf32, #tpu.memory_space<vmem>>, vector<1x32xf32>
    %4 = vector.broadcast %3 : vector<1x32xf32> to vector<8x32xf32>
    %5 = arith.addf %2, %4 : vector<8x32xf32>
    %6 = arith.truncf %5 : vector<8x32xf32> to vector<8x32xbf16>
    %c0_5 = arith.constant 0 : index
    %c0_6 = arith.constant 0 : index
    %7 = vector.load %arg4[%c0_5, %c0_6] : memref<8x32xbf16, #tpu.memory_space<vmem>>, vector<8x32xbf16>
    tpu.vector_store %arg4[%c0_5, %c0_6], %6 {strides = array<i32>} : memref<8x32xbf16, #tpu.memory_space<vmem>>, vector<8x32xbf16>,
    %cst_7 = arith.constant dense<0.000000e+00> : vector<32xf32>
    %8 = vector.multi_reduction <add>, %5, %cst_7 [0] : vector<8x32xf32> to vector<32xf32>
    %9 = vector.shape_cast %8 : vector<32xf32> to vector<1x32xf32>
    %10 = vector.shape_cast %9 : vector<1x32xf32> to vector<1x1x32xf32>
    %c0_8 = arith.constant 0 : index
    %c0_9 = arith.constant 0 : index
    %c0_10 = arith.constant 0 : index
    %11 = vector.load %arg5[%c0_8, %c0_9, %c0_10] : memref<1x1x32xf32, #tpu.memory_space<vmem>>, vector<1x1x32xf32>
    tpu.vector_store %arg5[%c0_8, %c0_9, %c0_10], %10 {strides = array<i32>} : memref<1x1x32xf32, #tpu.memory_space<vmem>>, vector<1x1x32xf32>,
    %12 = arith.mulf %5, %5 : vector<8x32xf32>
    %cst_11 = arith.constant dense<0.000000e+00> : vector<32xf32>
    %13 = vector.multi_reduction <add>, %12, %cst_11 [0] : vector<8x32xf32> to vector<32xf32>
    %14 = vector.shape_cast %13 : vector<32xf32> to vector<1x32xf32>
    %15 = vector.shape_cast %14 : vector<1x32xf32> to vector<1x1x32xf32>
    %c0_12 = arith.constant 0 : index
    %c0_13 = arith.constant 0 : index
    %c0_14 = arith.constant 0 : index
    %16 = vector.load %arg6[%c0_12, %c0_13, %c0_14] : memref<1x1x32xf32, #tpu.memory_space<vmem>>, vector<1x1x32xf32>
    tpu.vector_store %arg6[%c0_12, %c0_13, %c0_14], %15 {strides = array<i32>} : memref<1x1x32xf32, #tpu.memory_space<vmem>>, vector<1x1x32xf32>,
    return
  }
  func.func @transform_0(%arg0: i32) -> (i32, i32) {
    %c0_i32 = arith.constant 0 : i32
    %c0_i32_0 = arith.constant 0 : i32
    return %arg0, %c0_i32 : i32, i32
  }
  func.func @transform_1(%arg0: i32) -> (i32, i32) {
    %c0_i32 = arith.constant 0 : i32
    %c0_i32_0 = arith.constant 0 : i32
    %c0_i32_1 = arith.constant 0 : i32
    return %c0_i32, %c0_i32_0 : i32, i32
  }
  func.func @transform_2(%arg0: i32) -> (i32, i32) {
    %c0_i32 = arith.constant 0 : i32
    %c0_i32_0 = arith.constant 0 : i32
    %c0_i32_1 = arith.constant 0 : i32
    return %c0_i32, %c0_i32_0 : i32, i32
  }
  func.func @transform_3(%arg0: i32) -> (i32, i32) {
    %c0_i32 = arith.constant 0 : i32
    %c0_i32_0 = arith.constant 0 : i32
    return %arg0, %c0_i32 : i32, i32
  }
  func.func @transform_4(%arg0: i32) -> (i32, i32, i32) {
    %c0_i32 = arith.constant 0 : i32
    %c0_i32_0 = arith.constant 0 : i32
    %c0_i32_1 = arith.constant 0 : i32
    return %arg0, %c0_i32, %c0_i32_0 : i32, i32, i32
  }
  func.func @transform_5(%arg0: i32) -> (i32, i32, i32) {
    %c0_i32 = arith.constant 0 : i32
    %c0_i32_0 = arith.constant 0 : i32
    %c0_i32_1 = arith.constant 0 : i32
    return %arg0, %c0_i32, %c0_i32_0 : i32, i32, i32
  }
}

module attributes {stable_mosaic.version = 11 : i64} {
  func.func @_matmul_stats_kernel(%arg0: i32, %arg1: memref<8x2592xbf16, #tpu.memory_space<vmem>>, %arg2: memref<2592x32xbf16, #tpu.memory_space<vmem>>, %arg3: memref<1x32xf32, #tpu.memory_space<vmem>>, %arg4: memref<8x32xbf16, #tpu.memory_space<vmem>>, %arg5: memref<1x1x32xf32, #tpu.memory_space<vmem>>, %arg6: memref<1x1x32xf32, #tpu.memory_space<vmem>>) attributes {dimension_semantics = [#tpu.dimension_semantics<parallel>], iteration_bounds = array<i64: 2>, scalar_prefetch = 0 : i64, scratch_operands = 0 : i64, tpu.core_type = #tpu.core_type<tc>, window_params = [{transform_indices = @transform_0, window_bounds = array<i64: 8, 2592>}, {pipeline_mode = #tpu.pipeline_mode<synchronous>, transform_indices = @transform_1, window_bounds = array<i64: 2592, 32>}, {pipeline_mode = #tpu.pipeline_mode<synchronous>, transform_indices = @transform_2, window_bounds = array<i64: 1, 32>}, {transform_indices = @transform_3, window_bounds = array<i64: 8, 32>}, {transform_indices = @transform_4, window_bounds = array<i64: 1, 1, 32>}, {transform_indices = @transform_5, window_bounds = array<i64: 1, 1, 32>}]} {
    %c0 = arith.constant 0 : index
    %c0_0 = arith.constant 0 : index
    %0 = vector.load %arg1[%c0, %c0_0] : memref<8x2592xbf16, #tpu.memory_space<vmem>>, vector<8x2592xbf16>
    %c0_1 = arith.constant 0 : index
    %c0_2 = arith.constant 0 : index
    %1 = vector.load %arg2[%c0_1, %c0_2] : memref<2592x32xbf16, #tpu.memory_space<vmem>>, vector<2592x32xbf16>
    %cst = arith.constant dense<0.000000e+00> : vector<8x32xf32>
    %2 = tpu.matmul %0, %1, %cst {dimension_numbers = #tpu.dot_dimension_numbers<[1], [0], [0], [1], [0, 0, 1, 1], [], []>} : vector<8x2592xbf16>, vector<2592x32xbf16>, vector<8x32xf32> -> vector<8x32xf32>
    %c0_3 = arith.constant 0 : index
    %c0_4 = arith.constant 0 : index
    %3 = vector.load %arg3[%c0_3, %c0_4] : memref<1x32xf32, #tpu.memory_space<vmem>>, vector<1x32xf32>
    %4 = vector.broadcast %3 : vector<1x32xf32> to vector<8x32xf32>
    %5 = arith.addf %2, %4 : vector<8x32xf32>
    %6 = arith.truncf %5 : vector<8x32xf32> to vector<8x32xbf16>
    %c0_5 = arith.constant 0 : index
    %c0_6 = arith.constant 0 : index
    %7 = vector.load %arg4[%c0_5, %c0_6] : memref<8x32xbf16, #tpu.memory_space<vmem>>, vector<8x32xbf16>
    tpu.vector_store %arg4[%c0_5, %c0_6], %6 {strides = array<i32>} : memref<8x32xbf16, #tpu.memory_space<vmem>>, vector<8x32xbf16>,
    %cst_7 = arith.constant dense<0.000000e+00> : vector<32xf32>
    %8 = vector.multi_reduction <add>, %5, %cst_7 [0] : vector<8x32xf32> to vector<32xf32>
    %9 = vector.shape_cast %8 : vector<32xf32> to vector<1x32xf32>
    %10 = vector.shape_cast %9 : vector<1x32xf32> to vector<1x1x32xf32>
    %c0_8 = arith.constant 0 : index
    %c0_9 = arith.constant 0 : index
    %c0_10 = arith.constant 0 : index
    %11 = vector.load %arg5[%c0_8, %c0_9, %c0_10] : memref<1x1x32xf32, #tpu.memory_space<vmem>>, vector<1x1x32xf32>
    tpu.vector_store %arg5[%c0_8, %c0_9, %c0_10], %10 {strides = array<i32>} : memref<1x1x32xf32, #tpu.memory_space<vmem>>, vector<1x1x32xf32>,
    %12 = arith.mulf %5, %5 : vector<8x32xf32>
    %cst_11 = arith.constant dense<0.000000e+00> : vector<32xf32>
    %13 = vector.multi_reduction <add>, %12, %cst_11 [0] : vector<8x32xf32> to vector<32xf32>
    %14 = vector.shape_cast %13 : vector<32xf32> to vector<1x32xf32>
    %15 = vector.shape_cast %14 : vector<1x32xf32> to vector<1x1x32xf32>
    %c0_12 = arith.constant 0 : index
    %c0_13 = arith.constant 0 : index
    %c0_14 = arith.constant 0 : index
    %16 = vector.load %arg6[%c0_12, %c0_13, %c0_14] : memref<1x1x32xf32, #tpu.memory_space<vmem>>, vector<1x1x32xf32>
    tpu.vector_store %arg6[%c0_12, %c0_13, %c0_14], %15 {strides = array<i32>} : memref<1x1x32xf32, #tpu.memory_space<vmem>>, vector<1x1x32xf32>,
    return
  }
  func.func @transform_0(%arg0: i32) -> (i32, i32) {
    %c0_i32 = arith.constant 0 : i32
    %c0_i32_0 = arith.constant 0 : i32
    return %arg0, %c0_i32 : i32, i32
  }
  func.func @transform_1(%arg0: i32) -> (i32, i32) {
    %c0_i32 = arith.constant 0 : i32
    %c0_i32_0 = arith.constant 0 : i32
    %c0_i32_1 = arith.constant 0 : i32
    return %c0_i32, %c0_i32_0 : i32, i32
  }
  func.func @transform_2(%arg0: i32) -> (i32, i32) {
    %c0_i32 = arith.constant 0 : i32
    %c0_i32_0 = arith.constant 0 : i32
    %c0_i32_1 = arith.constant 0 : i32
    return %c0_i32, %c0_i32_0 : i32, i32
  }
  func.func @transform_3(%arg0: i32) -> (i32, i32) {
    %c0_i32 = arith.constant 0 : i32
    %c0_i32_0 = arith.constant 0 : i32
    return %arg0, %c0_i32 : i32, i32
  }
  func.func @transform_4(%arg0: i32) -> (i32, i32, i32) {
    %c0_i32 = arith.constant 0 : i32
    %c0_i32_0 = arith.constant 0 : i32
    %c0_i32_1 = arith.constant 0 : i32
    return %arg0, %c0_i32, %c0_i32_0 : i32, i32, i32
  }
  func.func @transform_5(%arg0: i32) -> (i32, i32, i32) {
    %c0_i32 = arith.constant 0 : i32
    %c0_i32_0 = arith.constant 0 : i32
    %c0_i32_1 = arith.constant 0 : i32
    return %arg0, %c0_i32, %c0_i32_0 : i32, i32, i32
  }
}

module attributes {stable_mosaic.version = 11 : i64} {
  func.func @_matmul_stats_kernel(%arg0: i32, %arg1: memref<64x864xbf16, #tpu.memory_space<vmem>>, %arg2: memref<864x16xbf16, #tpu.memory_space<vmem>>, %arg3: memref<1x16xf32, #tpu.memory_space<vmem>>, %arg4: memref<64x16xbf16, #tpu.memory_space<vmem>>, %arg5: memref<1x1x16xf32, #tpu.memory_space<vmem>>, %arg6: memref<1x1x16xf32, #tpu.memory_space<vmem>>) attributes {dimension_semantics = [#tpu.dimension_semantics<parallel>], iteration_bounds = array<i64: 2>, scalar_prefetch = 0 : i64, scratch_operands = 0 : i64, tpu.core_type = #tpu.core_type<tc>, window_params = [{transform_indices = @transform_0, window_bounds = array<i64: 64, 864>}, {pipeline_mode = #tpu.pipeline_mode<synchronous>, transform_indices = @transform_1, window_bounds = array<i64: 864, 16>}, {pipeline_mode = #tpu.pipeline_mode<synchronous>, transform_indices = @transform_2, window_bounds = array<i64: 1, 16>}, {transform_indices = @transform_3, window_bounds = array<i64: 64, 16>}, {transform_indices = @transform_4, window_bounds = array<i64: 1, 1, 16>}, {transform_indices = @transform_5, window_bounds = array<i64: 1, 1, 16>}]} {
    %c0 = arith.constant 0 : index
    %c0_0 = arith.constant 0 : index
    %0 = vector.load %arg1[%c0, %c0_0] : memref<64x864xbf16, #tpu.memory_space<vmem>>, vector<64x864xbf16>
    %c0_1 = arith.constant 0 : index
    %c0_2 = arith.constant 0 : index
    %1 = vector.load %arg2[%c0_1, %c0_2] : memref<864x16xbf16, #tpu.memory_space<vmem>>, vector<864x16xbf16>
    %cst = arith.constant dense<0.000000e+00> : vector<64x16xf32>
    %2 = tpu.matmul %0, %1, %cst {dimension_numbers = #tpu.dot_dimension_numbers<[1], [0], [0], [1], [0, 0, 1, 1], [], []>} : vector<64x864xbf16>, vector<864x16xbf16>, vector<64x16xf32> -> vector<64x16xf32>
    %c0_3 = arith.constant 0 : index
    %c0_4 = arith.constant 0 : index
    %3 = vector.load %arg3[%c0_3, %c0_4] : memref<1x16xf32, #tpu.memory_space<vmem>>, vector<1x16xf32>
    %4 = vector.broadcast %3 : vector<1x16xf32> to vector<64x16xf32>
    %5 = arith.addf %2, %4 : vector<64x16xf32>
    %6 = arith.truncf %5 : vector<64x16xf32> to vector<64x16xbf16>
    %c0_5 = arith.constant 0 : index
    %c0_6 = arith.constant 0 : index
    %7 = vector.load %arg4[%c0_5, %c0_6] : memref<64x16xbf16, #tpu.memory_space<vmem>>, vector<64x16xbf16>
    tpu.vector_store %arg4[%c0_5, %c0_6], %6 {strides = array<i32>} : memref<64x16xbf16, #tpu.memory_space<vmem>>, vector<64x16xbf16>,
    %cst_7 = arith.constant dense<0.000000e+00> : vector<16xf32>
    %8 = vector.multi_reduction <add>, %5, %cst_7 [0] : vector<64x16xf32> to vector<16xf32>
    %9 = vector.shape_cast %8 : vector<16xf32> to vector<1x16xf32>
    %10 = vector.shape_cast %9 : vector<1x16xf32> to vector<1x1x16xf32>
    %c0_8 = arith.constant 0 : index
    %c0_9 = arith.constant 0 : index
    %c0_10 = arith.constant 0 : index
    %11 = vector.load %arg5[%c0_8, %c0_9, %c0_10] : memref<1x1x16xf32, #tpu.memory_space<vmem>>, vector<1x1x16xf32>
    tpu.vector_store %arg5[%c0_8, %c0_9, %c0_10], %10 {strides = array<i32>} : memref<1x1x16xf32, #tpu.memory_space<vmem>>, vector<1x1x16xf32>,
    %12 = arith.mulf %5, %5 : vector<64x16xf32>
    %cst_11 = arith.constant dense<0.000000e+00> : vector<16xf32>
    %13 = vector.multi_reduction <add>, %12, %cst_11 [0] : vector<64x16xf32> to vector<16xf32>
    %14 = vector.shape_cast %13 : vector<16xf32> to vector<1x16xf32>
    %15 = vector.shape_cast %14 : vector<1x16xf32> to vector<1x1x16xf32>
    %c0_12 = arith.constant 0 : index
    %c0_13 = arith.constant 0 : index
    %c0_14 = arith.constant 0 : index
    %16 = vector.load %arg6[%c0_12, %c0_13, %c0_14] : memref<1x1x16xf32, #tpu.memory_space<vmem>>, vector<1x1x16xf32>
    tpu.vector_store %arg6[%c0_12, %c0_13, %c0_14], %15 {strides = array<i32>} : memref<1x1x16xf32, #tpu.memory_space<vmem>>, vector<1x1x16xf32>,
    return
  }
  func.func @transform_0(%arg0: i32) -> (i32, i32) {
    %c0_i32 = arith.constant 0 : i32
    %c0_i32_0 = arith.constant 0 : i32
    return %arg0, %c0_i32 : i32, i32
  }
  func.func @transform_1(%arg0: i32) -> (i32, i32) {
    %c0_i32 = arith.constant 0 : i32
    %c0_i32_0 = arith.constant 0 : i32
    %c0_i32_1 = arith.constant 0 : i32
    return %c0_i32, %c0_i32_0 : i32, i32
  }
  func.func @transform_2(%arg0: i32) -> (i32, i32) {
    %c0_i32 = arith.constant 0 : i32
    %c0_i32_0 = arith.constant 0 : i32
    %c0_i32_1 = arith.constant 0 : i32
    return %c0_i32, %c0_i32_0 : i32, i32
  }
  func.func @transform_3(%arg0: i32) -> (i32, i32) {
    %c0_i32 = arith.constant 0 : i32
    %c0_i32_0 = arith.constant 0 : i32
    return %arg0, %c0_i32 : i32, i32
  }
  func.func @transform_4(%arg0: i32) -> (i32, i32, i32) {
    %c0_i32 = arith.constant 0 : i32
    %c0_i32_0 = arith.constant 0 : i32
    %c0_i32_1 = arith.constant 0 : i32
    return %arg0, %c0_i32, %c0_i32_0 : i32, i32, i32
  }
  func.func @transform_5(%arg0: i32) -> (i32, i32, i32) {
    %c0_i32 = arith.constant 0 : i32
    %c0_i32_0 = arith.constant 0 : i32
    %c0_i32_1 = arith.constant 0 : i32
    return %arg0, %c0_i32, %c0_i32_0 : i32, i32, i32
  }
}

module attributes {stable_mosaic.version = 11 : i64} {
  func.func @_matmul_stats_kernel(%arg0: i32, %arg1: memref<64x48xbf16, #tpu.memory_space<vmem>>, %arg2: memref<48x16xbf16, #tpu.memory_space<vmem>>, %arg3: memref<1x16xf32, #tpu.memory_space<vmem>>, %arg4: memref<64x16xbf16, #tpu.memory_space<vmem>>, %arg5: memref<1x1x16xf32, #tpu.memory_space<vmem>>, %arg6: memref<1x1x16xf32, #tpu.memory_space<vmem>>) attributes {dimension_semantics = [#tpu.dimension_semantics<parallel>], iteration_bounds = array<i64: 2>, scalar_prefetch = 0 : i64, scratch_operands = 0 : i64, tpu.core_type = #tpu.core_type<tc>, window_params = [{transform_indices = @transform_0, window_bounds = array<i64: 64, 48>}, {pipeline_mode = #tpu.pipeline_mode<synchronous>, transform_indices = @transform_1, window_bounds = array<i64: 48, 16>}, {pipeline_mode = #tpu.pipeline_mode<synchronous>, transform_indices = @transform_2, window_bounds = array<i64: 1, 16>}, {transform_indices = @transform_3, window_bounds = array<i64: 64, 16>}, {transform_indices = @transform_4, window_bounds = array<i64: 1, 1, 16>}, {transform_indices = @transform_5, window_bounds = array<i64: 1, 1, 16>}]} {
    %c0 = arith.constant 0 : index
    %c0_0 = arith.constant 0 : index
    %0 = vector.load %arg1[%c0, %c0_0] : memref<64x48xbf16, #tpu.memory_space<vmem>>, vector<64x48xbf16>
    %c0_1 = arith.constant 0 : index
    %c0_2 = arith.constant 0 : index
    %1 = vector.load %arg2[%c0_1, %c0_2] : memref<48x16xbf16, #tpu.memory_space<vmem>>, vector<48x16xbf16>
    %cst = arith.constant dense<0.000000e+00> : vector<64x16xf32>
    %2 = tpu.matmul %0, %1, %cst {dimension_numbers = #tpu.dot_dimension_numbers<[1], [0], [0], [1], [0, 0, 1, 1], [], []>} : vector<64x48xbf16>, vector<48x16xbf16>, vector<64x16xf32> -> vector<64x16xf32>
    %c0_3 = arith.constant 0 : index
    %c0_4 = arith.constant 0 : index
    %3 = vector.load %arg3[%c0_3, %c0_4] : memref<1x16xf32, #tpu.memory_space<vmem>>, vector<1x16xf32>
    %4 = vector.broadcast %3 : vector<1x16xf32> to vector<64x16xf32>
    %5 = arith.addf %2, %4 : vector<64x16xf32>
    %6 = arith.truncf %5 : vector<64x16xf32> to vector<64x16xbf16>
    %c0_5 = arith.constant 0 : index
    %c0_6 = arith.constant 0 : index
    %7 = vector.load %arg4[%c0_5, %c0_6] : memref<64x16xbf16, #tpu.memory_space<vmem>>, vector<64x16xbf16>
    tpu.vector_store %arg4[%c0_5, %c0_6], %6 {strides = array<i32>} : memref<64x16xbf16, #tpu.memory_space<vmem>>, vector<64x16xbf16>,
    %cst_7 = arith.constant dense<0.000000e+00> : vector<16xf32>
    %8 = vector.multi_reduction <add>, %5, %cst_7 [0] : vector<64x16xf32> to vector<16xf32>
    %9 = vector.shape_cast %8 : vector<16xf32> to vector<1x16xf32>
    %10 = vector.shape_cast %9 : vector<1x16xf32> to vector<1x1x16xf32>
    %c0_8 = arith.constant 0 : index
    %c0_9 = arith.constant 0 : index
    %c0_10 = arith.constant 0 : index
    %11 = vector.load %arg5[%c0_8, %c0_9, %c0_10] : memref<1x1x16xf32, #tpu.memory_space<vmem>>, vector<1x1x16xf32>
    tpu.vector_store %arg5[%c0_8, %c0_9, %c0_10], %10 {strides = array<i32>} : memref<1x1x16xf32, #tpu.memory_space<vmem>>, vector<1x1x16xf32>,
    %12 = arith.mulf %5, %5 : vector<64x16xf32>
    %cst_11 = arith.constant dense<0.000000e+00> : vector<16xf32>
    %13 = vector.multi_reduction <add>, %12, %cst_11 [0] : vector<64x16xf32> to vector<16xf32>
    %14 = vector.shape_cast %13 : vector<16xf32> to vector<1x16xf32>
    %15 = vector.shape_cast %14 : vector<1x16xf32> to vector<1x1x16xf32>
    %c0_12 = arith.constant 0 : index
    %c0_13 = arith.constant 0 : index
    %c0_14 = arith.constant 0 : index
    %16 = vector.load %arg6[%c0_12, %c0_13, %c0_14] : memref<1x1x16xf32, #tpu.memory_space<vmem>>, vector<1x1x16xf32>
    tpu.vector_store %arg6[%c0_12, %c0_13, %c0_14], %15 {strides = array<i32>} : memref<1x1x16xf32, #tpu.memory_space<vmem>>, vector<1x1x16xf32>,
    return
  }
  func.func @transform_0(%arg0: i32) -> (i32, i32) {
    %c0_i32 = arith.constant 0 : i32
    %c0_i32_0 = arith.constant 0 : i32
    return %arg0, %c0_i32 : i32, i32
  }
  func.func @transform_1(%arg0: i32) -> (i32, i32) {
    %c0_i32 = arith.constant 0 : i32
    %c0_i32_0 = arith.constant 0 : i32
    %c0_i32_1 = arith.constant 0 : i32
    return %c0_i32, %c0_i32_0 : i32, i32
  }
  func.func @transform_2(%arg0: i32) -> (i32, i32) {
    %c0_i32 = arith.constant 0 : i32
    %c0_i32_0 = arith.constant 0 : i32
    %c0_i32_1 = arith.constant 0 : i32
    return %c0_i32, %c0_i32_0 : i32, i32
  }
  func.func @transform_3(%arg0: i32) -> (i32, i32) {
    %c0_i32 = arith.constant 0 : i32
    %c0_i32_0 = arith.constant 0 : i32
    return %arg0, %c0_i32 : i32, i32
  }
  func.func @transform_4(%arg0: i32) -> (i32, i32, i32) {
    %c0_i32 = arith.constant 0 : i32
    %c0_i32_0 = arith.constant 0 : i32
    %c0_i32_1 = arith.constant 0 : i32
    return %arg0, %c0_i32, %c0_i32_0 : i32, i32, i32
  }
  func.func @transform_5(%arg0: i32) -> (i32, i32, i32) {
    %c0_i32 = arith.constant 0 : i32
    %c0_i32_0 = arith.constant 0 : i32
    %c0_i32_1 = arith.constant 0 : i32
    return %arg0, %c0_i32, %c0_i32_0 : i32, i32, i32
  }
}

module attributes {stable_mosaic.version = 11 : i64} {
  func.func @_matmul_stats_kernel(%arg0: i32, %arg1: memref<64x1296xbf16, #tpu.memory_space<vmem>>, %arg2: memref<1296x16xbf16, #tpu.memory_space<vmem>>, %arg3: memref<1x16xf32, #tpu.memory_space<vmem>>, %arg4: memref<64x16xbf16, #tpu.memory_space<vmem>>, %arg5: memref<1x1x16xf32, #tpu.memory_space<vmem>>, %arg6: memref<1x1x16xf32, #tpu.memory_space<vmem>>) attributes {dimension_semantics = [#tpu.dimension_semantics<parallel>], iteration_bounds = array<i64: 2>, scalar_prefetch = 0 : i64, scratch_operands = 0 : i64, tpu.core_type = #tpu.core_type<tc>, window_params = [{transform_indices = @transform_0, window_bounds = array<i64: 64, 1296>}, {pipeline_mode = #tpu.pipeline_mode<synchronous>, transform_indices = @transform_1, window_bounds = array<i64: 1296, 16>}, {pipeline_mode = #tpu.pipeline_mode<synchronous>, transform_indices = @transform_2, window_bounds = array<i64: 1, 16>}, {transform_indices = @transform_3, window_bounds = array<i64: 64, 16>}, {transform_indices = @transform_4, window_bounds = array<i64: 1, 1, 16>}, {transform_indices = @transform_5, window_bounds = array<i64: 1, 1, 16>}]} {
    %c0 = arith.constant 0 : index
    %c0_0 = arith.constant 0 : index
    %0 = vector.load %arg1[%c0, %c0_0] : memref<64x1296xbf16, #tpu.memory_space<vmem>>, vector<64x1296xbf16>
    %c0_1 = arith.constant 0 : index
    %c0_2 = arith.constant 0 : index
    %1 = vector.load %arg2[%c0_1, %c0_2] : memref<1296x16xbf16, #tpu.memory_space<vmem>>, vector<1296x16xbf16>
    %cst = arith.constant dense<0.000000e+00> : vector<64x16xf32>
    %2 = tpu.matmul %0, %1, %cst {dimension_numbers = #tpu.dot_dimension_numbers<[1], [0], [0], [1], [0, 0, 1, 1], [], []>} : vector<64x1296xbf16>, vector<1296x16xbf16>, vector<64x16xf32> -> vector<64x16xf32>
    %c0_3 = arith.constant 0 : index
    %c0_4 = arith.constant 0 : index
    %3 = vector.load %arg3[%c0_3, %c0_4] : memref<1x16xf32, #tpu.memory_space<vmem>>, vector<1x16xf32>
    %4 = vector.broadcast %3 : vector<1x16xf32> to vector<64x16xf32>
    %5 = arith.addf %2, %4 : vector<64x16xf32>
    %6 = arith.truncf %5 : vector<64x16xf32> to vector<64x16xbf16>
    %c0_5 = arith.constant 0 : index
    %c0_6 = arith.constant 0 : index
    %7 = vector.load %arg4[%c0_5, %c0_6] : memref<64x16xbf16, #tpu.memory_space<vmem>>, vector<64x16xbf16>
    tpu.vector_store %arg4[%c0_5, %c0_6], %6 {strides = array<i32>} : memref<64x16xbf16, #tpu.memory_space<vmem>>, vector<64x16xbf16>,
    %cst_7 = arith.constant dense<0.000000e+00> : vector<16xf32>
    %8 = vector.multi_reduction <add>, %5, %cst_7 [0] : vector<64x16xf32> to vector<16xf32>
    %9 = vector.shape_cast %8 : vector<16xf32> to vector<1x16xf32>
    %10 = vector.shape_cast %9 : vector<1x16xf32> to vector<1x1x16xf32>
    %c0_8 = arith.constant 0 : index
    %c0_9 = arith.constant 0 : index
    %c0_10 = arith.constant 0 : index
    %11 = vector.load %arg5[%c0_8, %c0_9, %c0_10] : memref<1x1x16xf32, #tpu.memory_space<vmem>>, vector<1x1x16xf32>
    tpu.vector_store %arg5[%c0_8, %c0_9, %c0_10], %10 {strides = array<i32>} : memref<1x1x16xf32, #tpu.memory_space<vmem>>, vector<1x1x16xf32>,
    %12 = arith.mulf %5, %5 : vector<64x16xf32>
    %cst_11 = arith.constant dense<0.000000e+00> : vector<16xf32>
    %13 = vector.multi_reduction <add>, %12, %cst_11 [0] : vector<64x16xf32> to vector<16xf32>
    %14 = vector.shape_cast %13 : vector<16xf32> to vector<1x16xf32>
    %15 = vector.shape_cast %14 : vector<1x16xf32> to vector<1x1x16xf32>
    %c0_12 = arith.constant 0 : index
    %c0_13 = arith.constant 0 : index
    %c0_14 = arith.constant 0 : index
    %16 = vector.load %arg6[%c0_12, %c0_13, %c0_14] : memref<1x1x16xf32, #tpu.memory_space<vmem>>, vector<1x1x16xf32>
    tpu.vector_store %arg6[%c0_12, %c0_13, %c0_14], %15 {strides = array<i32>} : memref<1x1x16xf32, #tpu.memory_space<vmem>>, vector<1x1x16xf32>,
    return
  }
  func.func @transform_0(%arg0: i32) -> (i32, i32) {
    %c0_i32 = arith.constant 0 : i32
    %c0_i32_0 = arith.constant 0 : i32
    return %arg0, %c0_i32 : i32, i32
  }
  func.func @transform_1(%arg0: i32) -> (i32, i32) {
    %c0_i32 = arith.constant 0 : i32
    %c0_i32_0 = arith.constant 0 : i32
    %c0_i32_1 = arith.constant 0 : i32
    return %c0_i32, %c0_i32_0 : i32, i32
  }
  func.func @transform_2(%arg0: i32) -> (i32, i32) {
    %c0_i32 = arith.constant 0 : i32
    %c0_i32_0 = arith.constant 0 : i32
    %c0_i32_1 = arith.constant 0 : i32
    return %c0_i32, %c0_i32_0 : i32, i32
  }
  func.func @transform_3(%arg0: i32) -> (i32, i32) {
    %c0_i32 = arith.constant 0 : i32
    %c0_i32_0 = arith.constant 0 : i32
    return %arg0, %c0_i32 : i32, i32
  }
  func.func @transform_4(%arg0: i32) -> (i32, i32, i32) {
    %c0_i32 = arith.constant 0 : i32
    %c0_i32_0 = arith.constant 0 : i32
    %c0_i32_1 = arith.constant 0 : i32
    return %arg0, %c0_i32, %c0_i32_0 : i32, i32, i32
  }
  func.func @transform_5(%arg0: i32) -> (i32, i32, i32) {
    %c0_i32 = arith.constant 0 : i32
    %c0_i32_0 = arith.constant 0 : i32
    %c0_i32_1 = arith.constant 0 : i32
    return %arg0, %c0_i32, %c0_i32_0 : i32, i32, i32
  }
}

module attributes {stable_mosaic.version = 11 : i64} {
  func.func @_matmul_stats_kernel(%arg0: i32, %arg1: memref<512x432xbf16, #tpu.memory_space<vmem>>, %arg2: memref<432x8xbf16, #tpu.memory_space<vmem>>, %arg3: memref<1x8xf32, #tpu.memory_space<vmem>>, %arg4: memref<512x8xbf16, #tpu.memory_space<vmem>>, %arg5: memref<1x1x8xf32, #tpu.memory_space<vmem>>, %arg6: memref<1x1x8xf32, #tpu.memory_space<vmem>>) attributes {dimension_semantics = [#tpu.dimension_semantics<parallel>], iteration_bounds = array<i64: 2>, scalar_prefetch = 0 : i64, scratch_operands = 0 : i64, tpu.core_type = #tpu.core_type<tc>, window_params = [{transform_indices = @transform_0, window_bounds = array<i64: 512, 432>}, {pipeline_mode = #tpu.pipeline_mode<synchronous>, transform_indices = @transform_1, window_bounds = array<i64: 432, 8>}, {pipeline_mode = #tpu.pipeline_mode<synchronous>, transform_indices = @transform_2, window_bounds = array<i64: 1, 8>}, {transform_indices = @transform_3, window_bounds = array<i64: 512, 8>}, {transform_indices = @transform_4, window_bounds = array<i64: 1, 1, 8>}, {transform_indices = @transform_5, window_bounds = array<i64: 1, 1, 8>}]} {
    %c0 = arith.constant 0 : index
    %c0_0 = arith.constant 0 : index
    %0 = vector.load %arg1[%c0, %c0_0] : memref<512x432xbf16, #tpu.memory_space<vmem>>, vector<512x432xbf16>
    %c0_1 = arith.constant 0 : index
    %c0_2 = arith.constant 0 : index
    %1 = vector.load %arg2[%c0_1, %c0_2] : memref<432x8xbf16, #tpu.memory_space<vmem>>, vector<432x8xbf16>
    %cst = arith.constant dense<0.000000e+00> : vector<512x8xf32>
    %2 = tpu.matmul %0, %1, %cst {dimension_numbers = #tpu.dot_dimension_numbers<[1], [0], [0], [1], [0, 0, 1, 1], [], []>} : vector<512x432xbf16>, vector<432x8xbf16>, vector<512x8xf32> -> vector<512x8xf32>
    %c0_3 = arith.constant 0 : index
    %c0_4 = arith.constant 0 : index
    %3 = vector.load %arg3[%c0_3, %c0_4] : memref<1x8xf32, #tpu.memory_space<vmem>>, vector<1x8xf32>
    %4 = vector.broadcast %3 : vector<1x8xf32> to vector<512x8xf32>
    %5 = arith.addf %2, %4 : vector<512x8xf32>
    %6 = arith.truncf %5 : vector<512x8xf32> to vector<512x8xbf16>
    %c0_5 = arith.constant 0 : index
    %c0_6 = arith.constant 0 : index
    %7 = vector.load %arg4[%c0_5, %c0_6] : memref<512x8xbf16, #tpu.memory_space<vmem>>, vector<512x8xbf16>
    tpu.vector_store %arg4[%c0_5, %c0_6], %6 {strides = array<i32>} : memref<512x8xbf16, #tpu.memory_space<vmem>>, vector<512x8xbf16>,
    %cst_7 = arith.constant dense<0.000000e+00> : vector<8xf32>
    %8 = vector.multi_reduction <add>, %5, %cst_7 [0] : vector<512x8xf32> to vector<8xf32>
    %9 = vector.shape_cast %8 : vector<8xf32> to vector<1x8xf32>
    %10 = vector.shape_cast %9 : vector<1x8xf32> to vector<1x1x8xf32>
    %c0_8 = arith.constant 0 : index
    %c0_9 = arith.constant 0 : index
    %c0_10 = arith.constant 0 : index
    %11 = vector.load %arg5[%c0_8, %c0_9, %c0_10] : memref<1x1x8xf32, #tpu.memory_space<vmem>>, vector<1x1x8xf32>
    tpu.vector_store %arg5[%c0_8, %c0_9, %c0_10], %10 {strides = array<i32>} : memref<1x1x8xf32, #tpu.memory_space<vmem>>, vector<1x1x8xf32>,
    %12 = arith.mulf %5, %5 : vector<512x8xf32>
    %cst_11 = arith.constant dense<0.000000e+00> : vector<8xf32>
    %13 = vector.multi_reduction <add>, %12, %cst_11 [0] : vector<512x8xf32> to vector<8xf32>
    %14 = vector.shape_cast %13 : vector<8xf32> to vector<1x8xf32>
    %15 = vector.shape_cast %14 : vector<1x8xf32> to vector<1x1x8xf32>
    %c0_12 = arith.constant 0 : index
    %c0_13 = arith.constant 0 : index
    %c0_14 = arith.constant 0 : index
    %16 = vector.load %arg6[%c0_12, %c0_13, %c0_14] : memref<1x1x8xf32, #tpu.memory_space<vmem>>, vector<1x1x8xf32>
    tpu.vector_store %arg6[%c0_12, %c0_13, %c0_14], %15 {strides = array<i32>} : memref<1x1x8xf32, #tpu.memory_space<vmem>>, vector<1x1x8xf32>,
    return
  }
  func.func @transform_0(%arg0: i32) -> (i32, i32) {
    %c0_i32 = arith.constant 0 : i32
    %c0_i32_0 = arith.constant 0 : i32
    return %arg0, %c0_i32 : i32, i32
  }
  func.func @transform_1(%arg0: i32) -> (i32, i32) {
    %c0_i32 = arith.constant 0 : i32
    %c0_i32_0 = arith.constant 0 : i32
    %c0_i32_1 = arith.constant 0 : i32
    return %c0_i32, %c0_i32_0 : i32, i32
  }
  func.func @transform_2(%arg0: i32) -> (i32, i32) {
    %c0_i32 = arith.constant 0 : i32
    %c0_i32_0 = arith.constant 0 : i32
    %c0_i32_1 = arith.constant 0 : i32
    return %c0_i32, %c0_i32_0 : i32, i32
  }
  func.func @transform_3(%arg0: i32) -> (i32, i32) {
    %c0_i32 = arith.constant 0 : i32
    %c0_i32_0 = arith.constant 0 : i32
    return %arg0, %c0_i32 : i32, i32
  }
  func.func @transform_4(%arg0: i32) -> (i32, i32, i32) {
    %c0_i32 = arith.constant 0 : i32
    %c0_i32_0 = arith.constant 0 : i32
    %c0_i32_1 = arith.constant 0 : i32
    return %arg0, %c0_i32, %c0_i32_0 : i32, i32, i32
  }
  func.func @transform_5(%arg0: i32) -> (i32, i32, i32) {
    %c0_i32 = arith.constant 0 : i32
    %c0_i32_0 = arith.constant 0 : i32
    %c0_i32_1 = arith.constant 0 : i32
    return %arg0, %c0_i32, %c0_i32_0 : i32, i32, i32
  }
}

module attributes {stable_mosaic.version = 11 : i64} {
  func.func @_matmul_stats_kernel(%arg0: i32, %arg1: memref<512x24xbf16, #tpu.memory_space<vmem>>, %arg2: memref<24x8xbf16, #tpu.memory_space<vmem>>, %arg3: memref<1x8xf32, #tpu.memory_space<vmem>>, %arg4: memref<512x8xbf16, #tpu.memory_space<vmem>>, %arg5: memref<1x1x8xf32, #tpu.memory_space<vmem>>, %arg6: memref<1x1x8xf32, #tpu.memory_space<vmem>>) attributes {dimension_semantics = [#tpu.dimension_semantics<parallel>], iteration_bounds = array<i64: 2>, scalar_prefetch = 0 : i64, scratch_operands = 0 : i64, tpu.core_type = #tpu.core_type<tc>, window_params = [{transform_indices = @transform_0, window_bounds = array<i64: 512, 24>}, {pipeline_mode = #tpu.pipeline_mode<synchronous>, transform_indices = @transform_1, window_bounds = array<i64: 24, 8>}, {pipeline_mode = #tpu.pipeline_mode<synchronous>, transform_indices = @transform_2, window_bounds = array<i64: 1, 8>}, {transform_indices = @transform_3, window_bounds = array<i64: 512, 8>}, {transform_indices = @transform_4, window_bounds = array<i64: 1, 1, 8>}, {transform_indices = @transform_5, window_bounds = array<i64: 1, 1, 8>}]} {
    %c0 = arith.constant 0 : index
    %c0_0 = arith.constant 0 : index
    %0 = vector.load %arg1[%c0, %c0_0] : memref<512x24xbf16, #tpu.memory_space<vmem>>, vector<512x24xbf16>
    %c0_1 = arith.constant 0 : index
    %c0_2 = arith.constant 0 : index
    %1 = vector.load %arg2[%c0_1, %c0_2] : memref<24x8xbf16, #tpu.memory_space<vmem>>, vector<24x8xbf16>
    %cst = arith.constant dense<0.000000e+00> : vector<512x8xf32>
    %2 = tpu.matmul %0, %1, %cst {dimension_numbers = #tpu.dot_dimension_numbers<[1], [0], [0], [1], [0, 0, 1, 1], [], []>} : vector<512x24xbf16>, vector<24x8xbf16>, vector<512x8xf32> -> vector<512x8xf32>
    %c0_3 = arith.constant 0 : index
    %c0_4 = arith.constant 0 : index
    %3 = vector.load %arg3[%c0_3, %c0_4] : memref<1x8xf32, #tpu.memory_space<vmem>>, vector<1x8xf32>
    %4 = vector.broadcast %3 : vector<1x8xf32> to vector<512x8xf32>
    %5 = arith.addf %2, %4 : vector<512x8xf32>
    %6 = arith.truncf %5 : vector<512x8xf32> to vector<512x8xbf16>
    %c0_5 = arith.constant 0 : index
    %c0_6 = arith.constant 0 : index
    %7 = vector.load %arg4[%c0_5, %c0_6] : memref<512x8xbf16, #tpu.memory_space<vmem>>, vector<512x8xbf16>
    tpu.vector_store %arg4[%c0_5, %c0_6], %6 {strides = array<i32>} : memref<512x8xbf16, #tpu.memory_space<vmem>>, vector<512x8xbf16>,
    %cst_7 = arith.constant dense<0.000000e+00> : vector<8xf32>
    %8 = vector.multi_reduction <add>, %5, %cst_7 [0] : vector<512x8xf32> to vector<8xf32>
    %9 = vector.shape_cast %8 : vector<8xf32> to vector<1x8xf32>
    %10 = vector.shape_cast %9 : vector<1x8xf32> to vector<1x1x8xf32>
    %c0_8 = arith.constant 0 : index
    %c0_9 = arith.constant 0 : index
    %c0_10 = arith.constant 0 : index
    %11 = vector.load %arg5[%c0_8, %c0_9, %c0_10] : memref<1x1x8xf32, #tpu.memory_space<vmem>>, vector<1x1x8xf32>
    tpu.vector_store %arg5[%c0_8, %c0_9, %c0_10], %10 {strides = array<i32>} : memref<1x1x8xf32, #tpu.memory_space<vmem>>, vector<1x1x8xf32>,
    %12 = arith.mulf %5, %5 : vector<512x8xf32>
    %cst_11 = arith.constant dense<0.000000e+00> : vector<8xf32>
    %13 = vector.multi_reduction <add>, %12, %cst_11 [0] : vector<512x8xf32> to vector<8xf32>
    %14 = vector.shape_cast %13 : vector<8xf32> to vector<1x8xf32>
    %15 = vector.shape_cast %14 : vector<1x8xf32> to vector<1x1x8xf32>
    %c0_12 = arith.constant 0 : index
    %c0_13 = arith.constant 0 : index
    %c0_14 = arith.constant 0 : index
    %16 = vector.load %arg6[%c0_12, %c0_13, %c0_14] : memref<1x1x8xf32, #tpu.memory_space<vmem>>, vector<1x1x8xf32>
    tpu.vector_store %arg6[%c0_12, %c0_13, %c0_14], %15 {strides = array<i32>} : memref<1x1x8xf32, #tpu.memory_space<vmem>>, vector<1x1x8xf32>,
    return
  }
  func.func @transform_0(%arg0: i32) -> (i32, i32) {
    %c0_i32 = arith.constant 0 : i32
    %c0_i32_0 = arith.constant 0 : i32
    return %arg0, %c0_i32 : i32, i32
  }
  func.func @transform_1(%arg0: i32) -> (i32, i32) {
    %c0_i32 = arith.constant 0 : i32
    %c0_i32_0 = arith.constant 0 : i32
    %c0_i32_1 = arith.constant 0 : i32
    return %c0_i32, %c0_i32_0 : i32, i32
  }
  func.func @transform_2(%arg0: i32) -> (i32, i32) {
    %c0_i32 = arith.constant 0 : i32
    %c0_i32_0 = arith.constant 0 : i32
    %c0_i32_1 = arith.constant 0 : i32
    return %c0_i32, %c0_i32_0 : i32, i32
  }
  func.func @transform_3(%arg0: i32) -> (i32, i32) {
    %c0_i32 = arith.constant 0 : i32
    %c0_i32_0 = arith.constant 0 : i32
    return %arg0, %c0_i32 : i32, i32
  }
  func.func @transform_4(%arg0: i32) -> (i32, i32, i32) {
    %c0_i32 = arith.constant 0 : i32
    %c0_i32_0 = arith.constant 0 : i32
    %c0_i32_1 = arith.constant 0 : i32
    return %arg0, %c0_i32, %c0_i32_0 : i32, i32, i32
  }
  func.func @transform_5(%arg0: i32) -> (i32, i32, i32) {
    %c0_i32 = arith.constant 0 : i32
    %c0_i32_0 = arith.constant 0 : i32
    %c0_i32_1 = arith.constant 0 : i32
    return %arg0, %c0_i32, %c0_i32_0 : i32, i32, i32
  }
}

module attributes {stable_mosaic.version = 11 : i64} {
  func.func @_matmul_stats_kernel(%arg0: i32, %arg1: memref<512x648xbf16, #tpu.memory_space<vmem>>, %arg2: memref<648x8xbf16, #tpu.memory_space<vmem>>, %arg3: memref<1x8xf32, #tpu.memory_space<vmem>>, %arg4: memref<512x8xbf16, #tpu.memory_space<vmem>>, %arg5: memref<1x1x8xf32, #tpu.memory_space<vmem>>, %arg6: memref<1x1x8xf32, #tpu.memory_space<vmem>>) attributes {dimension_semantics = [#tpu.dimension_semantics<parallel>], iteration_bounds = array<i64: 2>, scalar_prefetch = 0 : i64, scratch_operands = 0 : i64, tpu.core_type = #tpu.core_type<tc>, window_params = [{transform_indices = @transform_0, window_bounds = array<i64: 512, 648>}, {pipeline_mode = #tpu.pipeline_mode<synchronous>, transform_indices = @transform_1, window_bounds = array<i64: 648, 8>}, {pipeline_mode = #tpu.pipeline_mode<synchronous>, transform_indices = @transform_2, window_bounds = array<i64: 1, 8>}, {transform_indices = @transform_3, window_bounds = array<i64: 512, 8>}, {transform_indices = @transform_4, window_bounds = array<i64: 1, 1, 8>}, {transform_indices = @transform_5, window_bounds = array<i64: 1, 1, 8>}]} {
    %c0 = arith.constant 0 : index
    %c0_0 = arith.constant 0 : index
    %0 = vector.load %arg1[%c0, %c0_0] : memref<512x648xbf16, #tpu.memory_space<vmem>>, vector<512x648xbf16>
    %c0_1 = arith.constant 0 : index
    %c0_2 = arith.constant 0 : index
    %1 = vector.load %arg2[%c0_1, %c0_2] : memref<648x8xbf16, #tpu.memory_space<vmem>>, vector<648x8xbf16>
    %cst = arith.constant dense<0.000000e+00> : vector<512x8xf32>
    %2 = tpu.matmul %0, %1, %cst {dimension_numbers = #tpu.dot_dimension_numbers<[1], [0], [0], [1], [0, 0, 1, 1], [], []>} : vector<512x648xbf16>, vector<648x8xbf16>, vector<512x8xf32> -> vector<512x8xf32>
    %c0_3 = arith.constant 0 : index
    %c0_4 = arith.constant 0 : index
    %3 = vector.load %arg3[%c0_3, %c0_4] : memref<1x8xf32, #tpu.memory_space<vmem>>, vector<1x8xf32>
    %4 = vector.broadcast %3 : vector<1x8xf32> to vector<512x8xf32>
    %5 = arith.addf %2, %4 : vector<512x8xf32>
    %6 = arith.truncf %5 : vector<512x8xf32> to vector<512x8xbf16>
    %c0_5 = arith.constant 0 : index
    %c0_6 = arith.constant 0 : index
    %7 = vector.load %arg4[%c0_5, %c0_6] : memref<512x8xbf16, #tpu.memory_space<vmem>>, vector<512x8xbf16>
    tpu.vector_store %arg4[%c0_5, %c0_6], %6 {strides = array<i32>} : memref<512x8xbf16, #tpu.memory_space<vmem>>, vector<512x8xbf16>,
    %cst_7 = arith.constant dense<0.000000e+00> : vector<8xf32>
    %8 = vector.multi_reduction <add>, %5, %cst_7 [0] : vector<512x8xf32> to vector<8xf32>
    %9 = vector.shape_cast %8 : vector<8xf32> to vector<1x8xf32>
    %10 = vector.shape_cast %9 : vector<1x8xf32> to vector<1x1x8xf32>
    %c0_8 = arith.constant 0 : index
    %c0_9 = arith.constant 0 : index
    %c0_10 = arith.constant 0 : index
    %11 = vector.load %arg5[%c0_8, %c0_9, %c0_10] : memref<1x1x8xf32, #tpu.memory_space<vmem>>, vector<1x1x8xf32>
    tpu.vector_store %arg5[%c0_8, %c0_9, %c0_10], %10 {strides = array<i32>} : memref<1x1x8xf32, #tpu.memory_space<vmem>>, vector<1x1x8xf32>,
    %12 = arith.mulf %5, %5 : vector<512x8xf32>
    %cst_11 = arith.constant dense<0.000000e+00> : vector<8xf32>
    %13 = vector.multi_reduction <add>, %12, %cst_11 [0] : vector<512x8xf32> to vector<8xf32>
    %14 = vector.shape_cast %13 : vector<8xf32> to vector<1x8xf32>
    %15 = vector.shape_cast %14 : vector<1x8xf32> to vector<1x1x8xf32>
    %c0_12 = arith.constant 0 : index
    %c0_13 = arith.constant 0 : index
    %c0_14 = arith.constant 0 : index
    %16 = vector.load %arg6[%c0_12, %c0_13, %c0_14] : memref<1x1x8xf32, #tpu.memory_space<vmem>>, vector<1x1x8xf32>
    tpu.vector_store %arg6[%c0_12, %c0_13, %c0_14], %15 {strides = array<i32>} : memref<1x1x8xf32, #tpu.memory_space<vmem>>, vector<1x1x8xf32>,
    return
  }
  func.func @transform_0(%arg0: i32) -> (i32, i32) {
    %c0_i32 = arith.constant 0 : i32
    %c0_i32_0 = arith.constant 0 : i32
    return %arg0, %c0_i32 : i32, i32
  }
  func.func @transform_1(%arg0: i32) -> (i32, i32) {
    %c0_i32 = arith.constant 0 : i32
    %c0_i32_0 = arith.constant 0 : i32
    %c0_i32_1 = arith.constant 0 : i32
    return %c0_i32, %c0_i32_0 : i32, i32
  }
  func.func @transform_2(%arg0: i32) -> (i32, i32) {
    %c0_i32 = arith.constant 0 : i32
    %c0_i32_0 = arith.constant 0 : i32
    %c0_i32_1 = arith.constant 0 : i32
    return %c0_i32, %c0_i32_0 : i32, i32
  }
  func.func @transform_3(%arg0: i32) -> (i32, i32) {
    %c0_i32 = arith.constant 0 : i32
    %c0_i32_0 = arith.constant 0 : i32
    return %arg0, %c0_i32 : i32, i32
  }
  func.func @transform_4(%arg0: i32) -> (i32, i32, i32) {
    %c0_i32 = arith.constant 0 : i32
    %c0_i32_0 = arith.constant 0 : i32
    %c0_i32_1 = arith.constant 0 : i32
    return %arg0, %c0_i32, %c0_i32_0 : i32, i32, i32
  }
  func.func @transform_5(%arg0: i32) -> (i32, i32, i32) {
    %c0_i32 = arith.constant 0 : i32
    %c0_i32_0 = arith.constant 0 : i32
    %c0_i32_1 = arith.constant 0 : i32
    return %arg0, %c0_i32, %c0_i32_0 : i32, i32, i32
  }
}

module attributes {stable_mosaic.version = 11 : i64} {
  func.func @_matmul_stats_kernel(%arg0: i32, %arg1: memref<1024x216xbf16, #tpu.memory_space<vmem>>, %arg2: memref<216x4xbf16, #tpu.memory_space<vmem>>, %arg3: memref<1x4xf32, #tpu.memory_space<vmem>>, %arg4: memref<1024x4xbf16, #tpu.memory_space<vmem>>, %arg5: memref<1x1x4xf32, #tpu.memory_space<vmem>>, %arg6: memref<1x1x4xf32, #tpu.memory_space<vmem>>) attributes {dimension_semantics = [#tpu.dimension_semantics<parallel>], iteration_bounds = array<i64: 8>, scalar_prefetch = 0 : i64, scratch_operands = 0 : i64, tpu.core_type = #tpu.core_type<tc>, window_params = [{transform_indices = @transform_0, window_bounds = array<i64: 1024, 216>}, {pipeline_mode = #tpu.pipeline_mode<synchronous>, transform_indices = @transform_1, window_bounds = array<i64: 216, 4>}, {pipeline_mode = #tpu.pipeline_mode<synchronous>, transform_indices = @transform_2, window_bounds = array<i64: 1, 4>}, {transform_indices = @transform_3, window_bounds = array<i64: 1024, 4>}, {transform_indices = @transform_4, window_bounds = array<i64: 1, 1, 4>}, {transform_indices = @transform_5, window_bounds = array<i64: 1, 1, 4>}]} {
    %c0 = arith.constant 0 : index
    %c0_0 = arith.constant 0 : index
    %0 = vector.load %arg1[%c0, %c0_0] : memref<1024x216xbf16, #tpu.memory_space<vmem>>, vector<1024x216xbf16>
    %c0_1 = arith.constant 0 : index
    %c0_2 = arith.constant 0 : index
    %1 = vector.load %arg2[%c0_1, %c0_2] : memref<216x4xbf16, #tpu.memory_space<vmem>>, vector<216x4xbf16>
    %cst = arith.constant dense<0.000000e+00> : vector<1024x4xf32>
    %2 = tpu.matmul %0, %1, %cst {dimension_numbers = #tpu.dot_dimension_numbers<[1], [0], [0], [1], [0, 0, 1, 1], [], []>} : vector<1024x216xbf16>, vector<216x4xbf16>, vector<1024x4xf32> -> vector<1024x4xf32>
    %c0_3 = arith.constant 0 : index
    %c0_4 = arith.constant 0 : index
    %3 = vector.load %arg3[%c0_3, %c0_4] : memref<1x4xf32, #tpu.memory_space<vmem>>, vector<1x4xf32>
    %4 = vector.broadcast %3 : vector<1x4xf32> to vector<1024x4xf32>
    %5 = arith.addf %2, %4 : vector<1024x4xf32>
    %6 = arith.truncf %5 : vector<1024x4xf32> to vector<1024x4xbf16>
    %c0_5 = arith.constant 0 : index
    %c0_6 = arith.constant 0 : index
    %7 = vector.load %arg4[%c0_5, %c0_6] : memref<1024x4xbf16, #tpu.memory_space<vmem>>, vector<1024x4xbf16>
    tpu.vector_store %arg4[%c0_5, %c0_6], %6 {strides = array<i32>} : memref<1024x4xbf16, #tpu.memory_space<vmem>>, vector<1024x4xbf16>,
    %cst_7 = arith.constant dense<0.000000e+00> : vector<4xf32>
    %8 = vector.multi_reduction <add>, %5, %cst_7 [0] : vector<1024x4xf32> to vector<4xf32>
    %9 = vector.shape_cast %8 : vector<4xf32> to vector<1x4xf32>
    %10 = vector.shape_cast %9 : vector<1x4xf32> to vector<1x1x4xf32>
    %c0_8 = arith.constant 0 : index
    %c0_9 = arith.constant 0 : index
    %c0_10 = arith.constant 0 : index
    %11 = vector.load %arg5[%c0_8, %c0_9, %c0_10] : memref<1x1x4xf32, #tpu.memory_space<vmem>>, vector<1x1x4xf32>
    tpu.vector_store %arg5[%c0_8, %c0_9, %c0_10], %10 {strides = array<i32>} : memref<1x1x4xf32, #tpu.memory_space<vmem>>, vector<1x1x4xf32>,
    %12 = arith.mulf %5, %5 : vector<1024x4xf32>
    %cst_11 = arith.constant dense<0.000000e+00> : vector<4xf32>
    %13 = vector.multi_reduction <add>, %12, %cst_11 [0] : vector<1024x4xf32> to vector<4xf32>
    %14 = vector.shape_cast %13 : vector<4xf32> to vector<1x4xf32>
    %15 = vector.shape_cast %14 : vector<1x4xf32> to vector<1x1x4xf32>
    %c0_12 = arith.constant 0 : index
    %c0_13 = arith.constant 0 : index
    %c0_14 = arith.constant 0 : index
    %16 = vector.load %arg6[%c0_12, %c0_13, %c0_14] : memref<1x1x4xf32, #tpu.memory_space<vmem>>, vector<1x1x4xf32>
    tpu.vector_store %arg6[%c0_12, %c0_13, %c0_14], %15 {strides = array<i32>} : memref<1x1x4xf32, #tpu.memory_space<vmem>>, vector<1x1x4xf32>,
    return
  }
  func.func @transform_0(%arg0: i32) -> (i32, i32) {
    %c0_i32 = arith.constant 0 : i32
    %c0_i32_0 = arith.constant 0 : i32
    return %arg0, %c0_i32 : i32, i32
  }
  func.func @transform_1(%arg0: i32) -> (i32, i32) {
    %c0_i32 = arith.constant 0 : i32
    %c0_i32_0 = arith.constant 0 : i32
    %c0_i32_1 = arith.constant 0 : i32
    return %c0_i32, %c0_i32_0 : i32, i32
  }
  func.func @transform_2(%arg0: i32) -> (i32, i32) {
    %c0_i32 = arith.constant 0 : i32
    %c0_i32_0 = arith.constant 0 : i32
    %c0_i32_1 = arith.constant 0 : i32
    return %c0_i32, %c0_i32_0 : i32, i32
  }
  func.func @transform_3(%arg0: i32) -> (i32, i32) {
    %c0_i32 = arith.constant 0 : i32
    %c0_i32_0 = arith.constant 0 : i32
    return %arg0, %c0_i32 : i32, i32
  }
  func.func @transform_4(%arg0: i32) -> (i32, i32, i32) {
    %c0_i32 = arith.constant 0 : i32
    %c0_i32_0 = arith.constant 0 : i32
    %c0_i32_1 = arith.constant 0 : i32
    return %arg0, %c0_i32, %c0_i32_0 : i32, i32, i32
  }
  func.func @transform_5(%arg0: i32) -> (i32, i32, i32) {
    %c0_i32 = arith.constant 0 : i32
    %c0_i32_0 = arith.constant 0 : i32
    %c0_i32_1 = arith.constant 0 : i32
    return %arg0, %c0_i32, %c0_i32_0 : i32, i32, i32
  }
}

module attributes {stable_mosaic.version = 11 : i64} {
  func.func @_matmul_stats_kernel(%arg0: i32, %arg1: memref<1024x12xbf16, #tpu.memory_space<vmem>>, %arg2: memref<12x4xbf16, #tpu.memory_space<vmem>>, %arg3: memref<1x4xf32, #tpu.memory_space<vmem>>, %arg4: memref<1024x4xbf16, #tpu.memory_space<vmem>>, %arg5: memref<1x1x4xf32, #tpu.memory_space<vmem>>, %arg6: memref<1x1x4xf32, #tpu.memory_space<vmem>>) attributes {dimension_semantics = [#tpu.dimension_semantics<parallel>], iteration_bounds = array<i64: 8>, scalar_prefetch = 0 : i64, scratch_operands = 0 : i64, tpu.core_type = #tpu.core_type<tc>, window_params = [{transform_indices = @transform_0, window_bounds = array<i64: 1024, 12>}, {pipeline_mode = #tpu.pipeline_mode<synchronous>, transform_indices = @transform_1, window_bounds = array<i64: 12, 4>}, {pipeline_mode = #tpu.pipeline_mode<synchronous>, transform_indices = @transform_2, window_bounds = array<i64: 1, 4>}, {transform_indices = @transform_3, window_bounds = array<i64: 1024, 4>}, {transform_indices = @transform_4, window_bounds = array<i64: 1, 1, 4>}, {transform_indices = @transform_5, window_bounds = array<i64: 1, 1, 4>}]} {
    %c0 = arith.constant 0 : index
    %c0_0 = arith.constant 0 : index
    %0 = vector.load %arg1[%c0, %c0_0] : memref<1024x12xbf16, #tpu.memory_space<vmem>>, vector<1024x12xbf16>
    %c0_1 = arith.constant 0 : index
    %c0_2 = arith.constant 0 : index
    %1 = vector.load %arg2[%c0_1, %c0_2] : memref<12x4xbf16, #tpu.memory_space<vmem>>, vector<12x4xbf16>
    %cst = arith.constant dense<0.000000e+00> : vector<1024x4xf32>
    %2 = tpu.matmul %0, %1, %cst {dimension_numbers = #tpu.dot_dimension_numbers<[1], [0], [0], [1], [0, 0, 1, 1], [], []>} : vector<1024x12xbf16>, vector<12x4xbf16>, vector<1024x4xf32> -> vector<1024x4xf32>
    %c0_3 = arith.constant 0 : index
    %c0_4 = arith.constant 0 : index
    %3 = vector.load %arg3[%c0_3, %c0_4] : memref<1x4xf32, #tpu.memory_space<vmem>>, vector<1x4xf32>
    %4 = vector.broadcast %3 : vector<1x4xf32> to vector<1024x4xf32>
    %5 = arith.addf %2, %4 : vector<1024x4xf32>
    %6 = arith.truncf %5 : vector<1024x4xf32> to vector<1024x4xbf16>
    %c0_5 = arith.constant 0 : index
    %c0_6 = arith.constant 0 : index
    %7 = vector.load %arg4[%c0_5, %c0_6] : memref<1024x4xbf16, #tpu.memory_space<vmem>>, vector<1024x4xbf16>
    tpu.vector_store %arg4[%c0_5, %c0_6], %6 {strides = array<i32>} : memref<1024x4xbf16, #tpu.memory_space<vmem>>, vector<1024x4xbf16>,
    %cst_7 = arith.constant dense<0.000000e+00> : vector<4xf32>
    %8 = vector.multi_reduction <add>, %5, %cst_7 [0] : vector<1024x4xf32> to vector<4xf32>
    %9 = vector.shape_cast %8 : vector<4xf32> to vector<1x4xf32>
    %10 = vector.shape_cast %9 : vector<1x4xf32> to vector<1x1x4xf32>
    %c0_8 = arith.constant 0 : index
    %c0_9 = arith.constant 0 : index
    %c0_10 = arith.constant 0 : index
    %11 = vector.load %arg5[%c0_8, %c0_9, %c0_10] : memref<1x1x4xf32, #tpu.memory_space<vmem>>, vector<1x1x4xf32>
    tpu.vector_store %arg5[%c0_8, %c0_9, %c0_10], %10 {strides = array<i32>} : memref<1x1x4xf32, #tpu.memory_space<vmem>>, vector<1x1x4xf32>,
    %12 = arith.mulf %5, %5 : vector<1024x4xf32>
    %cst_11 = arith.constant dense<0.000000e+00> : vector<4xf32>
    %13 = vector.multi_reduction <add>, %12, %cst_11 [0] : vector<1024x4xf32> to vector<4xf32>
    %14 = vector.shape_cast %13 : vector<4xf32> to vector<1x4xf32>
    %15 = vector.shape_cast %14 : vector<1x4xf32> to vector<1x1x4xf32>
    %c0_12 = arith.constant 0 : index
    %c0_13 = arith.constant 0 : index
    %c0_14 = arith.constant 0 : index
    %16 = vector.load %arg6[%c0_12, %c0_13, %c0_14] : memref<1x1x4xf32, #tpu.memory_space<vmem>>, vector<1x1x4xf32>
    tpu.vector_store %arg6[%c0_12, %c0_13, %c0_14], %15 {strides = array<i32>} : memref<1x1x4xf32, #tpu.memory_space<vmem>>, vector<1x1x4xf32>,
    return
  }
  func.func @transform_0(%arg0: i32) -> (i32, i32) {
    %c0_i32 = arith.constant 0 : i32
    %c0_i32_0 = arith.constant 0 : i32
    return %arg0, %c0_i32 : i32, i32
  }
  func.func @transform_1(%arg0: i32) -> (i32, i32) {
    %c0_i32 = arith.constant 0 : i32
    %c0_i32_0 = arith.constant 0 : i32
    %c0_i32_1 = arith.constant 0 : i32
    return %c0_i32, %c0_i32_0 : i32, i32
  }
  func.func @transform_2(%arg0: i32) -> (i32, i32) {
    %c0_i32 = arith.constant 0 : i32
    %c0_i32_0 = arith.constant 0 : i32
    %c0_i32_1 = arith.constant 0 : i32
    return %c0_i32, %c0_i32_0 : i32, i32
  }
  func.func @transform_3(%arg0: i32) -> (i32, i32) {
    %c0_i32 = arith.constant 0 : i32
    %c0_i32_0 = arith.constant 0 : i32
    return %arg0, %c0_i32 : i32, i32
  }
  func.func @transform_4(%arg0: i32) -> (i32, i32, i32) {
    %c0_i32 = arith.constant 0 : i32
    %c0_i32_0 = arith.constant 0 : i32
    %c0_i32_1 = arith.constant 0 : i32
    return %arg0, %c0_i32, %c0_i32_0 : i32, i32, i32
  }
  func.func @transform_5(%arg0: i32) -> (i32, i32, i32) {
    %c0_i32 = arith.constant 0 : i32
    %c0_i32_0 = arith.constant 0 : i32
    %c0_i32_1 = arith.constant 0 : i32
    return %arg0, %c0_i32, %c0_i32_0 : i32, i32, i32
  }
}

module attributes {stable_mosaic.version = 11 : i64} {
  func.func @_matmul_stats_kernel(%arg0: i32, %arg1: memref<1024x324xbf16, #tpu.memory_space<vmem>>, %arg2: memref<324x4xbf16, #tpu.memory_space<vmem>>, %arg3: memref<1x4xf32, #tpu.memory_space<vmem>>, %arg4: memref<1024x4xbf16, #tpu.memory_space<vmem>>, %arg5: memref<1x1x4xf32, #tpu.memory_space<vmem>>, %arg6: memref<1x1x4xf32, #tpu.memory_space<vmem>>) attributes {dimension_semantics = [#tpu.dimension_semantics<parallel>], iteration_bounds = array<i64: 8>, scalar_prefetch = 0 : i64, scratch_operands = 0 : i64, tpu.core_type = #tpu.core_type<tc>, window_params = [{transform_indices = @transform_0, window_bounds = array<i64: 1024, 324>}, {pipeline_mode = #tpu.pipeline_mode<synchronous>, transform_indices = @transform_1, window_bounds = array<i64: 324, 4>}, {pipeline_mode = #tpu.pipeline_mode<synchronous>, transform_indices = @transform_2, window_bounds = array<i64: 1, 4>}, {transform_indices = @transform_3, window_bounds = array<i64: 1024, 4>}, {transform_indices = @transform_4, window_bounds = array<i64: 1, 1, 4>}, {transform_indices = @transform_5, window_bounds = array<i64: 1, 1, 4>}]} {
    %c0 = arith.constant 0 : index
    %c0_0 = arith.constant 0 : index
    %0 = vector.load %arg1[%c0, %c0_0] : memref<1024x324xbf16, #tpu.memory_space<vmem>>, vector<1024x324xbf16>
    %c0_1 = arith.constant 0 : index
    %c0_2 = arith.constant 0 : index
    %1 = vector.load %arg2[%c0_1, %c0_2] : memref<324x4xbf16, #tpu.memory_space<vmem>>, vector<324x4xbf16>
    %cst = arith.constant dense<0.000000e+00> : vector<1024x4xf32>
    %2 = tpu.matmul %0, %1, %cst {dimension_numbers = #tpu.dot_dimension_numbers<[1], [0], [0], [1], [0, 0, 1, 1], [], []>} : vector<1024x324xbf16>, vector<324x4xbf16>, vector<1024x4xf32> -> vector<1024x4xf32>
    %c0_3 = arith.constant 0 : index
    %c0_4 = arith.constant 0 : index
    %3 = vector.load %arg3[%c0_3, %c0_4] : memref<1x4xf32, #tpu.memory_space<vmem>>, vector<1x4xf32>
    %4 = vector.broadcast %3 : vector<1x4xf32> to vector<1024x4xf32>
    %5 = arith.addf %2, %4 : vector<1024x4xf32>
    %6 = arith.truncf %5 : vector<1024x4xf32> to vector<1024x4xbf16>
    %c0_5 = arith.constant 0 : index
    %c0_6 = arith.constant 0 : index
    %7 = vector.load %arg4[%c0_5, %c0_6] : memref<1024x4xbf16, #tpu.memory_space<vmem>>, vector<1024x4xbf16>
    tpu.vector_store %arg4[%c0_5, %c0_6], %6 {strides = array<i32>} : memref<1024x4xbf16, #tpu.memory_space<vmem>>, vector<1024x4xbf16>,
    %cst_7 = arith.constant dense<0.000000e+00> : vector<4xf32>
    %8 = vector.multi_reduction <add>, %5, %cst_7 [0] : vector<1024x4xf32> to vector<4xf32>
    %9 = vector.shape_cast %8 : vector<4xf32> to vector<1x4xf32>
    %10 = vector.shape_cast %9 : vector<1x4xf32> to vector<1x1x4xf32>
    %c0_8 = arith.constant 0 : index
    %c0_9 = arith.constant 0 : index
    %c0_10 = arith.constant 0 : index
    %11 = vector.load %arg5[%c0_8, %c0_9, %c0_10] : memref<1x1x4xf32, #tpu.memory_space<vmem>>, vector<1x1x4xf32>
    tpu.vector_store %arg5[%c0_8, %c0_9, %c0_10], %10 {strides = array<i32>} : memref<1x1x4xf32, #tpu.memory_space<vmem>>, vector<1x1x4xf32>,
    %12 = arith.mulf %5, %5 : vector<1024x4xf32>
    %cst_11 = arith.constant dense<0.000000e+00> : vector<4xf32>
    %13 = vector.multi_reduction <add>, %12, %cst_11 [0] : vector<1024x4xf32> to vector<4xf32>
    %14 = vector.shape_cast %13 : vector<4xf32> to vector<1x4xf32>
    %15 = vector.shape_cast %14 : vector<1x4xf32> to vector<1x1x4xf32>
    %c0_12 = arith.constant 0 : index
    %c0_13 = arith.constant 0 : index
    %c0_14 = arith.constant 0 : index
    %16 = vector.load %arg6[%c0_12, %c0_13, %c0_14] : memref<1x1x4xf32, #tpu.memory_space<vmem>>, vector<1x1x4xf32>
    tpu.vector_store %arg6[%c0_12, %c0_13, %c0_14], %15 {strides = array<i32>} : memref<1x1x4xf32, #tpu.memory_space<vmem>>, vector<1x1x4xf32>,
    return
  }
  func.func @transform_0(%arg0: i32) -> (i32, i32) {
    %c0_i32 = arith.constant 0 : i32
    %c0_i32_0 = arith.constant 0 : i32
    return %arg0, %c0_i32 : i32, i32
  }
  func.func @transform_1(%arg0: i32) -> (i32, i32) {
    %c0_i32 = arith.constant 0 : i32
    %c0_i32_0 = arith.constant 0 : i32
    %c0_i32_1 = arith.constant 0 : i32
    return %c0_i32, %c0_i32_0 : i32, i32
  }
  func.func @transform_2(%arg0: i32) -> (i32, i32) {
    %c0_i32 = arith.constant 0 : i32
    %c0_i32_0 = arith.constant 0 : i32
    %c0_i32_1 = arith.constant 0 : i32
    return %c0_i32, %c0_i32_0 : i32, i32
  }
  func.func @transform_3(%arg0: i32) -> (i32, i32) {
    %c0_i32 = arith.constant 0 : i32
    %c0_i32_0 = arith.constant 0 : i32
    return %arg0, %c0_i32 : i32, i32
  }
  func.func @transform_4(%arg0: i32) -> (i32, i32, i32) {
    %c0_i32 = arith.constant 0 : i32
    %c0_i32_0 = arith.constant 0 : i32
    %c0_i32_1 = arith.constant 0 : i32
    return %arg0, %c0_i32, %c0_i32_0 : i32, i32, i32
  }
  func.func @transform_5(%arg0: i32) -> (i32, i32, i32) {
    %c0_i32 = arith.constant 0 : i32
    %c0_i32_0 = arith.constant 0 : i32
    %c0_i32_1 = arith.constant 0 : i32
    return %arg0, %c0_i32, %c0_i32_0 : i32, i32, i32
  }
}

module attributes {stable_mosaic.version = 11 : i64} {
  func.func @_matmul_kernel(%arg0: i32, %arg1: memref<1024x8xbf16, #tpu.memory_space<vmem>>, %arg2: memref<8x4xbf16, #tpu.memory_space<vmem>>, %arg3: memref<1x4xf32, #tpu.memory_space<vmem>>, %arg4: memref<1024x4xf32, #tpu.memory_space<vmem>>) attributes {dimension_semantics = [#tpu.dimension_semantics<parallel>], iteration_bounds = array<i64: 8>, scalar_prefetch = 0 : i64, scratch_operands = 0 : i64, tpu.core_type = #tpu.core_type<tc>, window_params = [{transform_indices = @transform_0, window_bounds = array<i64: 1024, 8>}, {pipeline_mode = #tpu.pipeline_mode<synchronous>, transform_indices = @transform_1, window_bounds = array<i64: 8, 4>}, {pipeline_mode = #tpu.pipeline_mode<synchronous>, transform_indices = @transform_2, window_bounds = array<i64: 1, 4>}, {transform_indices = @transform_3, window_bounds = array<i64: 1024, 4>}]} {
    %c0 = arith.constant 0 : index
    %c0_0 = arith.constant 0 : index
    %0 = vector.load %arg1[%c0, %c0_0] : memref<1024x8xbf16, #tpu.memory_space<vmem>>, vector<1024x8xbf16>
    %c0_1 = arith.constant 0 : index
    %c0_2 = arith.constant 0 : index
    %1 = vector.load %arg2[%c0_1, %c0_2] : memref<8x4xbf16, #tpu.memory_space<vmem>>, vector<8x4xbf16>
    %cst = arith.constant dense<0.000000e+00> : vector<1024x4xf32>
    %2 = tpu.matmul %0, %1, %cst {dimension_numbers = #tpu.dot_dimension_numbers<[1], [0], [0], [1], [0, 0, 1, 1], [], []>} : vector<1024x8xbf16>, vector<8x4xbf16>, vector<1024x4xf32> -> vector<1024x4xf32>
    %c0_3 = arith.constant 0 : index
    %c0_4 = arith.constant 0 : index
    %3 = vector.load %arg3[%c0_3, %c0_4] : memref<1x4xf32, #tpu.memory_space<vmem>>, vector<1x4xf32>
    %4 = vector.broadcast %3 : vector<1x4xf32> to vector<1024x4xf32>
    %5 = arith.addf %2, %4 : vector<1024x4xf32>
    %c0_5 = arith.constant 0 : index
    %c0_6 = arith.constant 0 : index
    %6 = vector.load %arg4[%c0_5, %c0_6] : memref<1024x4xf32, #tpu.memory_space<vmem>>, vector<1024x4xf32>
    tpu.vector_store %arg4[%c0_5, %c0_6], %5 {strides = array<i32>} : memref<1024x4xf32, #tpu.memory_space<vmem>>, vector<1024x4xf32>,
    return
  }
  func.func @transform_0(%arg0: i32) -> (i32, i32) {
    %c0_i32 = arith.constant 0 : i32
    %c0_i32_0 = arith.constant 0 : i32
    return %arg0, %c0_i32 : i32, i32
  }
  func.func @transform_1(%arg0: i32) -> (i32, i32) {
    %c0_i32 = arith.constant 0 : i32
    %c0_i32_0 = arith.constant 0 : i32
    %c0_i32_1 = arith.constant 0 : i32
    return %c0_i32, %c0_i32_0 : i32, i32
  }
  func.func @transform_2(%arg0: i32) -> (i32, i32) {
    %c0_i32 = arith.constant 0 : i32
    %c0_i32_0 = arith.constant 0 : i32
    %c0_i32_1 = arith.constant 0 : i32
    return %c0_i32, %c0_i32_0 : i32, i32
  }
  func.func @transform_3(%arg0: i32) -> (i32, i32) {
    %c0_i32 = arith.constant 0 : i32
    %c0_i32_0 = arith.constant 0 : i32
    return %arg0, %c0_i32 : i32, i32
  }
}

</mosaic_0001>

<bundles_post_ra>
// kernel: tile.663
= control target key start
LH: loop header
LB: loop body
LE: loop exit
PB: predicated region body
PF: predicated region fallthrough
CT: control target
= control target key end

     0   :  { %s40_s0 = inlined_call_operand.vmem [shape: f32[4], index: 0, kind: input, shape index: {}]   ;;  %s41_s1 = inlined_call_operand.vmem [shape: f32[32,4], index: 1, kind: output, shape index: {}]  }
   0x1   :  { %v4_v0 = vld [vmem:[%s40_s0] ss:$0 sm:$0xff] }
   0x2   :  { %5 = vst [vmem:[%s41_s1] sm:$0xff] %v4_v0  ;;  %12 = vst [vmem:[%s41_s1 + $0x8] sm:$0xff] %v4_v0 }
   0x3   :  { %13 = vst [vmem:[%s41_s1 + $0x10] sm:$0xff] %v4_v0  ;;  %14 = vst [vmem:[%s41_s1 + $0x18] sm:$0xff] %v4_v0 }

// kernel: tile.664
= control target key start
LH: loop header
LB: loop body
LE: loop exit
PB: predicated region body
PF: predicated region fallthrough
CT: control target
= control target key end

     0   :  { %s261_s10 = smov 124   ;;  %s262_s11 = smov 116   ;;  %vm3_vm0 = vcmask 31744   ;;  %vm9_vm1 = vcmask 1048544   ;;  %vm15_vm2 = vcmask 1015744   ;;  %vm21_vm3 = vcmask 982944   ;;  %s401_s0 = inlined_call_operand.vmem [shape: f32[32,4], index: 0, kind: input, shape index: {}]   ;;  %s402_s1 = inlined_call_operand.vmem [shape: f32[1,128], index: 1, kind: output, shape index: {}]  }
   0x1   :  { %v199_v0 = vld [vmem:[%s401_s0 + $0x1f] sm:$0x1]   ;;  %v201_v1 = vld [vmem:[%s401_s0 + $0x1d] sm:$0x1]   ;;  %v200_v2 = vld [vmem:[%s401_s0 + $0x1e] sm:$0x1]  }
   0x2   :  { %7 = vrot.lane.b32.xlu0 %v199_v0, %s261_s10  ;;  %19 = vrot.lane.b32.xlu1 %v201_v1, %s262_s11  ;;  %v202_v3 = vld [vmem:[%s401_s0 + $0x1c] sm:$0x1]   ;;  %s263_s16 = smov 120   ;;  %s264_s17 = smov 112   ;;  %v203_v4 = vld [vmem:[%s401_s0 + $0x1b] sm:$0x1]  }
   0x3   :  { %v204_v5 = vld [vmem:[%s401_s0 + $0x1a] sm:$0x1]   ;;  %s265_s22 = smov 108   ;;  %s266_s23 = smov 104   ;;  %v205_v6 = vld [vmem:[%s401_s0 + $0x19] sm:$0x1]  }
   0x4   :  { %v206_v7 = vld [vmem:[%s401_s0 + $0x18] sm:$0x1]   ;;  %s267_s28 = smov 100   ;;  %s268_s29 = smov 96   ;;  %v207_v8 = vld [vmem:[%s401_s0 + $0x17] sm:$0x1]  }
   0x5   :  { %v208_v9 = vld [vmem:[%s401_s0 + $0x16] sm:$0x1]   ;;  %v2_v10 = vld [vmem:[%s401_s0] sm:$0x1]   ;;  %s269_s7 = smov 92   ;;  %s270_s8 = smov 88  }
   0x6   :  { %13 = vrot.lane.b32.xlu0 %v200_v2, %s263_s16  ;;  %25 = vrot.lane.b32.xlu1 %v202_v3, %s264_s17  ;;  %4 = vst.msk [vmem:[#allocation0] sm:$0x1] %vm3_vm0, %v2_v10   ;;  %v209_v11 = vld [vmem:[%s401_s0 + $0x15] sm:$0x1]   ;;  %v210_v12 = vld [vmem:[%s401_s0 + $0x14] sm:$0x1]  }
   0x7   :  { %s271_s13 = smov 84   ;;  %s272_s14 = smov 80   ;;  %v211_v13 = vld [vmem:[%s401_s0 + $0x13] sm:$0x1]   ;;  %v212_v14 = vld [vmem:[%s401_s0 + $0x12] sm:$0x1]  }
   0x8   :  { %s273_s19 = smov 76   ;;  %s274_s20 = smov 72   ;;  %v213_v15 = vld [vmem:[%s401_s0 + $0x11] sm:$0x1]   ;;  %v214_v16 = vld [vmem:[%s401_s0 + $0x10] sm:$0x1]  }
   0x9   :  { %s275_s25 = smov 68   ;;  %s276_s26 = smov 64   ;;  %v215_v17 = vld [vmem:[%s401_s0 + $0xf] sm:$0x1]   ;;  %v216_v18 = vld [vmem:[%s401_s0 + $0xe] sm:$0x1]  }
   0xa   :  { %31 = vrot.lane.b32.xlu0 %v203_v4, %s265_s22  ;;  %37 = vrot.lane.b32.xlu1 %v204_v5, %s266_s23  ;;  %s277_s2 = smov 60   ;;  %s278_s3 = smov 56   ;;  %v217_v19 = vld [vmem:[%s401_s0 + $0xd] sm:$0x1]   ;;  %v218_v20 = vld [vmem:[%s401_s0 + $0xc] sm:$0x1]  }
   0xb   :  { %s280_s9 = smov 48   ;;  %v219_v21 = vld [vmem:[%s401_s0 + $0xb] sm:$0x1]   ;;  %v220_v22 = vld [vmem:[%s401_s0 + $0xa] sm:$0x1]   ;;  %s282_s15 = smov 40  }
   0xc   :  { %v221_v23 = vld [vmem:[%s401_s0 + $0x9] sm:$0x1]   ;;  %v222_v24 = vld [vmem:[%s401_s0 + $0x8] sm:$0x1]   ;;  %s284_s21 = smov 32   ;;  %s286_s27 = smov 24  }
   0xd   :  { %v223_v25 = vld [vmem:[%s401_s0 + $0x7] sm:$0x1]   ;;  %v224_v26 = vld [vmem:[%s401_s0 + $0x6] sm:$0x1]   ;;  %v225_v27 = vld [vmem:[%s401_s0 + $0x5] sm:$0x1]  }
   0xe   :  { %43 = vrot.lane.b32.xlu0 %v205_v6, %s267_s28  ;;  %49 = vrot.lane.b32.xlu1 %v206_v7, %s268_s29  ;;  %v226_v28 = vld [vmem:[%s401_s0 + $0x4] sm:$0x1]   ;;  %s288_s4 = smov 16   ;;  %v227_v29 = vld [vmem:[%s401_s0 + $0x3] sm:$0x1]   ;;  %s290_s10 = smov 8  }
   0xf   :  { %v228_v30 = vld [vmem:[%s401_s0 + $0x2] sm:$0x1]   ;;  %v229_v31 = vld [vmem:[%s401_s0 + $0x1] sm:$0x1]   ;;  %s291_s0 = smov 4   ;;  %vm27_vm4 = vcmask 950144  }
  0x10   :  { %vm33_vm5 = vcmask 917344   ;;  %vm39_vm6 = vcmask 884544   ;;  %vm45_vm7 = vcmask 851744   ;;  %vm51_vm8 = vcmask 818944  }
  0x11   :  { %vm57_vm9 = vcmask 786144   ;;  %vm63_vm10 = vcmask 753344   ;;  %vm69_vm11 = vcmask 720544   ;;  %vm75_vm12 = vcmask 687744  }
  0x12   :  { %55 = vrot.lane.b32.xlu0 %v207_v8, %s269_s7  ;;  %61 = vrot.lane.b32.xlu1 %v208_v9, %s270_s8  ;;  %s279_s8 = smov 52   ;;  %vm81_vm13 = vcmask 654944   ;;  %vm87_vm14 = vcmask 622144   ;;  %vm93_vm15 = vcmask 589344   ;;  %vm99_vm0 = vcmask 556544  }
  0x16   :  { %67 = vrot.lane.b32.xlu0 %v209_v11, %s271_s13  ;;  %73 = vrot.lane.b32.xlu1 %v210_v12, %s272_s14  ;;  %s281_s14 = smov 44  }
  0x1a   :  { %79 = vrot.lane.b32.xlu0 %v211_v13, %s273_s19  ;;  %85 = vrot.lane.b32.xlu1 %v212_v14, %s274_s20  ;;  %s283_s20 = smov 36  }
  0x1e   :  { %91 = vrot.lane.b32.xlu0 %v213_v15, %s275_s25  ;;  %97 = vrot.lane.b32.xlu1 %v214_v16, %s276_s26  ;;  %s285_s26 = smov 28  }
  0x22   :  { %103 = vrot.lane.b32.xlu0 %v215_v17, %s277_s2  ;;  %109 = vrot.lane.b32.xlu1 %v216_v18, %s278_s3  ;;  %s287_s3 = smov 20  }
  0x26   :  { %115 = vrot.lane.b32.xlu0 %v217_v19, %s279_s8  ;;  %121 = vrot.lane.b32.xlu1 %v218_v20, %s280_s9  ;;  %s289_s9 = smov 12  }
  0x2a   :  { %127 = vrot.lane.b32.xlu0 %v219_v21, %s281_s14  ;;  %133 = vrot.lane.b32.xlu1 %v220_v22, %s282_s15 }
  0x2e   :  { %139 = vrot.lane.b32.xlu0 %v221_v23, %s283_s20  ;;  %145 = vrot.lane.b32.xlu1 %v222_v24, %s284_s21 }
  0x32   :  { %151 = vrot.lane.b32.xlu0 %v223_v25, %s285_s26  ;;  %157 = vrot.lane.b32.xlu1 %v224_v26, %s286_s27 }
  0x36   :  { %163 = vrot.lane.b32.xlu0 %v225_v27, %s287_s3  ;;  %169 = vrot.lane.b32.xlu1 %v226_v28, %s288_s4 }
  0x3a   :  { %175 = vrot.lane.b32.xlu0 %v227_v29, %s289_s9  ;;  %181 = vrot.lane.b32.xlu1 %v228_v30, %s290_s10 }
  0x3e   :  { %187 = vrot.lane.b32.xlu0 %v229_v31, %s291_s0 }
  0x74   :  { %v8_v32 = vpop.permute.xlu0 %7   ;;  %v20_v33 = vpop.permute.xlu1 %19  }
  0x75   :  { %10 = vst.msk [vmem:[#allocation0] sm:$0x1] %vm9_vm1, %v8_v32   ;;  %vm105_vm1 = vcmask 523744  }
  0x78   :  { %v14_v34 = vpop.permute.xlu0 %13   ;;  %v26_v35 = vpop.permute.xlu1 %25  }
  0x79   :  { %16 = vst.msk [vmem:[#allocation0] sm:$0x1] %vm15_vm2, %v14_v34   ;;  %vm111_vm2 = vcmask 490944  }
  0x7a   :  { %22 = vst.msk [vmem:[#allocation0] sm:$0x1] %vm21_vm3, %v20_v33   ;;  %vm117_vm3 = vcmask 458144  }
  0x7b   :  { %28 = vst.msk [vmem:[#allocation0] sm:$0x1] %vm27_vm4, %v26_v35   ;;  %vm123_vm4 = vcmask 425344  }
  0x7c   :  { %v32_v36 = vpop.permute.xlu0 %31   ;;  %v38_v37 = vpop.permute.xlu1 %37  }
  0x7d   :  { %34 = vst.msk [vmem:[#allocation0] sm:$0x1] %vm33_vm5, %v32_v36   ;;  %vm129_vm5 = vcmask 392544  }
  0x7e   :  { %40 = vst.msk [vmem:[#allocation0] sm:$0x1] %vm39_vm6, %v38_v37   ;;  %vm135_vm6 = vcmask 359744  }
  0x80   :  { %v44_v38 = vpop.permute.xlu0 %43   ;;  %v50_v39 = vpop.permute.xlu1 %49  }
  0x81   :  { %46 = vst.msk [vmem:[#allocation0] sm:$0x1] %vm45_vm7, %v44_v38   ;;  %vm141_vm7 = vcmask 326944  }
  0x82   :  { %52 = vst.msk [vmem:[#allocation0] sm:$0x1] %vm51_vm8, %v50_v39   ;;  %vm147_vm8 = vcmask 294144  }
  0x84   :  { %v56_v40 = vpop.permute.xlu0 %55   ;;  %v62_v41 = vpop.permute.xlu1 %61  }
  0x85   :  { %58 = vst.msk [vmem:[#allocation0] sm:$0x1] %vm57_vm9, %v56_v40   ;;  %vm153_vm9 = vcmask 261344  }
  0x86   :  { %64 = vst.msk [vmem:[#allocation0] sm:$0x1] %vm63_vm10, %v62_v41   ;;  %vm159_vm10 = vcmask 228544  }
  0x88   :  { %v68_v42 = vpop.permute.xlu0 %67   ;;  %v74_v43 = vpop.permute.xlu1 %73  }
  0x89   :  { %70 = vst.msk [vmem:[#allocation0] sm:$0x1] %vm69_vm11, %v68_v42   ;;  %vm165_vm11 = vcmask 195744  }
  0x8a   :  { %76 = vst.msk [vmem:[#allocation0] sm:$0x1] %vm75_vm12, %v74_v43   ;;  %vm171_vm12 = vcmask 162944  }
  0x8c   :  { %v80_v44 = vpop.permute.xlu0 %79   ;;  %v86_v45 = vpop.permute.xlu1 %85  }
  0x8d   :  { %82 = vst.msk [vmem:[#allocation0] sm:$0x1] %vm81_vm13, %v80_v44   ;;  %vm177_vm13 = vcmask 130144  }
  0x8e   :  { %88 = vst.msk [vmem:[#allocation0] sm:$0x1] %vm87_vm14, %v86_v45   ;;  %vm183_vm14 = vcmask 97344  }
  0x90   :  { %v92_v46 = vpop.permute.xlu0 %91   ;;  %v98_v47 = vpop.permute.xlu1 %97  }
  0x91   :  { %94 = vst.msk [vmem:[#allocation0] sm:$0x1] %vm93_vm15, %v92_v46   ;;  %vm189_vm15 = vcmask 64544  }
  0x92   :  { %100 = vst.msk [vmem:[#allocation0] sm:$0x1] %vm99_vm0, %v98_v47  }
  0x94   :  { %v104_v48 = vpop.permute.xlu0 %103   ;;  %v110_v49 = vpop.permute.xlu1 %109  }
  0x95   :  { %106 = vst.msk [vmem:[#allocation0] sm:$0x1] %vm105_vm1, %v104_v48  }
  0x96   :  { %112 = vst.msk [vmem:[#allocation0] sm:$0x1] %vm111_vm2, %v110_v49  }
  0x98   :  { %v116_v50 = vpop.permute.xlu0 %115   ;;  %v122_v51 = vpop.permute.xlu1 %121  }
  0x99   :  { %118 = vst.msk [vmem:[#allocation0] sm:$0x1] %vm117_vm3, %v116_v50  }
  0x9a   :  { %124 = vst.msk [vmem:[#allocation0] sm:$0x1] %vm123_vm4, %v122_v51  }
  0x9c   :  { %v128_v52 = vpop.permute.xlu0 %127   ;;  %v134_v53 = vpop.permute.xlu1 %133  }
  0x9d   :  { %130 = vst.msk [vmem:[#allocation0] sm:$0x1] %vm129_vm5, %v128_v52  }
  0x9e   :  { %136 = vst.msk [vmem:[#allocation0] sm:$0x1] %vm135_vm6, %v134_v53  }
  0xa0   :  { %v140_v54 = vpop.permute.xlu0 %139   ;;  %v146_v55 = vpop.permute.xlu1 %145  }
  0xa1   :  { %142 = vst.msk [vmem:[#allocation0] sm:$0x1] %vm141_vm7, %v140_v54  }
  0xa2   :  { %148 = vst.msk [vmem:[#allocation0] sm:$0x1] %vm147_vm8, %v146_v55  }
  0xa4   :  { %v152_v56 = vpop.permute.xlu0 %151   ;;  %v158_v57 = vpop.permute.xlu1 %157  }
  0xa5   :  { %154 = vst.msk [vmem:[#allocation0] sm:$0x1] %vm153_vm9, %v152_v56  }
  0xa6   :  { %160 = vst.msk [vmem:[#allocation0] sm:$0x1] %vm159_vm10, %v158_v57  }
  0xa8   :  { %v164_v58 = vpop.permute.xlu0 %163   ;;  %v170_v59 = vpop.permute.xlu1 %169  }
  0xa9   :  { %166 = vst.msk [vmem:[#allocation0] sm:$0x1] %vm165_vm11, %v164_v58  }
  0xaa   :  { %172 = vst.msk [vmem:[#allocation0] sm:$0x1] %vm171_vm12, %v170_v59  }
  0xac   :  { %v176_v60 = vpop.permute.xlu0 %175   ;;  %v182_v61 = vpop.permute.xlu1 %181  }
  0xad   :  { %178 = vst.msk [vmem:[#allocation0] sm:$0x1] %vm177_vm13, %v176_v60  }
  0xae   :  { %184 = vst.msk [vmem:[#allocation0] sm:$0x1] %vm183_vm14, %v182_v61  }
  0xb0   :  { %v188_v62 = vpop.permute.xlu0 %187  }
  0xb1   :  { %190 = vst.msk [vmem:[#allocation0] sm:$0x1] %vm189_vm15, %v188_v62  }
  0xb8   :  { %v195_v63 = vld [vmem:[#allocation0] sm:$0x1] }
  0xb9   :  { %198 = vst [vmem:[%s402_s1] sm:$0x1] %v195_v63 }

// kernel: tile.733
= control target key start
LH: loop header
LB: loop body
LE: loop exit
PB: predicated region body
PF: predicated region fallthrough
CT: control target
= control target key end

     0   :  { %s28_s0 = inlined_call_operand.vmem [shape: f32[8], index: 0, kind: input, shape index: {}]   ;;  %s29_s1 = inlined_call_operand.vmem [shape: f32[16,8], index: 1, kind: output, shape index: {}]  }
   0x1   :  { %v4_v0 = vld [vmem:[%s28_s0] ss:$0 sm:$0xff] }
   0x2   :  { %5 = vst [vmem:[%s29_s1] sm:$0xff] %v4_v0  ;;  %8 = vst [vmem:[%s29_s1 + $0x8] sm:$0xff] %v4_v0 }

// kernel: tile.734
= control target key start
LH: loop header
LB: loop body
LE: loop exit
PB: predicated region body
PF: predicated region fallthrough
CT: control target
= control target key end

     0   :  { %s133_s10 = smov 120   ;;  %s134_s11 = smov 104   ;;  %vm3_vm0 = vcmask 64512   ;;  %vm9_vm1 = vcmask 1048512   ;;  %vm15_vm2 = vcmask 982912   ;;  %vm21_vm3 = vcmask 917312   ;;  %s209_s0 = inlined_call_operand.vmem [shape: f32[16,8], index: 0, kind: input, shape index: {}]   ;;  %s210_s1 = inlined_call_operand.vmem [shape: f32[1,128], index: 1, kind: output, shape index: {}]  }
   0x1   :  { %v103_v0 = vld [vmem:[%s209_s0 + $0xf] sm:$0x1]   ;;  %v105_v1 = vld [vmem:[%s209_s0 + $0xd] sm:$0x1]   ;;  %v104_v2 = vld [vmem:[%s209_s0 + $0xe] sm:$0x1]  }
   0x2   :  { %7 = vrot.lane.b32.xlu0 %v103_v0, %s133_s10  ;;  %19 = vrot.lane.b32.xlu1 %v105_v1, %s134_s11  ;;  %v106_v3 = vld [vmem:[%s209_s0 + $0xc] sm:$0x1]   ;;  %s135_s16 = smov 112   ;;  %s136_s17 = smov 96   ;;  %v107_v4 = vld [vmem:[%s209_s0 + $0xb] sm:$0x1]  }
   0x3   :  { %v108_v5 = vld [vmem:[%s209_s0 + $0xa] sm:$0x1]   ;;  %v2_v6 = vld [vmem:[%s209_s0] sm:$0x1]   ;;  %s137_s24 = smov 88   ;;  %s138_s25 = smov 80  }
   0x4   :  { %4 = vst.msk [vmem:[#allocation0] sm:$0x1] %vm3_vm0, %v2_v6   ;;  %v109_v7 = vld [vmem:[%s209_s0 + $0x9] sm:$0x1]   ;;  %v110_v8 = vld [vmem:[%s209_s0 + $0x8] sm:$0x1]  }
   0x5   :  { %s139_s30 = smov 72   ;;  %s140_s2 = smov 64   ;;  %v111_v9 = vld [vmem:[%s209_s0 + $0x7] sm:$0x1]   ;;  %v112_v10 = vld [vmem:[%s209_s0 + $0x6] sm:$0x1]  }
   0x6   :  { %13 = vrot.lane.b32.xlu0 %v104_v2, %s135_s16  ;;  %25 = vrot.lane.b32.xlu1 %v106_v3, %s136_s17  ;;  %s141_s7 = smov 56   ;;  %s142_s8 = smov 48   ;;  %v113_v11 = vld [vmem:[%s209_s0 + $0x5] sm:$0x1]   ;;  %v114_v12 = vld [vmem:[%s209_s0 + $0x4] sm:$0x1]  }
   0x7   :  { %s143_s13 = smov 40   ;;  %s144_s14 = smov 32   ;;  %v115_v13 = vld [vmem:[%s209_s0 + $0x3] sm:$0x1]   ;;  %v116_v14 = vld [vmem:[%s209_s0 + $0x2] sm:$0x1]  }
   0x8   :  { %s145_s19 = smov 24   ;;  %s146_s20 = smov 16   ;;  %v117_v15 = vld [vmem:[%s209_s0 + $0x1] sm:$0x1]   ;;  %vm27_vm4 = vcmask 851712   ;;  %vm33_vm5 = vcmask 786112  }
   0x9   :  { %s147_s0 = smov 8   ;;  %vm39_vm6 = vcmask 720512   ;;  %vm45_vm7 = vcmask 654912   ;;  %vm51_vm8 = vcmask 589312   ;;  %vm57_vm9 = vcmask 523712  }
   0xa   :  { %31 = vrot.lane.b32.xlu0 %v107_v4, %s137_s24  ;;  %37 = vrot.lane.b32.xlu1 %v108_v5, %s138_s25  ;;  %vm63_vm10 = vcmask 458112   ;;  %vm69_vm11 = vcmask 392512   ;;  %vm75_vm12 = vcmask 326912   ;;  %vm81_vm13 = vcmask 261312  }
   0xb   :  { %vm87_vm14 = vcmask 195712   ;;  %vm93_vm15 = vcmask 130112  }
   0xe   :  { %43 = vrot.lane.b32.xlu0 %v109_v7, %s139_s30  ;;  %49 = vrot.lane.b32.xlu1 %v110_v8, %s140_s2 }
  0x12   :  { %55 = vrot.lane.b32.xlu0 %v111_v9, %s141_s7  ;;  %61 = vrot.lane.b32.xlu1 %v112_v10, %s142_s8 }
  0x16   :  { %67 = vrot.lane.b32.xlu0 %v113_v11, %s143_s13  ;;  %73 = vrot.lane.b32.xlu1 %v114_v12, %s144_s14 }
  0x1a   :  { %79 = vrot.lane.b32.xlu0 %v115_v13, %s145_s19  ;;  %85 = vrot.lane.b32.xlu1 %v116_v14, %s146_s20 }
  0x1e   :  { %91 = vrot.lane.b32.xlu0 %v117_v15, %s147_s0 }
  0x74   :  { %v8_v16 = vpop.permute.xlu0 %7   ;;  %v20_v17 = vpop.permute.xlu1 %19  }
  0x75   :  { %10 = vst.msk [vmem:[#allocation0] sm:$0x1] %vm9_vm1, %v8_v16  }
  0x78   :  { %v14_v18 = vpop.permute.xlu0 %13   ;;  %v26_v19 = vpop.permute.xlu1 %25  }
  0x79   :  { %16 = vst.msk [vmem:[#allocation0] sm:$0x1] %vm15_vm2, %v14_v18  }
  0x7a   :  { %22 = vst.msk [vmem:[#allocation0] sm:$0x1] %vm21_vm3, %v20_v17  }
  0x7b   :  { %28 = vst.msk [vmem:[#allocation0] sm:$0x1] %vm27_vm4, %v26_v19  }
  0x7c   :  { %v32_v20 = vpop.permute.xlu0 %31   ;;  %v38_v21 = vpop.permute.xlu1 %37  }
  0x7d   :  { %34 = vst.msk [vmem:[#allocation0] sm:$0x1] %vm33_vm5, %v32_v20  }
  0x7e   :  { %40 = vst.msk [vmem:[#allocation0] sm:$0x1] %vm39_vm6, %v38_v21  }
  0x80   :  { %v44_v22 = vpop.permute.xlu0 %43   ;;  %v50_v23 = vpop.permute.xlu1 %49  }
  0x81   :  { %46 = vst.msk [vmem:[#allocation0] sm:$0x1] %vm45_vm7, %v44_v22  }
  0x82   :  { %52 = vst.msk [vmem:[#allocation0] sm:$0x1] %vm51_vm8, %v50_v23  }
  0x84   :  { %v56_v24 = vpop.permute.xlu0 %55   ;;  %v62_v25 = vpop.permute.xlu1 %61  }
  0x85   :  { %58 = vst.msk [vmem:[#allocation0] sm:$0x1] %vm57_vm9, %v56_v24  }
  0x86   :  { %64 = vst.msk [vmem:[#allocation0] sm:$0x1] %vm63_vm10, %v62_v25  }
  0x88   :  { %v68_v26 = vpop.permute.xlu0 %67   ;;  %v74_v27 = vpop.permute.xlu1 %73  }
  0x89   :  { %70 = vst.msk [vmem:[#allocation0] sm:$0x1] %vm69_vm11, %v68_v26  }
  0x8a   :  { %76 = vst.msk [vmem:[#allocation0] sm:$0x1] %vm75_vm12, %v74_v27  }
  0x8c   :  { %v80_v28 = vpop.permute.xlu0 %79   ;;  %v86_v29 = vpop.permute.xlu1 %85  }
  0x8d   :  { %82 = vst.msk [vmem:[#allocation0] sm:$0x1] %vm81_vm13, %v80_v28  }
  0x8e   :  { %88 = vst.msk [vmem:[#allocation0] sm:$0x1] %vm87_vm14, %v86_v29  }
  0x90   :  { %v92_v30 = vpop.permute.xlu0 %91  }
  0x91   :  { %94 = vst.msk [vmem:[#allocation0] sm:$0x1] %vm93_vm15, %v92_v30  }
  0x98   :  { %v99_v31 = vld [vmem:[#allocation0] sm:$0x1] }
  0x99   :  { %102 = vst [vmem:[%s210_s1] sm:$0x1] %v99_v31 }

// kernel: tile.783
= control target key start
LH: loop header
LB: loop body
LE: loop exit
PB: predicated region body
PF: predicated region fallthrough
CT: control target
= control target key end

     0   :  { %s22_s0 = inlined_call_operand.vmem [shape: f32[16], index: 0, kind: input, shape index: {}]   ;;  %s23_s1 = inlined_call_operand.vmem [shape: f32[8,16], index: 1, kind: output, shape index: {}]  }
   0x1   :  { %v4_v0 = vld [vmem:[%s22_s0] ss:$0 sm:$0xff] }
   0x2   :  { %5 = vst [vmem:[%s23_s1] sm:$0xff] %v4_v0 }

// kernel: tile.784
= control target key start
LH: loop header
LB: loop body
LE: loop exit
PB: predicated region body
PF: predicated region fallthrough
CT: control target
= control target key end

     0   :  { %s69_s10 = smov 112   ;;  %s70_s11 = smov 80   ;;  %vm3_vm0 = vcmask 130048   ;;  %vm9_vm1 = vcmask 1048448   ;;  %vm15_vm2 = vcmask 917248   ;;  %vm21_vm3 = vcmask 786048   ;;  %s113_s0 = inlined_call_operand.vmem [shape: f32[8,16], index: 0, kind: input, shape index: {}]   ;;  %s114_s1 = inlined_call_operand.vmem [shape: f32[1,128], index: 1, kind: output, shape index: {}]  }
   0x1   :  { %v55_v0 = vld [vmem:[%s113_s0 + $0x7] sm:$0x1]   ;;  %v57_v1 = vld [vmem:[%s113_s0 + $0x5] sm:$0x1]   ;;  %v56_v2 = vld [vmem:[%s113_s0 + $0x6] sm:$0x1]  }
   0x2   :  { %7 = vrot.lane.b32.xlu0 %v55_v0, %s69_s10  ;;  %19 = vrot.lane.b32.xlu1 %v57_v1, %s70_s11  ;;  %v58_v3 = vld [vmem:[%s113_s0 + $0x4] sm:$0x1]   ;;  %v2_v4 = vld [vmem:[%s113_s0] sm:$0x1]   ;;  %s71_s18 = smov 96   ;;  %s72_s19 = smov 64  }
   0x3   :  { %4 = vst.msk [vmem:[#allocation0] sm:$0x1] %vm3_vm0, %v2_v4   ;;  %v59_v5 = vld [vmem:[%s113_s0 + $0x3] sm:$0x1]   ;;  %v60_v6 = vld [vmem:[%s113_s0 + $0x2] sm:$0x1]  }
   0x4   :  { %s73_s24 = smov 48   ;;  %s74_s25 = smov 32   ;;  %v61_v7 = vld [vmem:[%s113_s0 + $0x1] sm:$0x1]   ;;  %vm27_vm4 = vcmask 654848   ;;  %vm33_vm5 = vcmask 523648  }
   0x5   :  { %s75_s0 = smov 16   ;;  %vm39_vm6 = vcmask 392448   ;;  %vm45_vm7 = vcmask 261248  }
   0x6   :  { %13 = vrot.lane.b32.xlu0 %v56_v2, %s71_s18  ;;  %25 = vrot.lane.b32.xlu1 %v58_v3, %s72_s19 }
   0xa   :  { %31 = vrot.lane.b32.xlu0 %v59_v5, %s73_s24  ;;  %37 = vrot.lane.b32.xlu1 %v60_v6, %s74_s25 }
   0xe   :  { %43 = vrot.lane.b32.xlu0 %v61_v7, %s75_s0 }
  0x74   :  { %v8_v8 = vpop.permute.xlu0 %7   ;;  %v20_v9 = vpop.permute.xlu1 %19  }
  0x75   :  { %10 = vst.msk [vmem:[#allocation0] sm:$0x1] %vm9_vm1, %v8_v8  }
  0x78   :  { %v14_v10 = vpop.permute.xlu0 %13   ;;  %v26_v11 = vpop.permute.xlu1 %25  }
  0x79   :  { %16 = vst.msk [vmem:[#allocation0] sm:$0x1] %vm15_vm2, %v14_v10  }
  0x7a   :  { %22 = vst.msk [vmem:[#allocation0] sm:$0x1] %vm21_vm3, %v20_v9  }
  0x7b   :  { %28 = vst.msk [vmem:[#allocation0] sm:$0x1] %vm27_vm4, %v26_v11  }
  0x7c   :  { %v32_v12 = vpop.permute.xlu0 %31   ;;  %v38_v13 = vpop.permute.xlu1 %37  }
  0x7d   :  { %34 = vst.msk [vmem:[#allocation0] sm:$0x1] %vm33_vm5, %v32_v12  }
  0x7e   :  { %40 = vst.msk [vmem:[#allocation0] sm:$0x1] %vm39_vm6, %v38_v13  }
  0x80   :  { %v44_v14 = vpop.permute.xlu0 %43  }
  0x81   :  { %46 = vst.msk [vmem:[#allocation0] sm:$0x1] %vm45_vm7, %v44_v14  }
  0x88   :  { %v51_v15 = vld [vmem:[#allocation0] sm:$0x1] }
  0x89   :  { %54 = vst [vmem:[%s114_s1] sm:$0x1] %v51_v15 }

// kernel: tile.833
= control target key start
LH: loop header
LB: loop body
LE: loop exit
PB: predicated region body
PF: predicated region fallthrough
CT: control target
= control target key end

     0   :  { %s22_s0 = inlined_call_operand.vmem [shape: f32[32], index: 0, kind: input, shape index: {}]   ;;  %s23_s1 = inlined_call_operand.vmem [shape: f32[4,32], index: 1, kind: output, shape index: {}]  }
   0x1   :  { %v4_v0 = vld [vmem:[%s22_s0] ss:$0 sm:$0xff] }
   0x2   :  { %5 = vst [vmem:[%s23_s1] sm:$0xf] %v4_v0 }

// kernel: tile.834
= control target key start
LH: loop header
LB: loop body
LE: loop exit
PB: predicated region body
PF: predicated region fallthrough
CT: control target
= control target key end

     0   :  { %vm8_vm0 = vcmask 261120   ;;  %s40_s8 = smov 32   ;;  %s41_s9 = smov 64   ;;  %vm14_vm1 = vcmask 1048320   ;;  %vm20_vm2 = vcmask 785920   ;;  %vm26_vm3 = vcmask 523520   ;;  %s58_s0 = inlined_call_operand.vmem [shape: f32[4,32], index: 0, kind: input, shape index: {}]   ;;  %s59_s1 = inlined_call_operand.vmem [shape: f32[1,128], index: 1, kind: output, shape index: {}]  }
   0x1   :  { %v5_v0 = vld [vmem:[%s58_s0] sm:$0xf]  ;;  %s39_s0 = smov 96  }
   0x2   :  { %6 = vst [vmem:[#allocation1] sm:$0xf] %v5_v0 }
   0x9   :  { %v11_v1 = vld [vmem:[#allocation1 + $0x3] sm:$0x1]   ;;  %v23_v2 = vld [vmem:[#allocation1 + $0x1] sm:$0x1]   ;;  %v7_v3 = vld [vmem:[#allocation1] sm:$0x1]  }
   0xa   :  { %12 = vrot.lane.b32.xlu0 %v11_v1, %s39_s0  ;;  %24 = vrot.lane.b32.xlu1 %v23_v2, %s40_s8  ;;  %v17_v4 = vld [vmem:[#allocation1 + $0x2] sm:$0x1]   ;;  %9 = vst.msk [vmem:[#allocation0] sm:$0x1] %vm8_vm0, %v7_v3  }
   0xe   :  { %18 = vrot.lane.b32.xlu0 %v17_v4, %s41_s9 }
  0x7c   :  { %v13_v5 = vpop.permute.xlu0 %12   ;;  %v25_v6 = vpop.permute.xlu1 %24  }
  0x7d   :  { %15 = vst.msk [vmem:[#allocation0] sm:$0x1] %vm14_vm1, %v13_v5  }
  0x80   :  { %v19_v7 = vpop.permute.xlu0 %18  }
  0x81   :  { %21 = vst.msk [vmem:[#allocation0] sm:$0x1] %vm20_vm2, %v19_v7  }
  0x82   :  { %27 = vst.msk [vmem:[#allocation0] sm:$0x1] %vm26_vm3, %v25_v6  }
  0x89   :  { %v32_v8 = vld [vmem:[#allocation0] sm:$0x1] }
  0x8a   :  { %35 = vst [vmem:[%s59_s1] sm:$0x1] %v32_v8 }

// kernel: tile.883
= control target key start
LH: loop header
LB: loop body
LE: loop exit
PB: predicated region body
PF: predicated region fallthrough
CT: control target
= control target key end

     0   :  { %s22_s0 = inlined_call_operand.vmem [shape: f32[64], index: 0, kind: input, shape index: {}]   ;;  %s23_s1 = inlined_call_operand.vmem [shape: f32[2,64], index: 1, kind: output, shape index: {}]  }
   0x1   :  { %v4_v0 = vld [vmem:[%s22_s0] ss:$0 sm:$0xff] }
   0x2   :  { %5 = vst [vmem:[%s23_s1] sm:$0x3] %v4_v0 }

// kernel: tile.884
= control target key start
LH: loop header
LB: loop body
LE: loop exit
PB: predicated region body
PF: predicated region fallthrough
CT: control target
= control target key end

     0   :  { %vm8_vm0 = vcmask 523264   ;;  %vm14_vm1 = vcmask 1048064   ;;  %s42_s0 = inlined_call_operand.vmem [shape: f32[2,64], index: 0, kind: input, shape index: {}]   ;;  %s43_s1 = inlined_call_operand.vmem [shape: f32[1,128], index: 1, kind: output, shape index: {}]  }
   0x1   :  { %v5_v0 = vld [vmem:[%s42_s0] sm:$0x3]  ;;  %s25_s0 = smov 64  }
   0x2   :  { %6 = vst [vmem:[#allocation1] sm:$0x3] %v5_v0 }
   0x9   :  { %v11_v1 = vld [vmem:[#allocation1 + $0x1] sm:$0x1]   ;;  %v7_v2 = vld [vmem:[#allocation1] sm:$0x1]  }
   0xa   :  { %12 = vrot.lane.b32.xlu0 %v11_v1, %s25_s0  ;;  %9 = vst.msk [vmem:[#allocation0] sm:$0x1] %vm8_vm0, %v7_v2  }
  0x7c   :  { %v13_v3 = vpop.permute.xlu0 %12  }
  0x7d   :  { %15 = vst.msk [vmem:[#allocation0] sm:$0x1] %vm14_vm1, %v13_v3  }
  0x84   :  { %v20_v4 = vld [vmem:[#allocation0] sm:$0x1] }
  0x85   :  { %23 = vst [vmem:[%s43_s1] sm:$0x1] %v20_v4 }

</bundles_post_ra>
